<compile_context>
chip_gen: v7x
topology: tpu7x:2x2x1
jax: 0.10.0
libtpu: 0.0.40
codegen_flags: <defaults>
</compile_context>

<pallas_src>
import functools

import jax
import jax.numpy as jnp
from jax import lax
from jax.experimental import pallas as pl
from jax.experimental.pallas import tpu as pltpu


# ----------------------------------------------------------------------------
# Bilinear (align_corners=True) interpolation matrix:  out = A @ in
# ----------------------------------------------------------------------------
def interp_matrix(n_in, n_out):
    if n_in == 1:                       # guard degenerate spatial dim
        return jnp.ones((n_out, 1), jnp.float32)
    idx = jnp.arange(n_out)
    src = idx.astype(jnp.float32) * (n_in - 1) / (n_out - 1)
    lo = jnp.clip(jnp.floor(src).astype(jnp.int32), 0, n_in - 2)
    frac = src - lo.astype(jnp.float32)
    A = jnp.zeros((n_out, n_in), jnp.float32)
    A = A.at[idx, lo].set(1.0 - frac)
    A = A.at[idx, lo + 1].add(frac)
    return A


# ----------------------------------------------------------------------------
# Pallas kernel: one batch element per grid step
# ----------------------------------------------------------------------------
def _upsampler_kernel(x_ref, bdh_ref, awT_ref, w_ref, b_ref, o_ref,
                      up_ref, win_ref, *, C_in, C_out, H2, W2, Hp, S):
    # --- 1) bilinear x2 upsample with conv padding folded in: two matmuls ----
    #     x_ref: (C_in*H, W); awT_ref: (W, Wp); bdh_ref: (C_in*Hp, C_in*H)
    t = jnp.dot(x_ref[...], awT_ref[...], preferred_element_type=jnp.float32)
    up = jnp.dot(bdh_ref[...], t, preferred_element_type=jnp.float32)
    for c in range(C_in):                          # static, tiny; Hp is 8-aligned
        up_ref[c] = up[c * Hp:(c + 1) * Hp, :]

    # --- 2) im2col once: stack the 9 shifted windows into (9*C_in, S) --------
    for tap in range(9):
        dy, dx = tap // 3, tap % 3
        win_ref[tap * C_in:(tap + 1) * C_in, :] = (
            up_ref[:, dy:dy + H2, dx:dx + W2].reshape(C_in, S))

    # --- 3) single fused contraction (3x3 conv + 1x1 conv in center tap) -----
    acc = jnp.dot(w_ref[...], win_ref[...], preferred_element_type=jnp.float32)
    o_ref[...] = acc + b_ref[...]                  # (C_out, S), lane-dense store


# ----------------------------------------------------------------------------
# Wrapper
# ----------------------------------------------------------------------------
def upsampler_forward(x, w3, b3, w1, b1):
    """x: (N, C_in, H, W) float32 NCHW.  Returns (N, C_out, 2H, 2W) NCHW."""
    N, C_in, H, W = x.shape
    C_out = w3.shape[0]
    H2, W2 = 2 * H, 2 * W
    S = H2 * W2
    Wp = W2 + 2                       # padded width (zero border cols)
    Hp = ((H2 + 2 + 7) // 8) * 8      # padded height, rounded up to sublane=8

    # interpolation matrices with the conv zero-padding folded in
    Ah = interp_matrix(H, H2)                                         # (H2, H)
    Aw = interp_matrix(W, W2)                                         # (W2, W)
    Ah_pad = jnp.zeros((Hp, H), jnp.float32).at[1:H2 + 1, :].set(Ah)  # (Hp, H)
    AwT_pad = jnp.zeros((Wp, W), jnp.float32).at[1:W2 + 1, :].set(Aw).T  # (W, Wp)
    bdh = jnp.kron(jnp.eye(C_in, dtype=jnp.float32), Ah_pad)   # (C_in*Hp, C_in*H)

    # fold the 1x1 resizer into the 3x3 center tap; combine biases
    w_comb = w3.astype(jnp.float32).at[:, :, 1, 1].add(
        w1[:, :, 0, 0].astype(jnp.float32))
    wK = jnp.transpose(w_comb, (0, 2, 3, 1)).reshape(C_out, 9 * C_in)  # K=tap*C_in+c
    bias = (b3 + b1).astype(jnp.float32).reshape(C_out, 1)

    x3 = x.reshape(N, C_in * H, W)    # free reshape; kernel consumes 2-D slabs

    kernel = functools.partial(_upsampler_kernel, C_in=C_in, C_out=C_out,
                               H2=H2, W2=W2, Hp=Hp, S=S)

    out = pl.pallas_call(
        kernel,
        out_shape=jax.ShapeDtypeStruct((N, C_out, S), jnp.float32),
        grid=(N,),
        in_specs=[
            pl.BlockSpec((None, C_in * H, W), lambda n: (n, 0, 0)),
            pl.BlockSpec((C_in * Hp, C_in * H), lambda n: (0, 0)),
            pl.BlockSpec((W, Wp), lambda n: (0, 0)),
            pl.BlockSpec((C_out, 9 * C_in), lambda n: (0, 0)),
            pl.BlockSpec((C_out, 1), lambda n: (0, 0)),
        ],
        out_specs=pl.BlockSpec((None, C_out, S), lambda n: (n, 0, 0)),
        scratch_shapes=[
            pltpu.VMEM((C_in, Hp, Wp), jnp.float32),     # padded upsampled image
            pltpu.VMEM((9 * C_in, S), jnp.float32),      # stacked im2col windows
        ],
        compiler_params=pltpu.CompilerParams(
            dimension_semantics=("parallel",)),
    )(x3, bdh, AwT_pad, wK, bias)

    return out.reshape(N, C_out, H2, W2)     # free reshape back to NCHW


# ----------------------------------------------------------------------------
# Pure-JAX reference (for correctness check)
# ----------------------------------------------------------------------------
def upsampler_reference(x, w3, b3, w1, b1):
    N, C_in, H, W = x.shape
    Ah = interp_matrix(H, 2 * H)
    Aw = interp_matrix(W, 2 * W)
    up = jnp.einsum('ph,nchw->ncpw', Ah, x)
    up = jnp.einsum('ncpw,qw->ncpq', up, Aw)
    dn = ('NCHW', 'OIHW', 'NCHW')
    conv = lax.conv_general_dilated(up, w3, (1, 1), ((1, 1), (1, 1)),
                                    dimension_numbers=dn)
    conv = conv + b3[None, :, None, None]
    res = lax.conv_general_dilated(up, w1, (1, 1), ((0, 0), (0, 0)),
                                   dimension_numbers=dn)
    res = res + b1[None, :, None, None]
    return conv + res


if __name__ == "__main__":
    key = jax.random.PRNGKey(0)
    k_x, k_w3, k_b3, k_w1, k_b1 = jax.random.split(key, 5)

    N, C_in, C_out, H, W = 2, 4, 6, 16, 16
    x = jax.random.normal(k_x, (N, C_in, H, W), jnp.float32)
    w3 = 0.1 * jax.random.normal(k_w3, (C_out, C_in, 3, 3), jnp.float32)
    b3 = 0.1 * jax.random.normal(k_b3, (C_out,), jnp.float32)
    w1 = 0.1 * jax.random.normal(k_w1, (C_out, C_in, 1, 1), jnp.float32)
    b1 = 0.1 * jax.random.normal(k_b1, (C_out,), jnp.float32)

    out = jax.block_until_ready(upsampler_forward(x, w3, b3, w1, b1))
    ref = jax.block_until_ready(upsampler_reference(x, w3, b3, w1, b1))

    assert out.shape == (N, C_out, 2 * H, 2 * W), out.shape
    assert jnp.allclose(out, ref, atol=1e-4, rtol=1e-4), float(
        jnp.max(jnp.abs(out - ref)))
    print("KERNEL_OK")
</pallas_src>

<mosaic_0001>
module attributes {stable_mosaic.version = 11 : i64} {
  func.func @_upsampler_kernel(%arg0: i32, %arg1: memref<1x64x16xf32, #tpu.memory_space<vmem>>, %arg2: memref<160x64xf32, #tpu.memory_space<vmem>>, %arg3: memref<16x34xf32, #tpu.memory_space<vmem>>, %arg4: memref<6x36xf32, #tpu.memory_space<vmem>>, %arg5: memref<6x1xf32, #tpu.memory_space<vmem>>, %arg6: memref<1x6x1024xf32, #tpu.memory_space<vmem>>, %arg7: memref<4x40x34xf32, #tpu.memory_space<vmem>>, %arg8: memref<36x1024xf32, #tpu.memory_space<vmem>>) attributes {dimension_semantics = [#tpu.dimension_semantics<parallel>], iteration_bounds = array<i64: 2>, scalar_prefetch = 0 : i64, scratch_operands = 2 : i64, tpu.core_type = #tpu.core_type<tc>, window_params = [{transform_indices = @transform_0, window_bounds = array<i64: 1, 64, 16>}, {pipeline_mode = #tpu.pipeline_mode<synchronous>, transform_indices = @transform_1, window_bounds = array<i64: 160, 64>}, {pipeline_mode = #tpu.pipeline_mode<synchronous>, transform_indices = @transform_2, window_bounds = array<i64: 16, 34>}, {pipeline_mode = #tpu.pipeline_mode<synchronous>, transform_indices = @transform_3, window_bounds = array<i64: 6, 36>}, {pipeline_mode = #tpu.pipeline_mode<synchronous>, transform_indices = @transform_4, window_bounds = array<i64: 6, 1>}, {transform_indices = @transform_5, window_bounds = array<i64: 1, 6, 1024>}]} {
    %c0 = arith.constant 0 : index
    %c0_0 = arith.constant 0 : index
    %c0_1 = arith.constant 0 : index
    %0 = vector.load %arg1[%c0, %c0_0, %c0_1] : memref<1x64x16xf32, #tpu.memory_space<vmem>>, vector<1x64x16xf32>
    %1 = vector.shape_cast %0 : vector<1x64x16xf32> to vector<64x16xf32>
    %c0_2 = arith.constant 0 : index
    %c0_3 = arith.constant 0 : index
    %2 = vector.load %arg3[%c0_2, %c0_3] : memref<16x34xf32, #tpu.memory_space<vmem>>, vector<16x34xf32>
    %cst = arith.constant dense<0.000000e+00> : vector<64x34xf32>
    %3 = tpu.matmul %1, %2, %cst {dimension_numbers = #tpu.dot_dimension_numbers<[1], [0], [0], [1], [0, 0, 1, 1], [], []>} : vector<64x16xf32>, vector<16x34xf32>, vector<64x34xf32> -> vector<64x34xf32>
    %c0_4 = arith.constant 0 : index
    %c0_5 = arith.constant 0 : index
    %4 = vector.load %arg2[%c0_4, %c0_5] : memref<160x64xf32, #tpu.memory_space<vmem>>, vector<160x64xf32>
    %cst_6 = arith.constant dense<0.000000e+00> : vector<160x34xf32>
    %5 = tpu.matmul %4, %3, %cst_6 {dimension_numbers = #tpu.dot_dimension_numbers<[1], [0], [0], [1], [0, 0, 1, 1], [], []>} : vector<160x64xf32>, vector<64x34xf32>, vector<160x34xf32> -> vector<160x34xf32>
    %6 = vector.extract_strided_slice %5 {offsets = [0, 0], sizes = [40, 34], strides = [1, 1]} : vector<160x34xf32> to vector<40x34xf32>
    %c0_7 = arith.constant 0 : index
    %c0_8 = arith.constant 0 : index
    %c0_9 = arith.constant 0 : index
    %7 = vector.load %arg7[%c0_7, %c0_8, %c0_9] : memref<4x40x34xf32, #tpu.memory_space<vmem>>, vector<1x40x34xf32>
    %8 = vector.shape_cast %7 : vector<1x40x34xf32> to vector<40x34xf32>
    %9 = vector.shape_cast %6 : vector<40x34xf32> to vector<1x40x34xf32>
    tpu.vector_store %arg7[%c0_7, %c0_8, %c0_9], %9 {strides = array<i32>} : memref<4x40x34xf32, #tpu.memory_space<vmem>>, vector<1x40x34xf32>,
    %10 = vector.extract_strided_slice %5 {offsets = [40, 0], sizes = [40, 34], strides = [1, 1]} : vector<160x34xf32> to vector<40x34xf32>
    %c1 = arith.constant 1 : index
    %c0_10 = arith.constant 0 : index
    %c0_11 = arith.constant 0 : index
    %11 = vector.load %arg7[%c1, %c0_10, %c0_11] : memref<4x40x34xf32, #tpu.memory_space<vmem>>, vector<1x40x34xf32>
    %12 = vector.shape_cast %11 : vector<1x40x34xf32> to vector<40x34xf32>
    %13 = vector.shape_cast %10 : vector<40x34xf32> to vector<1x40x34xf32>
    tpu.vector_store %arg7[%c1, %c0_10, %c0_11], %13 {strides = array<i32>} : memref<4x40x34xf32, #tpu.memory_space<vmem>>, vector<1x40x34xf32>,
    %14 = vector.extract_strided_slice %5 {offsets = [80, 0], sizes = [40, 34], strides = [1, 1]} : vector<160x34xf32> to vector<40x34xf32>
    %c2 = arith.constant 2 : index
    %c0_12 = arith.constant 0 : index
    %c0_13 = arith.constant 0 : index
    %15 = vector.load %arg7[%c2, %c0_12, %c0_13] : memref<4x40x34xf32, #tpu.memory_space<vmem>>, vector<1x40x34xf32>
    %16 = vector.shape_cast %15 : vector<1x40x34xf32> to vector<40x34xf32>
    %17 = vector.shape_cast %14 : vector<40x34xf32> to vector<1x40x34xf32>
    tpu.vector_store %arg7[%c2, %c0_12, %c0_13], %17 {strides = array<i32>} : memref<4x40x34xf32, #tpu.memory_space<vmem>>, vector<1x40x34xf32>,
    %18 = vector.extract_strided_slice %5 {offsets = [120, 0], sizes = [40, 34], strides = [1, 1]} : vector<160x34xf32> to vector<40x34xf32>
    %c3 = arith.constant 3 : index
    %c0_14 = arith.constant 0 : index
    %c0_15 = arith.constant 0 : index
    %19 = vector.load %arg7[%c3, %c0_14, %c0_15] : memref<4x40x34xf32, #tpu.memory_space<vmem>>, vector<1x40x34xf32>
    %20 = vector.shape_cast %19 : vector<1x40x34xf32> to vector<40x34xf32>
    %21 = vector.shape_cast %18 : vector<40x34xf32> to vector<1x40x34xf32>
    tpu.vector_store %arg7[%c3, %c0_14, %c0_15], %21 {strides = array<i32>} : memref<4x40x34xf32, #tpu.memory_space<vmem>>, vector<1x40x34xf32>,
    %c0_16 = arith.constant 0 : index
    %c0_17 = arith.constant 0 : index
    %c0_18 = arith.constant 0 : index
    %22 = vector.load %arg7[%c0_16, %c0_17, %c0_18] : memref<4x40x34xf32, #tpu.memory_space<vmem>>, vector<4x32x32xf32>
    %23 = vector.shape_cast %22 : vector<4x32x32xf32> to vector<4x1024xf32>
    %c0_19 = arith.constant 0 : index
    %c0_20 = arith.constant 0 : index
    %24 = vector.load %arg8[%c0_19, %c0_20] : memref<36x1024xf32, #tpu.memory_space<vmem>>, vector<4x1024xf32>
    tpu.vector_store %arg8[%c0_19, %c0_20], %23 {strides = array<i32>} : memref<36x1024xf32, #tpu.memory_space<vmem>>, vector<4x1024xf32>,
    %c0_21 = arith.constant 0 : index
    %c0_22 = arith.constant 0 : index
    %c1_23 = arith.constant 1 : index
    %25 = vector.load %arg7[%c0_21, %c0_22, %c1_23] : memref<4x40x34xf32, #tpu.memory_space<vmem>>, vector<4x32x32xf32>
    %26 = vector.shape_cast %25 : vector<4x32x32xf32> to vector<4x1024xf32>
    %c4 = arith.constant 4 : index
    %c0_24 = arith.constant 0 : index
    %27 = vector.load %arg8[%c4, %c0_24] : memref<36x1024xf32, #tpu.memory_space<vmem>>, vector<4x1024xf32>
    tpu.vector_store %arg8[%c4, %c0_24], %26 {strides = array<i32>} : memref<36x1024xf32, #tpu.memory_space<vmem>>, vector<4x1024xf32>,
    %c0_25 = arith.constant 0 : index
    %c0_26 = arith.constant 0 : index
    %c2_27 = arith.constant 2 : index
    %28 = vector.load %arg7[%c0_25, %c0_26, %c2_27] : memref<4x40x34xf32, #tpu.memory_space<vmem>>, vector<4x32x32xf32>
    %29 = vector.shape_cast %28 : vector<4x32x32xf32> to vector<4x1024xf32>
    %c8 = arith.constant 8 : index
    %c0_28 = arith.constant 0 : index
    %30 = vector.load %arg8[%c8, %c0_28] : memref<36x1024xf32, #tpu.memory_space<vmem>>, vector<4x1024xf32>
    tpu.vector_store %arg8[%c8, %c0_28], %29 {strides = array<i32>} : memref<36x1024xf32, #tpu.memory_space<vmem>>, vector<4x1024xf32>,
    %c0_29 = arith.constant 0 : index
    %c1_30 = arith.constant 1 : index
    %c0_31 = arith.constant 0 : index
    %31 = vector.load %arg7[%c0_29, %c1_30, %c0_31] : memref<4x40x34xf32, #tpu.memory_space<vmem>>, vector<4x32x32xf32>
    %32 = vector.shape_cast %31 : vector<4x32x32xf32> to vector<4x1024xf32>
    %c12 = arith.constant 12 : index
    %c0_32 = arith.constant 0 : index
    %33 = vector.load %arg8[%c12, %c0_32] : memref<36x1024xf32, #tpu.memory_space<vmem>>, vector<4x1024xf32>
    tpu.vector_store %arg8[%c12, %c0_32], %32 {strides = array<i32>} : memref<36x1024xf32, #tpu.memory_space<vmem>>, vector<4x1024xf32>,
    %c0_33 = arith.constant 0 : index
    %c1_34 = arith.constant 1 : index
    %c1_35 = arith.constant 1 : index
    %34 = vector.load %arg7[%c0_33, %c1_34, %c1_35] : memref<4x40x34xf32, #tpu.memory_space<vmem>>, vector<4x32x32xf32>
    %35 = vector.shape_cast %34 : vector<4x32x32xf32> to vector<4x1024xf32>
    %c16 = arith.constant 16 : index
    %c0_36 = arith.constant 0 : index
    %36 = vector.load %arg8[%c16, %c0_36] : memref<36x1024xf32, #tpu.memory_space<vmem>>, vector<4x1024xf32>
    tpu.vector_store %arg8[%c16, %c0_36], %35 {strides = array<i32>} : memref<36x1024xf32, #tpu.memory_space<vmem>>, vector<4x1024xf32>,
    %c0_37 = arith.constant 0 : index
    %c1_38 = arith.constant 1 : index
    %c2_39 = arith.constant 2 : index
    %37 = vector.load %arg7[%c0_37, %c1_38, %c2_39] : memref<4x40x34xf32, #tpu.memory_space<vmem>>, vector<4x32x32xf32>
    %38 = vector.shape_cast %37 : vector<4x32x32xf32> to vector<4x1024xf32>
    %c20 = arith.constant 20 : index
    %c0_40 = arith.constant 0 : index
    %39 = vector.load %arg8[%c20, %c0_40] : memref<36x1024xf32, #tpu.memory_space<vmem>>, vector<4x1024xf32>
    tpu.vector_store %arg8[%c20, %c0_40], %38 {strides = array<i32>} : memref<36x1024xf32, #tpu.memory_space<vmem>>, vector<4x1024xf32>,
    %c0_41 = arith.constant 0 : index
    %c2_42 = arith.constant 2 : index
    %c0_43 = arith.constant 0 : index
    %40 = vector.load %arg7[%c0_41, %c2_42, %c0_43] : memref<4x40x34xf32, #tpu.memory_space<vmem>>, vector<4x32x32xf32>
    %41 = vector.shape_cast %40 : vector<4x32x32xf32> to vector<4x1024xf32>
    %c24 = arith.constant 24 : index
    %c0_44 = arith.constant 0 : index
    %42 = vector.load %arg8[%c24, %c0_44] : memref<36x1024xf32, #tpu.memory_space<vmem>>, vector<4x1024xf32>
    tpu.vector_store %arg8[%c24, %c0_44], %41 {strides = array<i32>} : memref<36x1024xf32, #tpu.memory_space<vmem>>, vector<4x1024xf32>,
    %c0_45 = arith.constant 0 : index
    %c2_46 = arith.constant 2 : index
    %c1_47 = arith.constant 1 : index
    %43 = vector.load %arg7[%c0_45, %c2_46, %c1_47] : memref<4x40x34xf32, #tpu.memory_space<vmem>>, vector<4x32x32xf32>
    %44 = vector.shape_cast %43 : vector<4x32x32xf32> to vector<4x1024xf32>
    %c28 = arith.constant 28 : index
    %c0_48 = arith.constant 0 : index
    %45 = vector.load %arg8[%c28, %c0_48] : memref<36x1024xf32, #tpu.memory_space<vmem>>, vector<4x1024xf32>
    tpu.vector_store %arg8[%c28, %c0_48], %44 {strides = array<i32>} : memref<36x1024xf32, #tpu.memory_space<vmem>>, vector<4x1024xf32>,
    %c0_49 = arith.constant 0 : index
    %c2_50 = arith.constant 2 : index
    %c2_51 = arith.constant 2 : index
    %46 = vector.load %arg7[%c0_49, %c2_50, %c2_51] : memref<4x40x34xf32, #tpu.memory_space<vmem>>, vector<4x32x32xf32>
    %47 = vector.shape_cast %46 : vector<4x32x32xf32> to vector<4x1024xf32>
    %c32 = arith.constant 32 : index
    %c0_52 = arith.constant 0 : index
    %48 = vector.load %arg8[%c32, %c0_52] : memref<36x1024xf32, #tpu.memory_space<vmem>>, vector<4x1024xf32>
    tpu.vector_store %arg8[%c32, %c0_52], %47 {strides = array<i32>} : memref<36x1024xf32, #tpu.memory_space<vmem>>, vector<4x1024xf32>,
    %c0_53 = arith.constant 0 : index
    %c0_54 = arith.constant 0 : index
    %49 = vector.load %arg4[%c0_53, %c0_54] : memref<6x36xf32, #tpu.memory_space<vmem>>, vector<6x36xf32>
    %c0_55 = arith.constant 0 : index
    %c0_56 = arith.constant 0 : index
    %50 = vector.load %arg8[%c0_55, %c0_56] : memref<36x1024xf32, #tpu.memory_space<vmem>>, vector<36x1024xf32>
    %cst_57 = arith.constant dense<0.000000e+00> : vector<6x1024xf32>
    %51 = tpu.matmul %49, %50, %cst_57 {dimension_numbers = #tpu.dot_dimension_numbers<[1], [0], [0], [1], [0, 0, 1, 1], [], []>} : vector<6x36xf32>, vector<36x1024xf32>, vector<6x1024xf32> -> vector<6x1024xf32>
    %c0_58 = arith.constant 0 : index
    %c0_59 = arith.constant 0 : index
    %52 = vector.load %arg5[%c0_58, %c0_59] : memref<6x1xf32, #tpu.memory_space<vmem>>, vector<6x1xf32>
    %53 = vector.broadcast %52 : vector<6x1xf32> to vector<6x1024xf32>
    %54 = arith.addf %51, %53 : vector<6x1024xf32>
    %c0_60 = arith.constant 0 : index
    %c0_61 = arith.constant 0 : index
    %c0_62 = arith.constant 0 : index
    %55 = vector.load %arg6[%c0_60, %c0_61, %c0_62] : memref<1x6x1024xf32, #tpu.memory_space<vmem>>, vector<1x6x1024xf32>
    %56 = vector.shape_cast %55 : vector<1x6x1024xf32> to vector<6x1024xf32>
    %57 = vector.shape_cast %54 : vector<6x1024xf32> to vector<1x6x1024xf32>
    tpu.vector_store %arg6[%c0_60, %c0_61, %c0_62], %57 {strides = array<i32>} : memref<1x6x1024xf32, #tpu.memory_space<vmem>>, vector<1x6x1024xf32>,
    return
  }
  func.func @transform_0(%arg0: i32) -> (i32, i32, i32) {
    %c0_i32 = arith.constant 0 : i32
    %c0_i32_0 = arith.constant 0 : i32
    %c0_i32_1 = arith.constant 0 : i32
    return %arg0, %c0_i32, %c0_i32_0 : i32, i32, i32
  }
  func.func @transform_1(%arg0: i32) -> (i32, i32) {
    %c0_i32 = arith.constant 0 : i32
    %c0_i32_0 = arith.constant 0 : i32
    %c0_i32_1 = arith.constant 0 : i32
    return %c0_i32, %c0_i32_0 : i32, i32
  }
  func.func @transform_2(%arg0: i32) -> (i32, i32) {
    %c0_i32 = arith.constant 0 : i32
    %c0_i32_0 = arith.constant 0 : i32
    %c0_i32_1 = arith.constant 0 : i32
    return %c0_i32, %c0_i32_0 : i32, i32
  }
  func.func @transform_3(%arg0: i32) -> (i32, i32) {
    %c0_i32 = arith.constant 0 : i32
    %c0_i32_0 = arith.constant 0 : i32
    %c0_i32_1 = arith.constant 0 : i32
    return %c0_i32, %c0_i32_0 : i32, i32
  }
  func.func @transform_4(%arg0: i32) -> (i32, i32) {
    %c0_i32 = arith.constant 0 : i32
    %c0_i32_0 = arith.constant 0 : i32
    %c0_i32_1 = arith.constant 0 : i32
    return %c0_i32, %c0_i32_0 : i32, i32
  }
  func.func @transform_5(%arg0: i32) -> (i32, i32, i32) {
    %c0_i32 = arith.constant 0 : i32
    %c0_i32_0 = arith.constant 0 : i32
    %c0_i32_1 = arith.constant 0 : i32
    return %arg0, %c0_i32, %c0_i32_0 : i32, i32, i32
  }
}

</mosaic_0001>

<bundles_post_ra>
// kernel: tpu_custom_call.1
= control target key start
LH: loop header
LB: loop body
LE: loop exit
PB: predicated region body
PF: predicated region fallthrough
CT: control target
= control target key end

     0   :  { %s5594_s18 = smov 0   ;;  %s8611_s0 = inlined_call_operand.vmem [shape: f32[2,64,16], index: 0, kind: input, shape index: {}]   ;;  %s8612_s1 = inlined_call_operand.vmem [shape: f32[160,64], index: 1, kind: input, shape index: {}]   ;;  %s8613_s2 = inlined_call_operand.vmem [shape: f32[16,34], index: 2, kind: input, shape index: {}]   ;;  %s8614_s3 = inlined_call_operand.vmem [shape: f32[6,36], index: 3, kind: input, shape index: {}]   ;;  %s8615_s4 = inlined_call_operand.vmem [shape: f32[6,1], index: 4, kind: input, shape index: {}]   ;;  %s8616_s5 = inlined_call_operand.vmem [shape: f32[2,6,1024], index: 5, kind: output, shape index: {}]  }
   0x1 LB: > { %s5284_s19 = sadd.s32 4294967295, %s5553_s18   ;;  %p5288_p0 = scmp.ge.s32.totalorder %s5553_s18, 1  ;;  %s5553_s18 = sphi %s5594_s18, %s15_s18  }
   0x2   : > { %p187_p1 = scmp.lt.s32.totalorder %s5553_s18, 3 }
   0x4   : > { %p188_p2 = pnand %p5288_p0, %p187_p1 }
   0x6   : > { %191 = sbr.rel (%p188_p2) target bundleno = 1434 (0x59a), region = 40 }
   0xd   : > { %v233_v0 = vld [vmem:[%s8613_s2] sm:$0xff]  ;;  %v234_v1 = vld [vmem:[%s8613_s2 + $0x8] sm:$0xff]  ;;  %p215_p3 = scmp.lt.s32.totalorder %s5284_s19, 1  ;;  %vm235_vm0 = vcmask 130048   ;;  %vm385_vm1 = vcmask 523264   ;;  %v367_v25 = vld [vmem:[%s8612_s1 + $0x10] sm:$0xff] }
   0xe   : > { %v5437_v2 = vpack.c.bf16 %v234_v1, %v233_v0  ;;  %v365_v11 = vld [vmem:[%s8612_s1] sm:$0xff]  ;;  %v366_v24 = vld [vmem:[%s8612_s1 + $0x8] sm:$0xff]  ;;  %v368_v26 = vld [vmem:[%s8612_s1 + $0x18] sm:$0xff]  ;;  %v8617_v43 = vmov 0.0   ;;  %vm611_vm2 = vcmask 277504   ;;  %s5556_s23 = smov 127  }
   0xf   : > { %s9205_s19 = smov (!%p215_p3, %s5284_s19), 1  ;;  %5407 = vmatprep.mubr.msk.f32.mxu1 %vm385_vm1, %v365_v11  ;;  %v369_v27 = vld [vmem:[%s8612_s1 + $0x20] sm:$0xff]  ;;  %v370_v28 = vld [vmem:[%s8612_s1 + $0x28] sm:$0xff]  ;;  %v371_v29 = vld [vmem:[%s8612_s1 + $0x30] sm:$0xff]  ;;  %s5557_s25 = smov 126   ;;  %vm1019_vm3 = vcmask 261120  }
  0x10   : > { %5438 = vmatprep.subr.bf16.mxu0 %v5437_v2  ;;  %s5335_s24 = sshll.u32 %s9205_s19, 6  ;;  %v372_v30 = vld [vmem:[%s8612_s1 + $0x38] sm:$0xff]  ;;  %v373_v31 = vld [vmem:[%s8612_s1 + $0x40] sm:$0xff]  ;;  %v374_v32 = vld [vmem:[%s8612_s1 + $0x48] sm:$0xff]  ;;  %v5558_v0 = vmov 1983009808  }
  0x11   : > { %5440 = vmatpush3.bf16.msra.mxu0 %v5437_v2  ;;  %s219_s27 = scalar_lea.vmem %s8611_s0, %s5335_s24  ;;  %v375_v33 = vld [vmem:[%s8612_s1 + $0x50] sm:$0xff]  ;;  %v376_v34 = vld [vmem:[%s8612_s1 + $0x58] sm:$0xff]  ;;  %v377_v35 = vld [vmem:[%s8612_s1 + $0x60] sm:$0xff]  ;;  %v654_v1 = vunpack.c.l.s4 %v5558_v0  ;;  %v656_v2 = vlaneseq  ;;  %s5560_s26 = smov 96   ;;  %vm1022_vm4 = vcmask 785408   ;;  %vm4912_vm5 = vcmask 1043456  }
  0x12   : > { %v225_v3 = vld [vmem:[%s219_s27] sm:$0xff]  ;;  %v226_v4 = vld [vmem:[%s219_s27 + $0x8] sm:$0xff]  ;;  %v227_v5 = vld [vmem:[%s219_s27 + $0x10] sm:$0xff]  ;;  %s5562_s28 = smov 32   ;;  %vm4908_vm6 = vcmask 293888   ;;  %s224_s10 = scalar_lea.vmem %s8616_s5, %s5335_s24 }
  0x13   : > { %5379 = vmatprep.mubr.msk.f32.mxu0 %vm235_vm0, %v225_v3  ;;  %v228_v6 = vld [vmem:[%s219_s27 + $0x18] sm:$0xff]  ;;  %v229_v7 = vld [vmem:[%s219_s27 + $0x20] sm:$0xff]  ;;  %v230_v8 = vld [vmem:[%s219_s27 + $0x28] sm:$0xff] }
  0x14   : > { %5380 = vmatmul.mubr.msk.f32.vlgmr.msra.gmra.mrb[0].mxu0 %vm235_vm0, %v226_v4  ;;  %v231_v9 = vld [vmem:[%s219_s27 + $0x30] sm:$0xff]  ;;  %v232_v10 = vld [vmem:[%s219_s27 + $0x38] sm:$0xff]  ;;  %v378_v36 = vld [vmem:[%s8612_s1 + $0x68] sm:$0xff]  ;;  %s5561_s27 = smov 64  }
  0x15   : > { %5382 = vmatprep.mubr.msk.f32.mxu0 %vm235_vm0, %v227_v5  ;;  %v379_v37 = vld [vmem:[%s8612_s1 + $0x70] sm:$0xff]  ;;  %v380_v38 = vld [vmem:[%s8612_s1 + $0x78] sm:$0xff]  ;;  %v381_v39 = vld [vmem:[%s8612_s1 + $0x80] sm:$0xff]  ;;  %v655_v5 = vunpack.c.0.s8 %v654_v1 }
  0x16   : > { %v382_v40 = vld [vmem:[%s8612_s1 + $0x88] sm:$0xff]  ;;  %v383_v41 = vld [vmem:[%s8612_s1 + $0x90] sm:$0xff]  ;;  %v384_v42 = vld [vmem:[%s8612_s1 + $0x98] sm:$0xff] }
  0x18   : > { %5383 = vmatmul.mubr.msk.f32.gmra.mrb[2].mxu0 %vm235_vm0, %v228_v6  ;;  %v5753_v6 = vshrl.u32 %v656_v2, 7 }
  0x19   : > { %5385 = vmatprep.mubr.msk.f32.mxu0 %vm235_vm0, %v229_v7 }
  0x1c   : > { %5386 = vmatmul.mubr.msk.f32.gmra.mrb[4].mxu0 %vm235_vm0, %v230_v8 }
  0x1d   : > { %5388 = vmatprep.mubr.msk.f32.mxu0 %vm235_vm0, %v231_v9 }
  0x20   : > { %5389 = vmatmul.mubr.msk.f32.gmra.mrb[6].mxu0 %vm235_vm0, %v232_v10 }
  0x21   : > { %5001 = vmatprep.mubr.f32.mxu0 %v8617_v43 }
  0xe7   : > { %v5381_v12 = vpop.f32.mrb[0].mxu0 }
  0xe8   : > { %v326_v13 = vpop.f32.mrb[1].mxu0 }
  0xe9   : > { %v5441_v14 = vpack.c.bf16 %v5381_v12, %v326_v13 }
  0xeb   : > { %v5384_v15 = vpop.f32.mrb[2].mxu0  ;;  %5442 = vmatprep.subr.bf16.mxu1 %v5441_v14 }
  0xec   : > { %v336_v16 = vpop.f32.mrb[3].mxu0  ;;  %5444 = vmatpush3.bf16.msra.mxu1 %v5441_v14 }
  0xed   : > { %v5445_v17 = vpack.c.bf16 %v5384_v15, %v336_v16  ;;  %v5771_v15 = vsub.s32 %v655_v5, %v5753_v6 }
  0xef   : > { %v5387_v18 = vpop.f32.mrb[4].mxu0  ;;  %5446 = vmatprep.subr.bf16.mxu1 %v5445_v17  ;;  %8798 = vst [vmem:[#allocation4_spill] sm:$0xff] %v5771_v15 }
  0xf0   : > { %v346_v19 = vpop.f32.mrb[5].mxu0  ;;  %5448 = vmatpush3.bf16.msra.mxu1 %v5445_v17 }
  0xf1   : > { %v5449_v20 = vpack.c.bf16 %v5387_v18, %v346_v19 }
  0xf3   : > { %v5390_v21 = vpop.f32.mrb[6].mxu0  ;;  %5450 = vmatprep.subr.bf16.mxu1 %v5449_v20 }
  0xf4   : > { %v356_v22 = vpop.f32.mrb[7].mxu0  ;;  %5452 = vmatpush3.bf16.msra.mxu1 %v5449_v20 }
  0xf5   : > { %v5453_v23 = vpack.c.bf16 %v5390_v21, %v356_v22 }
  0xf7   : > { %5454 = vmatprep.subr.bf16.mxu1 %v5453_v23 }
  0xf8   : > { %5456 = vmatpush3.bf16.msra.mxu1 %v5453_v23 }
  0xfb   : > { %5408 = vmatmul.mubr.msk.f32.vlgmr.msra.gmra.mrb[0].mxu1 %vm385_vm1, %v366_v24 }
  0xfc   : > { %5410 = vmatprep.mubr.msk.f32.mxu1 %vm385_vm1, %v367_v25 }
  0xff   : > { %5411 = vmatmul.mubr.msk.f32.gmra.mrb[2].mxu1 %vm385_vm1, %v368_v26 }
 0x100   : > { %5413 = vmatprep.mubr.msk.f32.mxu1 %vm385_vm1, %v369_v27 }
 0x103   : > { %5414 = vmatmul.mubr.msk.f32.gmra.mrb[4].mxu1 %vm385_vm1, %v370_v28 }
 0x104   : > { %5416 = vmatprep.mubr.msk.f32.mxu1 %vm385_vm1, %v371_v29 }
 0x107   : > { %5417 = vmatmul.mubr.msk.f32.gmra.mrb[6].mxu1 %vm385_vm1, %v372_v30 }
 0x108   : > { %5419 = vmatprep.mubr.msk.f32.mxu1 %vm385_vm1, %v373_v31 }
 0x10b   : > { %5420 = vmatmul.mubr.msk.f32.gmra.mrb[8].mxu1 %vm385_vm1, %v374_v32 }
 0x10c   : > { %5422 = vmatprep.mubr.msk.f32.mxu1 %vm385_vm1, %v375_v33 }
 0x10f   : > { %5423 = vmatmul.mubr.msk.f32.gmra.mrb[10].mxu1 %vm385_vm1, %v376_v34 }
 0x110   : > { %5425 = vmatprep.mubr.msk.f32.mxu1 %vm385_vm1, %v377_v35 }
 0x113   : > { %5426 = vmatmul.mubr.msk.f32.gmra.mrb[12].mxu1 %vm385_vm1, %v378_v36 }
 0x114   : > { %5428 = vmatprep.mubr.msk.f32.mxu1 %vm385_vm1, %v379_v37 }
 0x117   : > { %5429 = vmatmul.mubr.msk.f32.gmra.mrb[14].mxu1 %vm385_vm1, %v380_v38 }
 0x118   : > { %5431 = vmatprep.mubr.msk.f32.mxu1 %vm385_vm1, %v381_v39 }
 0x11b   : > { %5432 = vmatmul.mubr.msk.f32.gmra.mrb[16].mxu1 %vm385_vm1, %v382_v40 }
 0x11c   : > { %5434 = vmatprep.mubr.msk.f32.mxu1 %vm385_vm1, %v383_v41 }
 0x11f   : > { %5435 = vmatmul.mubr.msk.f32.gmra.mrb[18].mxu1 %vm385_vm1, %v384_v42 }
 0x1ce   : > { %v5409_v44 = vpop.f32.mrb[0].mxu1 }
 0x1cf   : > { %613 = vst.msk [vmem:[#allocation2 + $0x8] sm:$0xff] %vm611_vm2, %v5409_v44  ;;  %v512_v45 = vpop.f32.mrb[1].mxu1 }
 0x1d0   : > { %612 = vst.msk [vmem:[#allocation2] sm:$0xff] %vm611_vm2, %v512_v45 }
 0x1d2   : > { %v5412_v46 = vpop.f32.mrb[2].mxu1 }
 0x1d3   : > { %615 = vst.msk [vmem:[#allocation2 + $0x18] sm:$0xff] %vm611_vm2, %v5412_v46  ;;  %v522_v47 = vpop.f32.mrb[3].mxu1 }
 0x1d4   : > { %614 = vst.msk [vmem:[#allocation2 + $0x10] sm:$0xff] %vm611_vm2, %v522_v47 }
 0x1d6   : > { %v5415_v48 = vpop.f32.mrb[4].mxu1  ;;  %v5709_v49 = vld [vmem:[#allocation2 + $0x8] sm:$0xff] }
 0x1d7   : > { %618 = vst.msk [vmem:[#allocation2 + $0x28] sm:$0xff] %vm611_vm2, %v5415_v48  ;;  %1087 = vrot.lane.b32.xlu1 %v5709_v49, %s5556_s23  ;;  %v532_v50 = vpop.f32.mrb[5].mxu1  ;;  %v5714_v51 = vld [vmem:[#allocation2] sm:$0xff] }
 0x1d8   : > { %616 = vst.msk [vmem:[#allocation2 + $0x20] sm:$0xff] %vm611_vm2, %v532_v50  ;;  %1085 = vrot.lane.b32.xlu0 %v5714_v51, %s5556_s23  ;;  %v5727_v57 = vld [vmem:[#allocation2 + $0x1] sm:$0xff] }
 0x1d9   : > { %v5734_v60 = vld [vmem:[#allocation2 + $0x2] sm:$0xff] }
 0x1da   : > { %v5418_v52 = vpop.f32.mrb[6].mxu1  ;;  %v1056_v54 = vld [vmem:[#allocation2 + $0x18] sm:$0xff] }
 0x1db   : > { %620 = vst.msk [vmem:[#allocation2 + $0x38] sm:$0xff] %vm611_vm2, %v5418_v52  ;;  %1591 = vrot.lane.b32.xlu1 %v5709_v49, %s5557_s25  ;;  %v542_v53 = vpop.f32.mrb[7].mxu1  ;;  %v1055_v11 = vld [vmem:[#allocation2 + $0x10] sm:$0xff] }
 0x1dc   : > { %619 = vst.msk [vmem:[#allocation2 + $0x30] sm:$0xff] %vm611_vm2, %v542_v53  ;;  %1589 = vrot.lane.b32.xlu0 %v5714_v51, %s5557_s25  ;;  %v2958_v39 = vld [vmem:[#allocation2 + $0x9] sm:$0xff] }
 0x1de   : > { %v5421_v55 = vpop.f32.mrb[8].mxu1  ;;  %v5775_v17 = vld [vmem:[#allocation2 + $0x28] sm:$0xff] }
 0x1df   : > { %622 = vst.msk [vmem:[#allocation2 + $0x48] sm:$0xff] %vm611_vm2, %v5421_v55  ;;  %1091 = vrot.lane.b32.xlu1 %v1056_v54, %s5556_s23  ;;  %v552_v56 = vpop.f32.mrb[9].mxu1 }
 0x1e0   : > { %621 = vst.msk [vmem:[#allocation2 + $0x40] sm:$0xff] %vm611_vm2, %v552_v56  ;;  %2989 = vrot.lane.b32.xlu0 %v5727_v57, %s5557_s25 }
 0x1e2   : > { %v5424_v58 = vpop.f32.mrb[10].mxu1  ;;  %v5826_v40 = vld [vmem:[#allocation2 + $0x38] sm:$0xff] }
 0x1e3   : > { %625 = vst.msk [vmem:[#allocation2 + $0x58] sm:$0xff] %vm611_vm2, %v5424_v58  ;;  %1595 = vrot.lane.b32.xlu1 %v1056_v54, %s5557_s25  ;;  %v562_v59 = vpop.f32.mrb[11].mxu1  ;;  %v5739_v61 = vld [vmem:[#allocation2 + $0x30] sm:$0xff] }
 0x1e4   : > { %624 = vst.msk [vmem:[#allocation2 + $0x50] sm:$0xff] %vm611_vm2, %v562_v59  ;;  %3909 = vrot.lane.b32.xlu0 %v5734_v60, %s5556_s23  ;;  %v5757_v9 = vld [vmem:[#allocation2 + $0x29] sm:$0xff]  ;;  %v2962_v2 = vld [vmem:[#allocation2 + $0x31] sm:$0xff] }
 0x1e5   : > { %v5773_v16 = vld [vmem:[#allocation2 + $0x2a] sm:$0xff] }
 0x1e6   : > { %v5427_v62 = vpop.f32.mrb[12].mxu1 }
 0x1e7   : > { %627 = vst.msk [vmem:[#allocation2 + $0x68] sm:$0xff] %vm611_vm2, %v5427_v62  ;;  %1095 = vrot.lane.b32.xlu1 %v5739_v61, %s5556_s23  ;;  %v572_v63 = vpop.f32.mrb[13].mxu1 }
 0x1e8   : > { %626 = vst.msk [vmem:[#allocation2 + $0x60] sm:$0xff] %vm611_vm2, %v572_v63  ;;  %2509 = vrot.lane.b32.xlu0 %v5727_v57, %s5556_s23  ;;  %v3878_v63 = vld [vmem:[#allocation2 + $0xa] sm:$0xff] }
 0x1ea   : > { %v5430_v3 = vpop.f32.mrb[14].mxu1  ;;  %v5762_v12 = vld [vmem:[#allocation2 + $0x58] sm:$0xff] }
 0x1eb   : > { %630 = vst.msk [vmem:[#allocation2 + $0x78] sm:$0xff] %vm611_vm2, %v5430_v3  ;;  %1599 = vrot.lane.b32.xlu1 %v5739_v61, %s5557_s25  ;;  %v582_v4 = vpop.f32.mrb[15].mxu1  ;;  %v5755_v7 = vld [vmem:[#allocation2 + $0x50] sm:$0xff]  ;;  %v719_v21 = vcombine.low %v5709_v49, %v5762_v12  ;;  %v720_v22 = vcombine.high %v5709_v49, %v5762_v12 }
 0x1ec   : > { %628 = vst.msk [vmem:[#allocation2 + $0x70] sm:$0xff] %vm611_vm2, %v582_v4  ;;  %4413 = vrot.lane.b32.xlu0 %v5734_v60, %s5557_s25  ;;  %v651_v13 = vcombine.low %v5714_v51, %v5755_v7  ;;  %v652_v14 = vcombine.high %v5714_v51, %v5755_v7  ;;  %v5788_v24 = vld [vmem:[#allocation2 + $0x51] sm:$0xff] }
 0x1ed   : > { %v5815_v35 = vrot.slane %v719_v21, %v5771_v15  ;;  %v5818_v36 = vrot.slane %v720_v22, %v5771_v15  ;;  %v2053_v37 = vcombine.low %v5727_v57, %v5788_v24  ;;  %v2054_v38 = vcombine.high %v5727_v57, %v5788_v24  ;;  %v5839_v47 = vld [vmem:[#allocation2 + $0x52] sm:$0xff] }
 0x1ee   : > { %v5433_v8 = vpop.f32.mrb[16].mxu1  ;;  %v5797_v27 = vrot.slane %v651_v13, %v5771_v15  ;;  %v5800_v28 = vrot.slane %v652_v14, %v5771_v15  ;;  %v3478_v0 = vcombine.high %v5734_v60, %v5839_v47  ;;  %v3477_v1 = vcombine.low %v5734_v60, %v5839_v47 }
 0x1ef   : > { %632 = vst.msk [vmem:[#allocation2 + $0x88] sm:$0xff] %vm611_vm2, %v5433_v8  ;;  %2997 = vrot.lane.b32.xlu1 %v5757_v9, %s5557_s25  ;;  %v592_v10 = vpop.f32.mrb[17].mxu1  ;;  %v5777_v19 = vld [vmem:[#allocation2 + $0x60] sm:$0xff]  ;;  %v5900_v21 = vrot.slane %v2054_v38, %v5771_v15 }
 0x1f0   : > { %631 = vst.msk [vmem:[#allocation2 + $0x80] sm:$0xff] %vm611_vm2, %v592_v10  ;;  %1089 = vrot.lane.b32.xlu0 %v1055_v11, %s5556_s23  ;;  %v787_v31 = vcombine.low %v1055_v11, %v5777_v19  ;;  %v788_v32 = vcombine.high %v1055_v11, %v5777_v19  ;;  %v5810_v33 = vld [vmem:[#allocation2 + $0x59] sm:$0xff]  ;;  %v5927_v38 = vrot.slane %v3478_v0, %v5771_v15 }
 0x1f1   : > { %v2121_v54 = vcombine.low %v2958_v39, %v5810_v33  ;;  %v2122_v55 = vcombine.high %v2958_v39, %v5810_v33 }
 0x1f2   : > { %v5436_v18 = vpop.f32.mrb[18].mxu1  ;;  %v5779_v20 = vld [vmem:[#allocation2 + $0x78] sm:$0xff]  ;;  %v5850_v52 = vrot.slane %v787_v31, %v5771_v15  ;;  %v5853_v53 = vrot.slane %v788_v32, %v5771_v15 }
 0x1f3   : > { %634 = vst.msk [vmem:[#allocation2 + $0x98] sm:$0xff] %vm611_vm2, %v5436_v18  ;;  %3917 = vrot.lane.b32.xlu1 %v5773_v16, %s5556_s23  ;;  %v602_v23 = vpop.f32.mrb[19].mxu1  ;;  %v667_v25 = vcombine.low %v5775_v17, %v5779_v20  ;;  %v668_v26 = vcombine.high %v5775_v17, %v5779_v20  ;;  %v5897_v18 = vrot.slane %v2053_v37, %v5771_v15  ;;  %v5922_v32 = vld [vmem:[#allocation2 + $0x5a] sm:$0xff]  ;;  %v2968_v42 = vld [vmem:[#allocation2 + $0x69] sm:$0xff] }
 0x1f4   : > { %633 = vst.msk [vmem:[#allocation2 + $0x90] sm:$0xff] %vm611_vm2, %v602_v23  ;;  %1593 = vrot.lane.b32.xlu0 %v1055_v11, %s5557_s25  ;;  %v5903_v22 = vrot.slane %v2121_v54, %v5771_v15  ;;  %v5906_v23 = vrot.slane %v2122_v55, %v5771_v15  ;;  %v3882_v55 = vld [vmem:[#allocation2 + $0x32] sm:$0xff]  ;;  %v3545_v54 = vcombine.low %v3878_v63, %v5922_v32 }
 0x1f5   : > { %v5803_v29 = vrot.slane %v667_v25, %v5771_v15  ;;  %v5806_v30 = vrot.slane %v668_v26, %v5771_v15 }
 0x1f6   : > { %v5812_v34 = vld [vmem:[#allocation2 + $0x88] sm:$0xff] }
 0x1f7   : > { %2517 = vrot.lane.b32.xlu1 %v5757_v9, %s5556_s23  ;;  %v5828_v41 = vld [vmem:[#allocation2 + $0x80] sm:$0xff]  ;;  %v803_v48 = vcombine.low %v5826_v40, %v5812_v34  ;;  %v804_v49 = vcombine.high %v5826_v40, %v5812_v34 }
 0x1f8   : > { %2991 = vrot.lane.b32.xlu0 %v2958_v39, %s5557_s25  ;;  %v735_v50 = vcombine.low %v5739_v61, %v5828_v41  ;;  %v736_v51 = vcombine.high %v5739_v61, %v5828_v41  ;;  %v5857_v56 = vld [vmem:[#allocation2 + $0x79] sm:$0xff]  ;;  %v5859_v57 = vld [vmem:[#allocation2 + $0x81] sm:$0xff] }
 0x1f9   : > { %v5862_v58 = vrot.slane %v803_v48, %v5771_v15  ;;  %v5865_v59 = vrot.slane %v804_v49, %v5771_v15  ;;  %v5888_v10 = vld [vmem:[#allocation2 + $0x7a] sm:$0xff]  ;;  %v2069_v60 = vcombine.low %v5757_v9, %v5857_v56  ;;  %v2070_v11 = vcombine.high %v5757_v9, %v5857_v56  ;;  %v5941_v0 = vld [vmem:[#allocation2 + $0x82] sm:$0xff] }
 0x1fa   : > { %v5868_v61 = vrot.slane %v735_v50, %v5771_v15  ;;  %v5871_v62 = vrot.slane %v736_v51, %v5771_v15  ;;  %v2137_v13 = vcombine.low %v2962_v2, %v5859_v57  ;;  %v2138_v14 = vcombine.high %v2962_v2, %v5859_v57  ;;  %v1060_v51 = vld [vmem:[#allocation2 + $0x40] sm:$0xff] }
 0x1fb   : > { %4421 = vrot.lane.b32.xlu1 %v5773_v16, %s5557_s25  ;;  %v5910_v9 = vrot.slane %v2069_v60, %v5771_v15  ;;  %v5913_v25 = vrot.slane %v2070_v11, %v5771_v15  ;;  %v3494_v48 = vcombine.high %v5773_v16, %v5888_v10  ;;  %v3493_v49 = vcombine.low %v5773_v16, %v5888_v10  ;;  %v6120_v5 = vld [vmem:[#allocation2 + $0x90] sm:$0xff] }
 0x1fc   : > { %3911 = vrot.lane.b32.xlu0 %v3878_v63, %s5556_s23  ;;  %v5916_v26 = vrot.slane %v2137_v13, %v5771_v15  ;;  %v5919_v31 = vrot.slane %v2138_v14, %v5771_v15  ;;  %v5947_v16 = vrot.slane %v3477_v1, %v5771_v15  ;;  %v3546_v14 = vcombine.high %v3878_v63, %v5922_v32  ;;  %v2963_v13 = vld [vmem:[#allocation2 + $0x39] sm:$0xff]  ;;  %v2971_v46 = vld [vmem:[#allocation2 + $0x89] sm:$0xff] }
 0x1fd   : > { %v5944_v60 = vrot.slane %v3494_v48, %v5771_v15  ;;  %v5950_v11 = vrot.slane %v3493_v49, %v5771_v15  ;;  %v3562_v49 = vcombine.high %v3882_v55, %v5941_v0  ;;  %v3561_v37 = vcombine.low %v3882_v55, %v5941_v0  ;;  %v6143_v44 = vld [vmem:[#allocation2 + $0x8a] sm:$0xff] }
 0x1fe   : > { %v5976_v1 = vrot.slane %v3545_v54, %v5771_v15  ;;  %v3879_v54 = vld [vmem:[#allocation2 + $0x12] sm:$0xff] }
 0x1ff   : > { %2999 = vrot.lane.b32.xlu1 %v2962_v2, %s5557_s25  ;;  %v5973_v48 = vrot.slane %v3562_v49, %v5771_v15  ;;  %v5979_v50 = vrot.slane %v3561_v37, %v5771_v15  ;;  %v2967_v49 = vld [vmem:[#allocation2 + $0x61] sm:$0xff] }
 0x200   : > { %2511 = vrot.lane.b32.xlu0 %v2958_v39, %s5556_s23  ;;  %v2959_v39 = vld [vmem:[#allocation2 + $0x11] sm:$0xff]  ;;  %v3887_v37 = vld [vmem:[#allocation2 + $0x62] sm:$0xff] }
 0x203   : > { %3919 = vrot.lane.b32.xlu1 %v3882_v55, %s5556_s23 }
 0x204   : > { %4415 = vrot.lane.b32.xlu0 %v3878_v63, %s5557_s25  ;;  %v5970_v63 = vrot.slane %v3546_v14, %v5771_v15  ;;  %v3883_v14 = vld [vmem:[#allocation2 + $0x3a] sm:$0xff] }
 0x207   : > { %2519 = vrot.lane.b32.xlu1 %v2962_v2, %s5556_s23 }
 0x208   : > { %2993 = vrot.lane.b32.xlu0 %v2959_v39, %s5557_s25 }
 0x20b   : > { %4423 = vrot.lane.b32.xlu1 %v3882_v55, %s5557_s25  ;;  %v3884_v55 = vld [vmem:[#allocation2 + $0x42] sm:$0xff] }
 0x20c   : > { %3913 = vrot.lane.b32.xlu0 %v3879_v54, %s5556_s23 }
 0x20f   : > { %1099 = vrot.lane.b32.xlu1 %v1060_v51, %s5556_s23 }
 0x210   : > { %2513 = vrot.lane.b32.xlu0 %v2959_v39, %s5556_s23  ;;  %v2960_v39 = vld [vmem:[#allocation2 + $0x19] sm:$0xff] }
 0x213   : > { %1603 = vrot.lane.b32.xlu1 %v1060_v51, %s5557_s25  ;;  %v3880_v51 = vld [vmem:[#allocation2 + $0x1a] sm:$0xff] }
 0x214   : > { %4417 = vrot.lane.b32.xlu0 %v3879_v54, %s5557_s25  ;;  %v2964_v54 = vld [vmem:[#allocation2 + $0x41] sm:$0xff] }
 0x217   : > { %3001 = vrot.lane.b32.xlu1 %v2963_v13, %s5557_s25 }
 0x218   : > { %1093 = vrot.lane.b32.xlu0 %v5775_v17, %s5556_s23 }
 0x21b   : > { %3921 = vrot.lane.b32.xlu1 %v3883_v14, %s5556_s23 }
 0x21c   : > { %1597 = vrot.lane.b32.xlu0 %v5775_v17, %s5557_s25  ;;  %v1064_v17 = vld [vmem:[#allocation2 + $0x68] sm:$0xff] }
 0x21f   : > { %2521 = vrot.lane.b32.xlu1 %v2963_v13, %s5556_s23 }
 0x220   : > { %2995 = vrot.lane.b32.xlu0 %v2960_v39, %s5557_s25 }
 0x223   : > { %4425 = vrot.lane.b32.xlu1 %v3883_v14, %s5557_s25 }
 0x224   : > { %3915 = vrot.lane.b32.xlu0 %v3880_v51, %s5556_s23 }
 0x227   : > { %3003 = vrot.lane.b32.xlu1 %v2964_v54, %s5557_s25 }
 0x228   : > { %2515 = vrot.lane.b32.xlu0 %v2960_v39, %s5556_s23 }
 0x22b   : > { %3923 = vrot.lane.b32.xlu1 %v3884_v55, %s5556_s23 }
 0x22c   : > { %4419 = vrot.lane.b32.xlu0 %v3880_v51, %s5557_s25 }
 0x22f   : > { %2523 = vrot.lane.b32.xlu1 %v2964_v54, %s5556_s23 }
 0x230   : > { %1097 = vrot.lane.b32.xlu0 %v5826_v40, %s5556_s23 }
 0x233   : > { %4427 = vrot.lane.b32.xlu1 %v3884_v55, %s5557_s25 }
 0x234   : > { %1601 = vrot.lane.b32.xlu0 %v5826_v40, %s5557_s25 }
 0x237   : > { %1103 = vrot.lane.b32.xlu1 %v5762_v12, %s5556_s23 }
 0x238   : > { %1101 = vrot.lane.b32.xlu0 %v5755_v7, %s5556_s23 }
 0x23b   : > { %1607 = vrot.lane.b32.xlu1 %v5762_v12, %s5557_s25 }
 0x23c   : > { %1605 = vrot.lane.b32.xlu0 %v5755_v7, %s5557_s25 }
 0x23f   : > { %1107 = vrot.lane.b32.xlu1 %v1064_v17, %s5556_s23 }
 0x240   : > { %3005 = vrot.lane.b32.xlu0 %v5788_v24, %s5557_s25 }
 0x243   : > { %1611 = vrot.lane.b32.xlu1 %v1064_v17, %s5557_s25 }
 0x244   : > { %3925 = vrot.lane.b32.xlu0 %v5839_v47, %s5556_s23 }
 0x247   : > { %1111 = vrot.lane.b32.xlu1 %v5828_v41, %s5556_s23 }
 0x248   : > { %2525 = vrot.lane.b32.xlu0 %v5788_v24, %s5556_s23 }
 0x249   : > { %v6046_v12 = vpop.permute.xlu1 %1087 }
 0x24a   : > { %8799 = vst [vmem:[#allocation5_spill] sm:$0xff] %v6046_v12  ;;  %v6048_v7 = vpop.permute.xlu0 %1085 }
 0x24b   : > { %8800 = vst [vmem:[#allocation6_spill] sm:$0xff] %v6048_v7  ;;  %1615 = vrot.lane.b32.xlu1 %v5828_v41, %s5557_s25  ;;  %v8850_v7 = vcombine.high %v5897_v18, %v5910_v9 }
 0x24c   : > { %4429 = vrot.lane.b32.xlu0 %v5839_v47, %s5557_s25 }
 0x24d   : > { %v6054_v40 = vpop.permute.xlu1 %1591 }
 0x24e   : > { %8801 = vst [vmem:[#allocation7_spill] sm:$0xff] %v6054_v40  ;;  %v6056_v13 = vpop.permute.xlu0 %1589 }
 0x24f   : > { %8802 = vst [vmem:[#allocation8_spill] sm:$0xff] %v6056_v13  ;;  %3013 = vrot.lane.b32.xlu1 %v5857_v56, %s5557_s25  ;;  %v3892_v13 = vld [vmem:[#allocation2 + $0x92] sm:$0xff] }
 0x250   : > { %1105 = vrot.lane.b32.xlu0 %v5777_v19, %s5556_s23 }
 0x251   : > { %v6062_v24 = vpop.permute.xlu1 %1091 }
 0x252   : > { %8803 = vst [vmem:[#allocation9_spill] sm:$0xff] %v6062_v24  ;;  %v6064_v14 = vpop.permute.xlu0 %2989  ;;  %v3888_v24 = vld [vmem:[#allocation2 + $0x6a] sm:$0xff] }
 0x253   : > { %8804 = vst [vmem:[#allocation10_spill] sm:$0xff] %v6064_v14  ;;  %3933 = vrot.lane.b32.xlu1 %v5888_v10, %s5556_s23  ;;  %v5559_v14 = vmov 1934713408  }
 0x254   : > { %1609 = vrot.lane.b32.xlu0 %v5777_v19, %s5557_s25 }
 0x255   : > { %v6070_v41 = vpop.permute.xlu1 %1595 }
 0x256   : > { %8805 = vst [vmem:[#allocation11_spill] sm:$0xff] %v6070_v41  ;;  %v6072_v47 = vpop.permute.xlu0 %3909 }
 0x257   : > { %8806 = vst [vmem:[#allocation12_spill] sm:$0xff] %v6072_v47  ;;  %2533 = vrot.lane.b32.xlu1 %v5857_v56, %s5556_s23 }
 0x258   : > { %3007 = vrot.lane.b32.xlu0 %v5810_v33, %s5557_s25 }
 0x259   : > { %v6078_v55 = vpop.permute.xlu1 %1095 }
 0x25a   : > { %8807 = vst [vmem:[#allocation13_spill] sm:$0xff] %v6078_v55  ;;  %v6080_v39 = vpop.permute.xlu0 %2509 }
 0x25b   : > { %8808 = vst [vmem:[#allocation14_spill] sm:$0xff] %v6080_v39  ;;  %4437 = vrot.lane.b32.xlu1 %v5888_v10, %s5557_s25 }
 0x25c   : > { %3927 = vrot.lane.b32.xlu0 %v5922_v32, %s5556_s23 }
 0x25d   : > { %v6086_v19 = vpop.permute.xlu1 %1599 }
 0x25e   : > { %8809 = vst [vmem:[#allocation15_spill] sm:$0xff] %v6086_v19  ;;  %v6088_v51 = vpop.permute.xlu0 %4413 }
 0x25f   : > { %8810 = vst [vmem:[#allocation16_spill] sm:$0xff] %v6088_v51  ;;  %3015 = vrot.lane.b32.xlu1 %v5859_v57, %s5557_s25 }
 0x260   : > { %2527 = vrot.lane.b32.xlu0 %v5810_v33, %s5556_s23 }
 0x261   : > { %v6094_v56 = vpop.permute.xlu1 %2997 }
 0x262   : > { %8811 = vst [vmem:[#allocation17_spill] sm:$0xff] %v6094_v56  ;;  %v6096_v54 = vpop.permute.xlu0 %1089  ;;  %v686_v56 = vunpack.c.l.s4 %v5559_v14 }
 0x263   : > { %8812 = vst [vmem:[#allocation18_spill] sm:$0xff] %v6096_v54  ;;  %3935 = vrot.lane.b32.xlu1 %v5941_v0, %s5556_s23 }
 0x264   : > { %4431 = vrot.lane.b32.xlu0 %v5922_v32, %s5557_s25 }
 0x265   : > { %v6102_v10 = vpop.permute.xlu1 %3917 }
 0x266   : > { %v6104_v17 = vpop.permute.xlu0 %1593 }
 0x267   : > { %8813 = vst [vmem:[#allocation19_spill] sm:$0xff] %v6104_v17  ;;  %2535 = vrot.lane.b32.xlu1 %v5859_v57, %s5556_s23  ;;  %v8858_v17 = vcombine.high %v5906_v23, %v5919_v31 }
 0x268   : > { %3009 = vrot.lane.b32.xlu0 %v2967_v49, %s5557_s25 }
 0x269   : > { %v6109_v33 = vpop.permute.xlu1 %2517 }
 0x26a   : > { %8814 = vst [vmem:[#allocation20_spill] sm:$0xff] %v6109_v33  ;;  %v6111_v2 = vpop.permute.xlu0 %2991 }
 0x26b   : > { %4439 = vrot.lane.b32.xlu1 %v5941_v0, %s5557_s25 }
 0x26c   : > { %3929 = vrot.lane.b32.xlu0 %v3887_v37, %s5556_s23 }
 0x26d   : > { %v6116_v32 = vpop.permute.xlu1 %4421 }
 0x26e   : > { %8815 = vst [vmem:[#allocation21_spill] sm:$0xff] %v6116_v32  ;;  %v6118_v8 = vpop.permute.xlu0 %3911 }
 0x26f   : > { %1115 = vrot.lane.b32.xlu1 %v6120_v5, %s5556_s23 }
 0x270   : > { %2529 = vrot.lane.b32.xlu0 %v2967_v49, %s5556_s23 }
 0x271   : > { %v6125_v57 = vpop.permute.xlu1 %2999 }
 0x272   : > { %v6127_v4 = vpop.permute.xlu0 %2511 }
 0x273   : > { %1619 = vrot.lane.b32.xlu1 %v6120_v5, %s5557_s25 }
 0x274   : > { %4433 = vrot.lane.b32.xlu0 %v3887_v37, %s5557_s25 }
 0x275   : > { %v6132_v0 = vpop.permute.xlu1 %3919 }
 0x276   : > { %v6134_v3 = vpop.permute.xlu0 %4415 }
 0x277   : > { %3017 = vrot.lane.b32.xlu1 %v2971_v46, %s5557_s25 }
 0x278   : > { %1109 = vrot.lane.b32.xlu0 %v5779_v20, %s5556_s23 }
 0x279   : > { %v6139_v49 = vpop.permute.xlu1 %2519 }
 0x27a   : > { %v6141_v45 = vpop.permute.xlu0 %2993 }
 0x27b   : > { %8816 = vst [vmem:[#allocation22_spill] sm:$0xff] %v6141_v45  ;;  %3937 = vrot.lane.b32.xlu1 %v6143_v44, %s5556_s23 }
 0x27c   : > { %1613 = vrot.lane.b32.xlu0 %v5779_v20, %s5557_s25 }
 0x27d   : > { %v6149_v37 = vpop.permute.xlu1 %4423 }
 0x27e   : > { %v6151_v43 = vpop.permute.xlu0 %3913 }
 0x27f   : > { %8817 = vst [vmem:[#allocation23_spill] sm:$0xff] %v6151_v43  ;;  %2537 = vrot.lane.b32.xlu1 %v2971_v46, %s5556_s23  ;;  %v2972_v46 = vld [vmem:[#allocation2 + $0x91] sm:$0xff] }
 0x280   : > { %3011 = vrot.lane.b32.xlu0 %v2968_v42, %s5557_s25 }
 0x281   : > { %v6155_v41 = vpop.permute.xlu1 %1099 }
 0x282   : > { %8818 = vst [vmem:[#allocation24_spill] sm:$0xff] %v6155_v41  ;;  %v6157_v45 = vpop.permute.xlu0 %2513 }
 0x283   : > { %8819 = vst [vmem:[#allocation25_spill] sm:$0xff] %v6157_v45  ;;  %4441 = vrot.lane.b32.xlu1 %v6143_v44, %s5557_s25  ;;  %v687_v45 = vunpack.c.0.s8 %v686_v56  ;;  %v8827_v56 = vcombine.high %v5797_v27, %v5803_v29 }
 0x284   : > { %3931 = vrot.lane.b32.xlu0 %v3888_v24, %s5556_s23 }
 0x285   : > { %v6162_v20 = vpop.permute.xlu1 %1603  ;;  %v6177_v14 = vsub.s32 %v687_v45, %v5753_v6  ;;  %v8830_v45 = vmov 0.0  }
 0x286   : > { %8820 = vst [vmem:[#allocation26_spill] sm:$0xff] %v6162_v20  ;;  %v6164_v43 = vpop.permute.xlu0 %4417 }
 0x287   : > { %8821 = vst [vmem:[#allocation27_spill] sm:$0xff] %v6164_v43  ;;  %3019 = vrot.lane.b32.xlu1 %v2972_v46, %s5557_s25 }
 0x288   : > { %2531 = vrot.lane.b32.xlu0 %v2968_v42, %s5556_s23 }
 0x289   : > { %v6168_v41 = vpop.permute.xlu1 %3001 }
 0x28a   : > { %8822 = vst [vmem:[#allocation28_spill] sm:$0xff] %v6168_v41  ;;  %v6170_v54 = vpop.permute.xlu0 %1093  ;;  %v698_v41 = vrot.slane %v8827_v56, %v6177_v14  ;;  %v8835_v56 = vcombine.high %v5800_v28, %v5806_v30 }
 0x28b   : > { %8823 = vst [vmem:[#allocation29_spill] sm:$0xff] %v6170_v54  ;;  %3939 = vrot.lane.b32.xlu1 %v3892_v13, %s5556_s23  ;;  %v8852_v54 = vcombine.high %v5900_v21, %v5913_v25 }
 0x28c   : > { %4435 = vrot.lane.b32.xlu0 %v3888_v24, %s5557_s25 }
 0x28d   : > { %v6174_v20 = vpop.permute.xlu1 %3921 }
 0x28e   : > { %8824 = vst [vmem:[#allocation30_spill] sm:$0xff] %v6174_v20  ;;  %v6179_v43 = vpop.permute.xlu0 %1597 }
 0x28f   : > { %8825 = vst [vmem:[#allocation31_spill] sm:$0xff] %v6179_v43  ;;  %2539 = vrot.lane.b32.xlu1 %v2972_v46, %s5556_s23  ;;  %v716_v46 = vcombine.high %v698_v41, %v8830_v45 }
 0x290   : > { %1113 = vrot.lane.b32.xlu0 %v5812_v34, %s5556_s23 }
 0x291   : > { %v6184_v42 = vpop.permute.xlu1 %2521 }
 0x292   : > { %8826 = vst [vmem:[#allocation32_spill] sm:$0xff] %v6184_v42  ;;  %v6190_v24 = vpop.permute.xlu0 %2995  ;;  %v8831_v42 = vcombine.low %v5800_v28, %v5806_v30 }
 0x293   : > { %8828 = vst [vmem:[#allocation33_spill] sm:$0xff] %v6190_v24  ;;  %4443 = vrot.lane.b32.xlu1 %v3892_v13, %s5557_s25  ;;  %v714_v24 = vrot.slane %v8835_v56, %v6177_v14  ;;  %v8846_v56 = vcombine.high %v5815_v35, %v5868_v61 }
 0x294   : > { %1617 = vrot.lane.b32.xlu0 %v5812_v34, %s5557_s25  ;;  %v6202_v20 = vrot.slane %v8831_v42, %v6177_v14 }
 0x295   : > { %v6195_v6 = vpop.permute.xlu1 %4425 }
 0x296   : > { %8829 = vst [vmem:[#allocation34_spill] sm:$0xff] %v6195_v6  ;;  %8832 = vst [vmem:[#allocation35_spill] sm:$0xff] %v6202_v20  ;;  %v6204_v43 = vpop.permute.xlu0 %3915  ;;  %v717_v34 = vcombine.high %v6202_v20, %v8830_v45 }
 0x297   : > { %8833 = vst [vmem:[#allocation36_spill] sm:$0xff] %v6204_v43  ;;  %932 = vrot.lane.b32.xlu1 %v716_v46, %s5560_s26  ;;  %v8837_v43 = vcombine.low %v5797_v27, %v5803_v29  ;;  %v8842_v27 = vcombine.high %v5850_v52, %v5862_v58 }
 0x298   : > { %928 = vrot.lane.b32.xlu0 %v698_v41, %s5561_s27 }
 0x299   : > { %v6208_v13 = vpop.permute.xlu1 %3003  ;;  %v6222_v46 = vrot.slane %v8837_v43, %v6177_v14  ;;  %v6241_v29 = vrot.slane %v8842_v27, %v6177_v14 }
 0x29a   : > { %8834 = vst [vmem:[#allocation37_spill] sm:$0xff] %v6208_v13  ;;  %v6216_v42 = vpop.permute.xlu0 %2515  ;;  %v718_v13 = vcombine.high %v714_v24, %v8830_v45 }
 0x29b   : > { %8836 = vst [vmem:[#allocation38_spill] sm:$0xff] %v6216_v42  ;;  %8838 = vst [vmem:[#allocation39_spill] sm:$0xff] %v6222_v46  ;;  %936 = vrot.lane.b32.xlu1 %v717_v34, %s5562_s28  ;;  %v715_v28 = vcombine.high %v6222_v46, %v8830_v45  ;;  %v8873_v42 = vcombine.high %v5976_v1, %v5979_v50 }
 0x29c   : > { %940 = vrot.lane.b32.xlu0 %v714_v24, %s5561_s27  ;;  %v8844_v24 = vcombine.high %v5853_v53, %v5865_v59 }
 0x29d   : > { %v6226_v41 = vpop.permute.xlu1 %3923 }
 0x29e   : > { %8839 = vst [vmem:[#allocation40_spill] sm:$0xff] %v6226_v41  ;;  %v6229_v6 = vpop.permute.xlu0 %4419  ;;  %v850_v34 = vrot.slane %v8844_v24, %v6177_v14  ;;  %v8848_v41 = vcombine.high %v5818_v36, %v5871_v62 }
 0x29f   : > { %8840 = vst [vmem:[#allocation41_spill] sm:$0xff] %v6229_v6  ;;  %944 = vrot.lane.b32.xlu1 %v718_v13, %s5560_s26  ;;  %v6306_v6 = vrot.slane %v8858_v17, %v6177_v14 }
 0x2a0   : > { %924 = vrot.lane.b32.xlu0 %v715_v28, %s5562_s28  ;;  %v6258_v28 = vrot.slane %v8846_v56, %v6177_v14  ;;  %v782_v24 = vrot.slane %v8848_v41, %v6177_v14  ;;  %v6275_v56 = vrot.slane %v8850_v7, %v6177_v14  ;;  %v2116_v41 = vrot.slane %v8852_v54, %v6177_v14 }
 0x2a1   : > { %v6235_v43 = vpop.permute.xlu1 %2523 }
 0x2a2   : > { %8841 = vst [vmem:[#allocation42_spill] sm:$0xff] %v6235_v43  ;;  %v6243_v30 = vpop.permute.xlu0 %1097 }
 0x2a3   : > { %8843 = vst [vmem:[#allocation43_spill] sm:$0xff] %v6243_v30  ;;  %976 = vrot.lane.b32.xlu1 %v6241_v29, %s5561_s27 }
 0x2a4   : > { %988 = vrot.lane.b32.xlu0 %v850_v34, %s5561_s27 }
 0x2a5   : > { %v6252_v13 = vpop.permute.xlu1 %4427 }
 0x2a6   : > { %8845 = vst [vmem:[#allocation44_spill] sm:$0xff] %v6252_v13  ;;  %v6260_v27 = vpop.permute.xlu0 %1601 }
 0x2a7   : > { %8847 = vst [vmem:[#allocation45_spill] sm:$0xff] %v6260_v27  ;;  %952 = vrot.lane.b32.xlu1 %v6258_v28, %s5561_s27  ;;  %v8854_v27 = vcombine.high %v5903_v22, %v5916_v26 }
 0x2a8   : > { %964 = vrot.lane.b32.xlu0 %v782_v24, %s5561_s27 }
 0x2a9   : > { %v6269_v30 = vpop.permute.xlu1 %1103  ;;  %v6292_v7 = vrot.slane %v8854_v27, %v6177_v14 }
 0x2aa   : > { %8849 = vst [vmem:[#allocation46_spill] sm:$0xff] %v6269_v30  ;;  %v6277_v46 = vpop.permute.xlu0 %1101 }
 0x2ab   : > { %8851 = vst [vmem:[#allocation47_spill] sm:$0xff] %v6277_v46  ;;  %2330 = vrot.lane.b32.xlu1 %v6275_v56, %s5561_s27  ;;  %v8855_v46 = vcombine.low %v5853_v53, %v5865_v59 }
 0x2ac   : > { %2342 = vrot.lane.b32.xlu0 %v2116_v41, %s5561_s27 }
 0x2ad   : > { %v6286_v20 = vpop.permute.xlu1 %1607  ;;  %v6298_v13 = vrot.slane %v8855_v46, %v6177_v14  ;;  %v8861_v46 = vcombine.high %v5927_v38, %v5944_v60 }
 0x2ae   : > { %8853 = vst [vmem:[#allocation48_spill] sm:$0xff] %v6286_v20  ;;  %v6300_v54 = vpop.permute.xlu0 %1605 }
 0x2af   : > { %8856 = vst [vmem:[#allocation49_spill] sm:$0xff] %v6298_v13  ;;  %8857 = vst [vmem:[#allocation50_spill] sm:$0xff] %v6300_v54  ;;  %2354 = vrot.lane.b32.xlu1 %v6292_v7, %s5561_s27  ;;  %v853_v53 = vcombine.high %v6298_v13, %v8830_v45  ;;  %v6322_v54 = vrot.slane %v8861_v46, %v6177_v14  ;;  %v8863_v13 = vcombine.low %v5818_v36, %v5871_v62 }
 0x2b0   : > { %2366 = vrot.lane.b32.xlu0 %v6306_v6, %s5561_s27  ;;  %v8866_v46 = vcombine.high %v5947_v16, %v5950_v11 }
 0x2b1   : > { %v6312_v27 = vpop.permute.xlu1 %1107 }
 0x2b2   : > { %8859 = vst [vmem:[#allocation51_spill] sm:$0xff] %v6312_v27  ;;  %v6316_v59 = vpop.permute.xlu0 %3005  ;;  %v854_v27 = vcombine.high %v850_v34, %v8830_v45 }
 0x2b3   : > { %8860 = vst [vmem:[#allocation52_spill] sm:$0xff] %v6316_v59  ;;  %984 = vrot.lane.b32.xlu1 %v853_v53, %s5562_s28  ;;  %v6334_v59 = vrot.slane %v8863_v13, %v6177_v14  ;;  %v6342_v53 = vrot.slane %v8866_v46, %v6177_v14 }
 0x2b4   : > { %3766 = vrot.lane.b32.xlu0 %v6322_v54, %s5561_s27 }
 0x2b5   : > { %v6327_v17 = vpop.permute.xlu1 %1611  ;;  %8864 = vst [vmem:[#allocation54_spill] sm:$0xff] %v6334_v59  ;;  %v785_v36 = vcombine.high %v6334_v59, %v8830_v45  ;;  %v786_v59 = vcombine.high %v782_v24, %v8830_v45  ;;  %v8874_v24 = vcombine.low %v5850_v52, %v5862_v58 }
 0x2b6   : > { %8862 = vst [vmem:[#allocation53_spill] sm:$0xff] %v6327_v17  ;;  %v6336_v43 = vpop.permute.xlu0 %3925  ;;  %v1202_v17 = vcombine.high %v6046_v12, %v6269_v30 }
 0x2b7   : > { %8865 = vst [vmem:[#allocation55_spill] sm:$0xff] %v6336_v43  ;;  %992 = vrot.lane.b32.xlu1 %v854_v27, %s5560_s26  ;;  %v8869_v27 = vcombine.high %v5970_v63, %v5973_v48 }
 0x2b8   : > { %3754 = vrot.lane.b32.xlu0 %v6342_v53, %s5561_s27  ;;  %v6365_v12 = vrot.slane %v1202_v17, %v5771_v15  ;;  %v2120_v17 = vcombine.high %v2116_v41, %v8830_v45 }
 0x2b9   : > { %v6349_v34 = vpop.permute.xlu1 %1111  ;;  %v6361_v46 = vrot.slane %v8869_v27, %v6177_v14 }
 0x2ba   : > { %8867 = vst [vmem:[#allocation56_spill] sm:$0xff] %v6349_v34  ;;  %v1218_v62 = vcombine.high %v6078_v55, %v6349_v34  ;;  %v6355_v13 = vpop.permute.xlu0 %2525  ;;  %v1706_v55 = vcombine.high %v6054_v40, %v6286_v20  ;;  %v6391_v40 = vrot.slane %v8873_v42, %v6177_v14  ;;  %v6397_v20 = vrot.slane %v8874_v24, %v6177_v14 }
 0x2bb   : > { %8868 = vst [vmem:[#allocation57_spill] sm:$0xff] %v6355_v13  ;;  %960 = vrot.lane.b32.xlu1 %v785_v36, %s5562_s28  ;;  %v8871_v36 = vcombine.low %v5900_v21, %v5913_v25 }
 0x2bc   : > { %v6368_v30 = vrot.slane %v1218_v62, %v5771_v15  ;;  %3790 = vrot.lane.b32.xlu0 %v6361_v46, %s5561_s27  ;;  %v6405_v25 = vrot.slane %v1706_v55, %v5771_v15  ;;  %v851_v24 = vcombine.high %v6397_v20, %v8830_v45  ;;  %v3957_v55 = vcombine.low %v6072_v47, %v6336_v43 }
 0x2bd   : > { %v6374_v34 = vpop.permute.xlu1 %1615  ;;  %v6381_v27 = vrot.slane %v8871_v36, %v6177_v14 }
 0x2be   : > { %8870 = vst [vmem:[#allocation58_spill] sm:$0xff] %v6374_v34  ;;  %v6385_v62 = vpop.permute.xlu0 %4429  ;;  %v1722_v21 = vcombine.high %v6086_v19, %v6374_v34 }
 0x2bf   : > { %8872 = vst [vmem:[#allocation59_spill] sm:$0xff] %v6385_v62  ;;  %968 = vrot.lane.b32.xlu1 %v786_v59, %s5560_s26  ;;  %v2119_v52 = vcombine.high %v6381_v27, %v8830_v45 }
 0x2c0   : > { %3778 = vrot.lane.b32.xlu0 %v6391_v40, %s5561_s27  ;;  %v6408_v42 = vrot.slane %v1722_v21, %v5771_v15 }
 0x2c1   : > { %v6410_v36 = vpop.permute.xlu1 %3013 }
 0x2c2   : > { %8875 = vst [vmem:[#allocation60_spill] sm:$0xff] %v6410_v36  ;;  %v6414_v58 = vpop.permute.xlu0 %1105  ;;  %v8876_v36 = vcombine.low %v5906_v23, %v5919_v31  ;;  %v2557_v23 = vcombine.low %v6080_v39, %v6355_v13  ;;  %v6450_v31 = vrot.slane %v3957_v55, %v5771_v15  ;;  %v4462_v39 = vcombine.high %v6088_v51, %v6385_v62 }
 0x2c3   : > { %2338 = vrot.lane.b32.xlu1 %v2119_v52, %s5562_s28  ;;  %v852_v52 = vcombine.high %v6241_v29, %v8830_v45  ;;  %v8881_v51 = vcombine.low %v5897_v18, %v5910_v9 }
 0x2c4   : > { %972 = vrot.lane.b32.xlu0 %v851_v24, %s5562_s28  ;;  %v6431_v19 = vrot.slane %v8876_v36, %v6177_v14  ;;  %v8877_v24 = vcombine.low %v5815_v35, %v5868_v61  ;;  %v6467_v55 = vrot.slane %v2557_v23, %v5771_v15  ;;  %v6522_v23 = vld [vmem:[#allocation2 + $0x40] sm:$0xff] }
 0x2c5   : > { %v6424_v21 = vpop.permute.xlu1 %3933  ;;  %v6493_v62 = vrot.slane %v8881_v51, %v6177_v14  ;;  %v8884_v51 = vcombine.low %v5947_v16, %v5950_v11 }
 0x2c6   : > { %v6433_v34 = vpop.permute.xlu0 %1609  ;;  %v6441_v59 = vrot.slane %v8877_v24, %v6177_v14  ;;  %v3973_v41 = vcombine.low %v6102_v10, %v6424_v21  ;;  %v2187_v35 = vcombine.high %v6431_v19, %v8830_v45 }
 0x2c7   : > { %2346 = vrot.lane.b32.xlu1 %v2120_v17, %s5560_s26 }
 0x2c8   : > { %980 = vrot.lane.b32.xlu0 %v852_v52, %s5560_s26  ;;  %v6453_v29 = vrot.slane %v3973_v41, %v5771_v15  ;;  %v783_v24 = vcombine.high %v6441_v59, %v8830_v45 }
 0x2c9   : > { %v6455_v36 = vpop.permute.xlu1 %2533 }
 0x2ca   : > { %8878 = vst [vmem:[#allocation61_spill] sm:$0xff] %v6455_v36  ;;  %v2573_v61 = vcombine.low %v6109_v33, %v6455_v36  ;;  %v3008_v17 = vpop.permute.xlu0 %3007  ;;  %v2188_v33 = vcombine.high %v6306_v6, %v8830_v45 }
 0x2cb   : > { %2362 = vrot.lane.b32.xlu1 %v2187_v35, %s5562_s28  ;;  %v8880_v35 = vcombine.low %v5927_v38, %v5944_v60  ;;  %v3105_v38 = vcombine.low %v6111_v2, %v3008_v17  ;;  %v3106_v60 = vcombine.high %v6111_v2, %v3008_v17 }
 0x2cc   : > { %v6470_v41 = vrot.slane %v2573_v61, %v5771_v15  ;;  %948 = vrot.lane.b32.xlu0 %v783_v24, %s5562_s28  ;;  %v784_v24 = vcombine.high %v6258_v28, %v8830_v45 }
 0x2cd   : > { %v6475_v13 = vpop.permute.xlu1 %4437  ;;  %v6483_v52 = vrot.slane %v8880_v35, %v6177_v14  ;;  %v6502_v35 = vrot.slane %v4462_v39, %v5771_v15  ;;  %v2117_v39 = vcombine.high %v6493_v62, %v8830_v45  ;;  %v6525_v16 = vrot.slane %v3105_v38, %v5771_v15 }
 0x2ce   : > { %8879 = vst [vmem:[#allocation62_spill] sm:$0xff] %v6475_v13  ;;  %v3928_v61 = vpop.permute.xlu0 %3927  ;;  %v4478_v6 = vcombine.high %v6116_v32, %v6475_v13  ;;  %v5519_v32 = vld [vmem:[#allocation2 + $0x1c] ss:$80 sps:$4 sm:$0xff]   ;;  %v6528_v11 = vrot.slane %v3106_v60, %v5771_v15  ;;  %v2118_v60 = vcombine.high %v6275_v56, %v8830_v45 }
 0x2cf   : > { %2370 = vrot.lane.b32.xlu1 %v2188_v33, %s5560_s26  ;;  %8882 = vst [vmem:[#allocation63_spill] sm:$0xff] %v6502_v35  ;;  %v3543_v9 = vcombine.high %v6483_v52, %v8830_v45  ;;  %v6513_v33 = vrot.slane %v8884_v51, %v6177_v14  ;;  %8886 = vst [vmem:[#allocation66_spill] sm:$0xff] %v6525_v16  ;;  %v4025_v51 = vcombine.low %v6118_v8, %v3928_v61 }
 0x2d0   : > { %956 = vrot.lane.b32.xlu0 %v784_v24, %s5560_s26  ;;  %v6505_v28 = vrot.slane %v4478_v6, %v5771_v15  ;;  %8887 = vst [vmem:[#allocation67_spill] sm:$0xff] %v6528_v11 }
 0x2d1   : > { %v3016_v18 = vpop.permute.xlu1 %3015  ;;  %8885 = vst [vmem:[#allocation65_spill] sm:$0xff] %v6513_v33  ;;  %v3541_v38 = vcombine.high %v6513_v33, %v8830_v45 }
 0x2d2   : > { %8883 = vst [vmem:[#allocation64_spill] sm:$0xff] %v6505_v28  ;;  %v3121_v2 = vcombine.low %v6125_v57, %v3016_v18  ;;  %v3122_v17 = vcombine.high %v6125_v57, %v3016_v18  ;;  %v2528_v24 = vpop.permute.xlu0 %2527 }
 0x2d3   : > { %3762 = vrot.lane.b32.xlu1 %v3543_v9, %s5562_s28  ;;  %v4026_v9 = vcombine.high %v6118_v8, %v3928_v61  ;;  %v872_v8 = vcombine.high %v6522_v23, %v6120_v5  ;;  %v2625_v16 = vcombine.low %v6127_v4, %v2528_v24 }
 0x2d4   : > { %v6531_v57 = vrot.slane %v3121_v2, %v5771_v15  ;;  %v6534_v18 = vrot.slane %v3122_v17, %v5771_v15  ;;  %2326 = vrot.lane.b32.xlu0 %v2117_v39, %s5562_s28  ;;  %v8890_v39 = vcombine.low %v5903_v22, %v5916_v26  ;;  %v6559_v2 = vrot.slane %v5519_v32, %v5771_v15  ;;  %v3467_v17 = vld [vmem:[#allocation2 + $0x3a] sm:$0xff] }
 0x2d5   : > { %v3936_v6 = vpop.permute.xlu1 %3935  ;;  %v3544_v22 = vcombine.high %v6322_v54, %v8830_v45  ;;  %v3630_v26 = vcombine.high %v3467_v17, %v6143_v44 }
 0x2d6   : > { %8888 = vst [vmem:[#allocation68_spill] sm:$0xff] %v6531_v57  ;;  %8889 = vst [vmem:[#allocation69_spill] sm:$0xff] %v6534_v18  ;;  %v4432_v13 = vpop.permute.xlu0 %4431  ;;  %v6551_v36 = vrot.slane %v8890_v39, %v6177_v14  ;;  %v4041_v61 = vcombine.low %v6132_v0, %v3936_v6  ;;  %v4042_v56 = vcombine.high %v6132_v0, %v3936_v6 }
 0x2d7   : > { %3750 = vrot.lane.b32.xlu1 %v3541_v38, %s5562_s28  ;;  %v2626_v57 = vcombine.high %v6127_v4, %v2528_v24  ;;  %v6568_v39 = vrot.slane %v4025_v51, %v5771_v15  ;;  %v6571_v0 = vrot.slane %v4026_v9, %v5771_v15 }
 0x2d8   : > { %8891 = vst [vmem:[#allocation70_spill] sm:$0xff] %v6551_v36  ;;  %2334 = vrot.lane.b32.xlu0 %v2118_v60, %s5560_s26  ;;  %v6574_v32 = vrot.slane %v4041_v61, %v5771_v15  ;;  %v6577_v6 = vrot.slane %v4042_v56, %v5771_v15  ;;  %v2185_v51 = vcombine.high %v6551_v36, %v8830_v45 }
 0x2d9   : > { %8892 = vst [vmem:[#allocation71_spill] sm:$0xff] %v6568_v39  ;;  %8893 = vst [vmem:[#allocation72_spill] sm:$0xff] %v6571_v0  ;;  %v2536_v4 = vpop.permute.xlu1 %2535  ;;  %v6586_v60 = vrot.slane %v872_v8, %v5771_v15  ;;  %v3542_v56 = vcombine.high %v6342_v53, %v8830_v45  ;;  %v6602_v8 = vrot.slane %v2625_v16, %v5771_v15  ;;  %v5522_v53 = vld [vmem:[#allocation2 + $0x16] ss:$80 sps:$4 sm:$0xff]  }
 0x2da   : > { %8894 = vst [vmem:[#allocation73_spill] sm:$0xff] %v6574_v32  ;;  %8895 = vst [vmem:[#allocation74_spill] sm:$0xff] %v6577_v6  ;;  %v2641_v24 = vcombine.low %v6139_v49, %v2536_v4  ;;  %v2642_v38 = vcombine.high %v6139_v49, %v2536_v4  ;;  %v6581_v54 = vpop.permute.xlu0 %3009  ;;  %v8897_v49 = vcombine.low %v5970_v63, %v5973_v48 }
 0x2db   : > { %8896 = vst [vmem:[#allocation75_spill] sm:$0xff] %v6581_v54  ;;  %3770 = vrot.lane.b32.xlu1 %v3544_v22, %s5560_s26  ;;  %8899 = vst [vmem:[#allocation77_spill] sm:$0xff] %v6602_v8  ;;  %v6605_v54 = vrot.slane %v2626_v57, %v5771_v15  ;;  %v4529_v61 = vcombine.low %v6134_v3, %v4432_v13  ;;  %v4530_v48 = vcombine.high %v6134_v3, %v4432_v13 }
 0x2dc   : > { %v6599_v4 = vrot.slane %v8897_v49, %v6177_v14  ;;  %v6608_v9 = vrot.slane %v2641_v24, %v5771_v15  ;;  %v6611_v22 = vrot.slane %v2642_v38, %v5771_v15  ;;  %2350 = vrot.lane.b32.xlu0 %v2185_v51, %s5562_s28  ;;  %v2186_v16 = vcombine.high %v6292_v7, %v8830_v45  ;;  %v5525_v24 = vld [vmem:[#allocation2 + $0x12] ss:$80 sps:$4 sm:$0xff]  }
 0x2dd   : > { %8900 = vst [vmem:[#allocation78_spill] sm:$0xff] %v6605_v54  ;;  %v4440_v63 = vpop.permute.xlu1 %4439  ;;  %v3629_v57 = vcombine.low %v3467_v17, %v6143_v44  ;;  %v904_v51 = vcombine.high %v6559_v2, %v6586_v60  ;;  %v6628_v39 = vrot.slane %v3630_v26, %v5771_v15  ;;  %v8904_v13 = vcombine.low %v5976_v1, %v5979_v50 }
 0x2de   : > { %8898 = vst [vmem:[#allocation76_spill] sm:$0xff] %v6599_v4  ;;  %8901 = vst [vmem:[#allocation79_spill] sm:$0xff] %v6608_v9  ;;  %v6623_v49 = vpop.permute.xlu0 %3929  ;;  %v4545_v3 = vcombine.low %v6149_v37, %v4440_v63  ;;  %v4546_v7 = vcombine.high %v6149_v37, %v4440_v63  ;;  %v3611_v44 = vcombine.high %v6599_v4, %v8830_v45  ;;  %v5544_v4 = vld [vmem:[#allocation2 + $0x3d] ss:$80 sps:$4 sm:$0xff]  }
 0x2df   : > { %8902 = vst [vmem:[#allocation80_spill] sm:$0xff] %v6611_v22  ;;  %8903 = vst [vmem:[#allocation81_spill] sm:$0xff] %v6623_v49  ;;  %3758 = vrot.lane.b32.xlu1 %v3542_v56, %s5560_s26  ;;  %v6640_v17 = vrot.slane %v8904_v13, %v6177_v14  ;;  %v6643_v26 = vrot.slane %v5522_v53, %v5771_v15  ;;  %v6646_v38 = vrot.slane %v4529_v61, %v5771_v15  ;;  %v5527_v13 = vld [vmem:[#allocation2 + $0x1d] ss:$80 sps:$4 sm:$0xff]   ;;  %v5542_v22 = vld [vmem:[#allocation2 + $0x42] ss:$80 sps:$4 sm:$0xff]  }
 0x2e0   : > { %2358 = vrot.lane.b32.xlu0 %v2186_v16, %s5560_s26  ;;  %v6649_v37 = vrot.slane %v4530_v48, %v5771_v15  ;;  %v6652_v56 = vrot.slane %v4545_v3, %v5771_v15  ;;  %v6655_v63 = vrot.slane %v4546_v7, %v5771_v15  ;;  %v6662_v1 = vrot.slane %v904_v51, %v6177_v14  ;;  %v5529_v48 = vld [vmem:[#allocation2 + $0x45] ss:$80 sps:$4 sm:$0xff]  }
 0x2e1   : > { %8905 = vst [vmem:[#allocation82_spill] sm:$0xff] %v6640_v17  ;;  %8906 = vst [vmem:[#allocation83_spill] sm:$0xff] %v6646_v38  ;;  %v6657_v16 = vpop.permute.xlu1 %1115  ;;  %v3662_v61 = vcombine.high %v6643_v26, %v6628_v39  ;;  %v6667_v53 = vrot.slane %v3629_v57, %v5771_v15  ;;  %v6677_v51 = vrot.slane %v5525_v24, %v5771_v15 }
 0x2e2   : > { %8907 = vst [vmem:[#allocation84_spill] sm:$0xff] %v6649_v37  ;;  %8908 = vst [vmem:[#allocation85_spill] sm:$0xff] %v6652_v56  ;;  %v6659_v50 = vpop.permute.xlu0 %2529  ;;  %v3609_v57 = vcombine.high %v6640_v17, %v8830_v45  ;;  %v871_v3 = vcombine.low %v6522_v23, %v6120_v5  ;;  %v6693_v24 = vrot.slane %v5529_v48, %v5771_v15  ;;  %v5533_v23 = vld [vmem:[#allocation2 + $0x1e] ss:$80 sps:$4 sm:$0xff]   ;;  %v5539_v48 = vld [vmem:[#allocation2 + $0x39] ss:$80 sps:$4 sm:$0xff]  }
 0x2e3   : > { %8909 = vst [vmem:[#allocation86_spill] sm:$0xff] %v6655_v63  ;;  %8910 = vst [vmem:[#allocation87_spill] sm:$0xff] %v6657_v16  ;;  %3786 = vrot.lane.b32.xlu1 %v3611_v44, %s5562_s28  ;;  %v6688_v7 = vrot.slane %v3662_v61, %v6177_v14  ;;  %v3646_v44 = vcombine.high %v6677_v51, %v6667_v53  ;;  %v5535_v16 = vld [vmem:[#allocation2 + $0x46] ss:$80 sps:$4 sm:$0xff]   ;;  %v6699_v5 = vrot.slane %v5527_v13, %v5771_v15 }
 0x2e4   : > { %8911 = vst [vmem:[#allocation88_spill] sm:$0xff] %v6659_v50  ;;  %1012 = vrot.lane.b32.xlu0 %v6662_v1, %s5561_s27  ;;  %v3612_v61 = vcombine.high %v6361_v46, %v8830_v45  ;;  %v879_v38 = vrot.slane %v871_v3, %v5771_v15  ;;  %v6714_v13 = vrot.slane %v5535_v16, %v5771_v15  ;;  %v5537_v46 = vld [vmem:[#allocation2 + $0x11] ss:$80 sps:$4 sm:$0xff]  }
 0x2e5   : > { %v6679_v50 = vpop.permute.xlu1 %1619  ;;  %v2306_v54 = vcombine.high %v6699_v5, %v6693_v24  ;;  %v6721_v3 = vrot.slane %v5533_v23, %v5771_v15  ;;  %v3610_v37 = vcombine.high %v6391_v40, %v8830_v45  ;;  %v2213_v63 = vrot.slane %v5539_v48, %v5771_v15  ;;  %v5543_v40 = vld [vmem:[#allocation2 + $0x15] ss:$80 sps:$4 sm:$0xff]  }
 0x2e6   : > { %8912 = vst [vmem:[#allocation89_spill] sm:$0xff] %v6679_v50  ;;  %v6685_v49 = vpop.permute.xlu0 %4433  ;;  %v5531_v50 = vld [vmem:[#allocation2 + $0x18] ss:$80 sps:$4 sm:$0xff]   ;;  %v6736_v23 = vrot.slane %v5542_v22, %v5771_v15  ;;  %v2220_v0 = vrot.slane %v5544_v4, %v5771_v15  ;;  %v5546_v22 = vld [vmem:[#allocation2 + $0x41] ss:$80 sps:$4 sm:$0xff]  }
 0x2e7   : > { %8913 = vst [vmem:[#allocation90_spill] sm:$0xff] %v6685_v49  ;;  %3774 = vrot.lane.b32.xlu1 %v3609_v57, %s5562_s28  ;;  %v6709_v57 = vrot.slane %v3646_v44, %v6177_v14  ;;  %v5541_v44 = vld [vmem:[#allocation2 + $0x1a] ss:$80 sps:$4 sm:$0xff]   ;;  %v3730_v8 = vcombine.high %v6721_v3, %v6714_v13 }
 0x2e8   : > { %3814 = vrot.lane.b32.xlu0 %v6688_v7, %s5561_s27  ;;  %v6743_v48 = vrot.slane %v5541_v44, %v5771_v15  ;;  %v2204_v44 = vrot.slane %v5543_v40, %v5771_v15 }
 0x2e9   : > { %v6701_v49 = vpop.permute.xlu1 %3017 }
 0x2ea   : > { %8914 = vst [vmem:[#allocation91_spill] sm:$0xff] %v6701_v49  ;;  %v6706_v56 = vpop.permute.xlu0 %1109  ;;  %v863_v49 = vrot.slane %v5531_v50, %v5771_v15  ;;  %v6731_v50 = vrot.slane %v2306_v54, %v6177_v14 }
 0x2eb   : > { %3794 = vrot.lane.b32.xlu1 %v3612_v61, %s5560_s26 }
 0x2ec   : > { %3802 = vrot.lane.b32.xlu0 %v6709_v57, %s5561_s27  ;;  %v888_v16 = vcombine.high %v863_v49, %v879_v38  ;;  %v887_v36 = vcombine.low %v863_v49, %v879_v38 }
 0x2ed   : > { %v6723_v17 = vpop.permute.xlu1 %3937 }
 0x2ee   : > { %8915 = vst [vmem:[#allocation92_spill] sm:$0xff] %v6723_v17  ;;  %v6728_v61 = vpop.permute.xlu0 %1613  ;;  %v2197_v17 = vrot.slane %v5537_v46, %v5771_v15  ;;  %v902_v54 = vrot.slane %v888_v16, %v6177_v14  ;;  %v3714_v46 = vcombine.high %v6743_v48, %v6736_v23  ;;  %v6774_v49 = vrot.slane %v887_v36, %v6177_v14 }
 0x2ef   : > { %3782 = vrot.lane.b32.xlu1 %v3610_v37, %s5560_s26  ;;  %v6752_v37 = vrot.slane %v3730_v8, %v6177_v14  ;;  %v6766_v8 = vrot.slane %v5546_v22, %v5771_v15  ;;  %v903_v36 = vcombine.low %v6559_v2, %v6586_v60 }
 0x2f0   : > { %2414 = vrot.lane.b32.xlu0 %v6731_v50, %s5561_s27  ;;  %v2222_v32 = vcombine.high %v2197_v17, %v2213_v63  ;;  %v6771_v38 = vrot.slane %v3714_v46, %v6177_v14  ;;  %8920 = vst [vmem:[#allocation97_spill] sm:$0xff] %v6774_v49  ;;  %v920_v2 = vcombine.high %v902_v54, %v8830_v45 }
 0x2f1   : > { %v6745_v9 = vpop.permute.xlu1 %2537 }
 0x2f2   : > { %8916 = vst [vmem:[#allocation93_spill] sm:$0xff] %v6745_v9  ;;  %v6749_v6 = vpop.permute.xlu0 %3011  ;;  %v5545_v9 = vld [vmem:[#allocation2 + $0x19] ss:$80 sps:$4 sm:$0xff]   ;;  %v6763_v4 = vrot.slane %v2222_v32, %v6177_v14 }
 0x2f3   : > { %8917 = vst [vmem:[#allocation94_spill] sm:$0xff] %v6749_v6  ;;  %1000 = vrot.lane.b32.xlu1 %v902_v54, %s5561_s27  ;;  %v2238_v6 = vcombine.high %v2204_v44, %v2220_v0  ;;  %v6779_v40 = vrot.slane %v5545_v9, %v5771_v15  ;;  %v2221_v9 = vcombine.low %v2197_v17, %v2213_v63  ;;  %v8926_v17 = vld [vmem:[#allocation38_spill] sm:$0xff] }
 0x2f4   : > { %3838 = vrot.lane.b32.xlu0 %v6752_v37, %s5561_s27  ;;  %v3661_v54 = vcombine.low %v6643_v26, %v6628_v39  ;;  %v8931_v39 = vld [vmem:[#allocation41_spill] sm:$0xff] }
 0x2f5   : > { %v6760_v16 = vpop.permute.xlu1 %4441  ;;  %v2252_v22 = vrot.slane %v2238_v6, %v6177_v14  ;;  %v2290_v46 = vcombine.high %v6779_v40, %v6766_v8  ;;  %v6806_v60 = vrot.slane %v2221_v9, %v6177_v14 }
 0x2f6   : > { %8918 = vst [vmem:[#allocation95_spill] sm:$0xff] %v6760_v16  ;;  %v6768_v47 = vpop.permute.xlu0 %3931  ;;  %v919_v16 = vcombine.high %v6774_v49, %v8830_v45  ;;  %v2237_v49 = vcombine.low %v2204_v44, %v2220_v0 }
 0x2f7   : > { %8919 = vst [vmem:[#allocation96_spill] sm:$0xff] %v6768_v47  ;;  %2378 = vrot.lane.b32.xlu1 %v6763_v4, %s5561_s27  ;;  %v6799_v6 = vrot.slane %v2290_v46, %v6177_v14  ;;  %8925 = vst [vmem:[#allocation102_spill] sm:$0xff] %v6806_v60  ;;  %v2253_v44 = vcombine.high %v6806_v60, %v8830_v45  ;;  %v8933_v60 = vld [vmem:[#allocation19_spill] sm:$0xff] }
 0x2f8   : > { %3826 = vrot.lane.b32.xlu0 %v6771_v38, %s5561_s27 }
 0x2f9   : > { %v6783_v32 = vpop.permute.xlu1 %3019 }
 0x2fa   : > { %8921 = vst [vmem:[#allocation98_spill] sm:$0xff] %v6783_v32  ;;  %v6790_v47 = vpop.permute.xlu0 %2531  ;;  %v6802_v32 = vrot.slane %v903_v36, %v6177_v14  ;;  %v8928_v36 = vld [vmem:[#allocation42_spill] sm:$0xff] }
 0x2fb   : > { %8922 = vst [vmem:[#allocation99_spill] sm:$0xff] %v6790_v47  ;;  %2390 = vrot.lane.b32.xlu1 %v2252_v22, %s5561_s27  ;;  %v2762_v63 = vcombine.high %v8926_v17, %v6790_v47  ;;  %v6826_v17 = vrot.slane %v2237_v49, %v6177_v14  ;;  %v3645_v49 = vcombine.low %v6677_v51, %v6667_v53  ;;  %v8935_v53 = vld [vmem:[#allocation45_spill] sm:$0xff] }
 0x2fc   : > { %996 = vrot.lane.b32.xlu0 %v919_v16, %s5562_s28  ;;  %8924 = vst [vmem:[#allocation101_spill] sm:$0xff] %v6802_v32  ;;  %v921_v46 = vcombine.high %v6802_v32, %v8830_v45  ;;  %v1774_v32 = vcombine.high %v8933_v60, %v6433_v34  ;;  %v2256_v51 = vcombine.high %v2252_v22, %v8830_v45 }
 0x2fd   : > { %v6796_v43 = vpop.permute.xlu1 %3939 }
 0x2fe   : > { %8923 = vst [vmem:[#allocation100_spill] sm:$0xff] %v6796_v43  ;;  %v4436_v33 = vpop.permute.xlu0 %4435  ;;  %v6840_v43 = vrot.slane %v3661_v54, %v6177_v14 }
 0x2ff   : > { %2402 = vrot.lane.b32.xlu1 %v6799_v6, %s5561_s27  ;;  %v4665_v26 = vcombine.low %v8931_v39, %v4436_v33 }
 0x300   : > { %1004 = vrot.lane.b32.xlu0 %v920_v2, %s5560_s26  ;;  %v6830_v2 = vrot.slane %v2762_v63, %v5771_v15  ;;  %8932 = vst [vmem:[#allocation41_spill] sm:$0xff] %v6840_v43  ;;  %v4666_v63 = vcombine.high %v8931_v39, %v4436_v33 }
 0x301   : > { %v6813_v16 = vpop.permute.xlu1 %2539  ;;  %v6861_v39 = vrot.slane %v4665_v26, %v5771_v15 }
 0x302   : > { %8927 = vst [vmem:[#allocation103_spill] sm:$0xff] %v6813_v16  ;;  %v2778_v9 = vcombine.high %v8928_v36, %v6813_v16  ;;  %v6821_v0 = vpop.permute.xlu0 %1113  ;;  %8929 = vst [vmem:[#allocation104_spill] sm:$0xff] %v6830_v2  ;;  %v922_v16 = vcombine.high %v6662_v1, %v8830_v45  ;;  %v8934_v1 = vld [vmem:[#allocation44_spill] sm:$0xff]  ;;  %v3679_v2 = vcombine.high %v6840_v43, %v8830_v45 }
 0x303   : > { %1008 = vrot.lane.b32.xlu1 %v921_v46, %s5562_s28  ;;  %8936 = vst [vmem:[#allocation19_spill] sm:$0xff] %v6861_v39  ;;  %v6883_v43 = vrot.slane %v1774_v32, %v5771_v15  ;;  %v8941_v32 = vld [vmem:[#allocation35_spill] sm:$0xff] }
 0x304   : > { %v6833_v47 = vrot.slane %v2778_v9, %v5771_v15  ;;  %2374 = vrot.lane.b32.xlu0 %v2253_v44, %s5562_s28  ;;  %v2255_v44 = vcombine.high %v6826_v17, %v8830_v45 }
 0x305   : > { %v4444_v36 = vpop.permute.xlu1 %4443 }
 0x306   : > { %8930 = vst [vmem:[#allocation105_spill] sm:$0xff] %v6833_v47  ;;  %v6847_v9 = vpop.permute.xlu0 %1617  ;;  %v4681_v11 = vcombine.low %v8934_v1, %v4444_v36  ;;  %v4682_v54 = vcombine.high %v8934_v1, %v4444_v36  ;;  %v6866_v47 = vrot.slane %v3645_v49, %v6177_v14  ;;  %v6871_v36 = vrot.slane %v4666_v63, %v5771_v15 }
 0x307   : > { %1016 = vrot.lane.b32.xlu1 %v922_v16, %s5560_s26  ;;  %v1790_v33 = vcombine.high %v8935_v53, %v6847_v9  ;;  %v2305_v16 = vcombine.low %v6699_v5, %v6693_v24  ;;  %v3680_v5 = vcombine.high %v6688_v7, %v8830_v45  ;;  %v8946_v7 = vld [vmem:[#allocation6_spill] sm:$0xff] }
 0x308   : > { %2386 = vrot.lane.b32.xlu0 %v2255_v44, %s5562_s28  ;;  %8937 = vst [vmem:[#allocation44_spill] sm:$0xff] %v6866_v47  ;;  %8938 = vst [vmem:[#allocation45_spill] sm:$0xff] %v6871_v36  ;;  %v6874_v44 = vrot.slane %v4681_v11, %v5771_v15  ;;  %v6877_v22 = vrot.slane %v4682_v54, %v5771_v15  ;;  %v3677_v63 = vcombine.high %v6866_v47, %v8830_v45 }
 0x309   : > { %v933_v46 = vpop.permute.xlu1 %932  ;;  %v6880_v26 = vrot.slane %v1790_v33, %v5771_v15  ;;  %v2254_v33 = vcombine.high %v6763_v4, %v8830_v45  ;;  %v6900_v24 = vrot.slane %v2305_v16, %v6177_v14 }
 0x30a   : > { %8939 = vst [vmem:[#allocation106_spill] sm:$0xff] %v6874_v44  ;;  %8940 = vst [vmem:[#allocation107_spill] sm:$0xff] %v6877_v22  ;;  %v929_v1 = vpop.permute.xlu0 %928 }
 0x30b   : > { %3810 = vrot.lane.b32.xlu1 %v3679_v2, %s5562_s28  ;;  %8942 = vst [vmem:[#allocation35_spill] sm:$0xff] %v6900_v24 }
 0x30c   : > { %2394 = vrot.lane.b32.xlu0 %v2256_v51, %s5560_s26 }
 0x30d   : > { %v937_v49 = vpop.permute.xlu1 %936 }
 0x30e   : > { %v1024_v54 = vsel %vm1019_vm3, %v8941_v32, %v937_v49  ;;  %v941_v2 = vpop.permute.xlu0 %940  ;;  %v2289_v49 = vcombine.low %v6779_v40, %v6766_v8  ;;  %v8943_v32 = vld [vmem:[#allocation29_spill] sm:$0xff] }
 0x30f   : > { %3798 = vrot.lane.b32.xlu1 %v3677_v63, %s5562_s28  ;;  %v1025_v51 = vsel %vm385_vm1, %v1024_v54, %v941_v2  ;;  %v1150_v4 = vcombine.high %v8943_v32, %v6706_v56  ;;  %v2323_v63 = vcombine.high %v6900_v24, %v8830_v45  ;;  %v8945_v2 = vld [vmem:[#allocation47_spill] sm:$0xff] }
 0x310   : > { %2382 = vrot.lane.b32.xlu0 %v2254_v33, %s5560_s26  ;;  %v8944_v33 = vld [vmem:[#allocation39_spill] sm:$0xff]  ;;  %v1134_v22 = vcombine.high %v8946_v7, %v8945_v2 }
 0x311   : > { %v945_v11 = vpop.permute.xlu1 %944 }
 0x312   : > { %v1026_v16 = vsel %vm1022_vm4, %v1025_v51, %v945_v11  ;;  %v925_v36 = vpop.permute.xlu0 %924  ;;  %v3678_v51 = vcombine.high %v6709_v57, %v8830_v45  ;;  %v2324_v57 = vcombine.high %v6731_v50, %v8830_v45 }
 0x313   : > { %1046 = vst [vmem:[#allocation3 + $0x8] sm:$0xf] %v1026_v16  ;;  %v1020_v54 = vsel %vm1019_vm3, %v8944_v33, %v925_v36  ;;  %3818 = vrot.lane.b32.xlu1 %v3680_v5, %s5560_s26  ;;  %v6927_v16 = vrot.slane %v2289_v49, %v6177_v14  ;;  %v3729_v36 = vcombine.low %v6721_v3, %v6714_v13  ;;  %v8950_v3 = vld [vmem:[#allocation8_spill] sm:$0xff] }
 0x314   : > { %v1021_v8 = vsel %vm385_vm1, %v1020_v54, %v929_v1  ;;  %2410 = vrot.lane.b32.xlu0 %v2323_v63, %s5562_s28  ;;  %v1149_v5 = vcombine.low %v8943_v32, %v6706_v56  ;;  %v6934_v1 = vrot.slane %v1150_v4, %v5771_v15  ;;  %v8948_v63 = vld [vmem:[#allocation31_spill] sm:$0xff]  ;;  %v1133_v49 = vcombine.low %v8946_v7, %v8945_v2  ;;  %v8949_v56 = vld [vmem:[#allocation50_spill] sm:$0xff] }
 0x315   : > { %v1023_v40 = vsel %vm1022_vm4, %v1021_v8, %v933_v46  ;;  %v6922_v11 = vpop.permute.xlu1 %976  ;;  %8947 = vst [vmem:[#allocation29_spill] sm:$0xff] %v6927_v16  ;;  %v1654_v46 = vcombine.high %v8948_v63, %v6728_v61  ;;  %v6944_v13 = vrot.slane %v1134_v22, %v5771_v15  ;;  %v1638_v32 = vcombine.high %v8950_v3, %v8949_v56 }
 0x316   : > { %1045 = vst [vmem:[#allocation3] sm:$0xf] %v1023_v40  ;;  %v989_v33 = vpop.permute.xlu0 %988  ;;  %v2321_v54 = vcombine.high %v6927_v16, %v8830_v45  ;;  %v6954_v50 = vrot.slane %v3729_v36, %v6177_v14  ;;  %v3713_v8 = vcombine.low %v6743_v48, %v6736_v23  ;;  %v1157_v2 = vrot.slane %v1149_v5, %v5771_v15 }
 0x317   : > { %3806 = vrot.lane.b32.xlu1 %v3678_v51, %s5560_s26  ;;  %v1182_v22 = vcombine.high %v6944_v13, %v6934_v1  ;;  %v6962_v7 = vrot.slane %v1654_v46, %v5771_v15  ;;  %v2322_v51 = vcombine.high %v6799_v6, %v8830_v45  ;;  %v1141_v36 = vrot.slane %v1133_v49, %v5771_v15 }
 0x318   : > { %2418 = vrot.lane.b32.xlu0 %v2324_v57, %s5560_s26  ;;  %8951 = vst [vmem:[#allocation39_spill] sm:$0xff] %v6954_v50  ;;  %v6969_v57 = vrot.slane %v1638_v32, %v5771_v15  ;;  %v3747_v48 = vcombine.high %v6954_v50, %v8830_v45  ;;  %v6977_v5 = vrot.slane %v3713_v8, %v6177_v14 }
 0x319   : > { %v6949_v4 = vpop.permute.xlu1 %952  ;;  %v1165_v46 = vcombine.low %v1141_v36, %v1157_v2  ;;  %v1653_v6 = vcombine.low %v8948_v63, %v6728_v61  ;;  %v6986_v32 = vrot.slane %v1182_v22, %v6177_v14  ;;  %v1166_v63 = vcombine.high %v1141_v36, %v1157_v2 }
 0x31a   : > { %v965_v40 = vpop.permute.xlu0 %964  ;;  %8952 = vst [vmem:[#allocation47_spill] sm:$0xff] %v6977_v5  ;;  %v1686_v49 = vcombine.high %v6969_v57, %v6962_v7  ;;  %v3745_v61 = vcombine.high %v6977_v5, %v8830_v45  ;;  %v3748_v2 = vcombine.high %v6752_v37, %v8830_v45  ;;  %v3746_v37 = vcombine.high %v6771_v38, %v8830_v45 }
 0x31b   : > { %2398 = vrot.lane.b32.xlu1 %v2321_v54, %s5562_s28  ;;  %v1661_v39 = vrot.slane %v1653_v6, %v5771_v15  ;;  %v8954_v6 = vld [vmem:[#allocation49_spill] sm:$0xff]  ;;  %v1181_v38 = vcombine.low %v6944_v13, %v6934_v1 }
 0x31c   : > { %2406 = vrot.lane.b32.xlu0 %v2322_v51, %s5560_s26  ;;  %v1637_v51 = vcombine.low %v8950_v3, %v8949_v56  ;;  %v7001_v22 = vrot.slane %v1686_v49, %v6177_v14 }
 0x31d   : > { %v6972_v23 = vpop.permute.xlu1 %2330 }
 0x31e   : > { %v6983_v54 = vpop.permute.xlu0 %2342  ;;  %v1645_v56 = vrot.slane %v1637_v51, %v5771_v15 }
 0x31f   : > { %3834 = vrot.lane.b32.xlu1 %v3747_v48, %s5562_s28  ;;  %v7004_v48 = vrot.slane %v1165_v46, %v6177_v14 }
 0x320   : > { %1422 = vrot.lane.b32.xlu0 %v6986_v32, %s5561_s27  ;;  %v1669_v36 = vcombine.low %v1645_v56, %v1661_v39  ;;  %v1670_v51 = vcombine.high %v1645_v56, %v1661_v39  ;;  %v8957_v39 = vld [vmem:[#allocation18_spill] sm:$0xff] }
 0x321   : > { %v6993_v8 = vpop.permute.xlu1 %2354  ;;  %8953 = vst [vmem:[#allocation6_spill] sm:$0xff] %v7004_v48  ;;  %v1197_v46 = vcombine.high %v7004_v48, %v8830_v45 }
 0x322   : > { %v6998_v44 = vpop.permute.xlu0 %2366 }
 0x323   : > { %3822 = vrot.lane.b32.xlu1 %v3745_v61, %s5562_s28  ;;  %v1180_v61 = vrot.slane %v1166_v63, %v6177_v14 }
 0x324   : > { %1926 = vrot.lane.b32.xlu0 %v7001_v22, %s5561_s27 }
 0x325   : > { %v985_v3 = vpop.permute.xlu1 %984  ;;  %v1198_v63 = vcombine.high %v1180_v61, %v8830_v45 }
 0x326   : > { %v1036_v5 = vsel %vm1019_vm3, %v8954_v6, %v985_v3  ;;  %v7014_v49 = vpop.permute.xlu0 %3766  ;;  %v8955_v3 = vld [vmem:[#allocation43_spill] sm:$0xff] }
 0x327   : > { %3842 = vrot.lane.b32.xlu1 %v3748_v2, %s5560_s26  ;;  %v1037_v50 = vsel %vm385_vm1, %v1036_v5, %v989_v33  ;;  %v1286_v6 = vcombine.high %v8955_v3, %v6821_v0  ;;  %v7031_v2 = vrot.slane %v1669_v36, %v6177_v14  ;;  %v1270_v33 = vcombine.high %v8957_v39, %v6414_v58 }
 0x328   : > { %1406 = vrot.lane.b32.xlu0 %v1197_v46, %s5562_s28  ;;  %v1684_v46 = vrot.slane %v1670_v51, %v6177_v14 }
 0x329   : > { %v993_v16 = vpop.permute.xlu1 %992  ;;  %8956 = vst [vmem:[#allocation31_spill] sm:$0xff] %v7031_v2 }
 0x32a   : > { %v1038_v24 = vsel %vm1022_vm4, %v1037_v50, %v993_v16  ;;  %v7027_v47 = vpop.permute.xlu0 %3754  ;;  %v7040_v16 = vrot.slane %v1286_v6, %v5771_v15  ;;  %v8958_v50 = vld [vmem:[#allocation54_spill] sm:$0xff]  ;;  %v7056_v6 = vrot.slane %v1181_v38, %v6177_v14  ;;  %v1822_v38 = vcombine.high %v6883_v43, %v6880_v26 }
 0x32b   : > { %1050 = vst [vmem:[#allocation3 + $0x28] sm:$0xf] %v1038_v24  ;;  %3830 = vrot.lane.b32.xlu1 %v3746_v37, %s5560_s26  ;;  %v1701_v24 = vcombine.high %v7031_v2, %v8830_v45  ;;  %v7051_v37 = vrot.slane %v1270_v33, %v5771_v15 }
 0x32c   : > { %1414 = vrot.lane.b32.xlu0 %v1198_v63, %s5560_s26  ;;  %8959 = vst [vmem:[#allocation50_spill] sm:$0xff] %v7056_v6  ;;  %v1199_v33 = vcombine.high %v7056_v6, %v8830_v45 }
 0x32d   : > { %v961_v5 = vpop.permute.xlu1 %960  ;;  %v1318_v63 = vcombine.high %v7051_v37, %v7040_v16 }
 0x32e   : > { %v1030_v56 = vsel %vm1019_vm3, %v8958_v50, %v961_v5  ;;  %v7044_v36 = vpop.permute.xlu0 %3790 }
 0x32f   : > { %1410 = vrot.lane.b32.xlu1 %v1180_v61, %s5561_s27  ;;  %v1031_v1 = vsel %vm385_vm1, %v1030_v56, %v965_v40  ;;  %v1702_v61 = vcombine.high %v1684_v46, %v8830_v45  ;;  %v1685_v40 = vcombine.low %v6969_v57, %v6962_v7  ;;  %v1285_v7 = vcombine.low %v8955_v3, %v6821_v0 }
 0x330   : > { %1910 = vrot.lane.b32.xlu0 %v1701_v24, %s5562_s28  ;;  %v7097_v0 = vrot.slane %v1822_v38, %v6177_v14 }
 0x331   : > { %v969_v13 = vpop.permute.xlu1 %968 }
 0x332   : > { %v1032_v5 = vsel %vm1022_vm4, %v1031_v1, %v969_v13  ;;  %v7061_v50 = vpop.permute.xlu0 %3778  ;;  %v7075_v1 = vrot.slane %v1318_v63, %v6177_v14  ;;  %v7089_v63 = vrot.slane %v1685_v40, %v6177_v14  ;;  %v7106_v40 = vrot.slane %v1285_v7, %v5771_v15  ;;  %v8961_v7 = vld [vmem:[#allocation46_spill] sm:$0xff] }
 0x333   : > { %1048 = vst [vmem:[#allocation3 + $0x18] sm:$0xf] %v1032_v5  ;;  %1914 = vrot.lane.b32.xlu1 %v1684_v46, %s5561_s27 }
 0x334   : > { %1918 = vrot.lane.b32.xlu0 %v1702_v61, %s5560_s26  ;;  %8960 = vst [vmem:[#allocation8_spill] sm:$0xff] %v7089_v63 }
 0x335   : > { %v2339_v51 = vpop.permute.xlu1 %2338 }
 0x336   : > { %v2424_v56 = vsel %vm1019_vm3, %v6381_v27, %v2339_v51  ;;  %v973_v24 = vpop.permute.xlu0 %972  ;;  %v1200_v27 = vcombine.high %v6986_v32, %v8830_v45 }
 0x337   : > { %v1033_v46 = vsel %vm1019_vm3, %v6397_v20, %v973_v24  ;;  %1418 = vrot.lane.b32.xlu1 %v1199_v33, %s5562_s28  ;;  %v2425_v57 = vsel %vm385_vm1, %v2424_v56, %v6983_v54  ;;  %v1250_v20 = vcombine.high %v6365_v12, %v6368_v30  ;;  %v1269_v54 = vcombine.low %v8957_v39, %v6414_v58 }
 0x338   : > { %1470 = vrot.lane.b32.xlu0 %v7075_v1, %s5561_s27  ;;  %v1034_v51 = vsel %vm385_vm1, %v1033_v46, %v6922_v11  ;;  %v1789_v11 = vcombine.low %v8935_v53, %v6847_v9  ;;  %v1703_v58 = vcombine.high %v7089_v63, %v8830_v45  ;;  %v1754_v39 = vcombine.high %v6405_v25, %v6408_v42 }
 0x339   : > { %v2347_v13 = vpop.permute.xlu1 %2346  ;;  %v7117_v24 = vrot.slane %v1250_v20, %v6177_v14  ;;  %v7120_v46 = vrot.slane %v1269_v54, %v5771_v15  ;;  %v1773_v9 = vcombine.low %v8933_v60, %v6433_v34  ;;  %v1704_v60 = vcombine.high %v7001_v22, %v8830_v45 }
 0x33a   : > { %v2426_v5 = vsel %vm1022_vm4, %v2425_v57, %v2347_v13  ;;  %v981_v61 = vpop.permute.xlu0 %980  ;;  %v8962_v57 = vld [vmem:[#allocation5_spill] sm:$0xff] }
 0x33b   : > { %v2454_v3 = vrot.slane %v2426_v5, 4  ;;  %v1035_v32 = vsel %vm1022_vm4, %v1034_v51, %v981_v61  ;;  %1426 = vrot.lane.b32.xlu1 %v1200_v27, %s5560_s26  ;;  %v1201_v13 = vcombine.low %v8962_v57, %v8961_v7  ;;  %v8963_v27 = vld [vmem:[#allocation56_spill] sm:$0xff]  ;;  %v1302_v20 = vcombine.high %v7120_v46, %v7106_v40 }
 0x33c   : > { %1049 = vst [vmem:[#allocation3 + $0x20] sm:$0xf] %v1035_v32  ;;  %1974 = vrot.lane.b32.xlu0 %v7097_v0, %s5561_s27  ;;  %v7136_v61 = vrot.slane %v1789_v11, %v5771_v15  ;;  %v3990_v51 = vcombine.high %v6450_v31, %v6453_v29  ;;  %v7151_v11 = vrot.slane %v1773_v9, %v5771_v15 }
 0x33d   : > { %2470 = vst [vmem:[#allocation3 + $0x48] sm:$0xf0] %v2454_v3  ;;  %v2363_v33 = vpop.permute.xlu1 %2362  ;;  %v7168_v7 = vrot.slane %v1201_v13, %v5771_v15  ;;  %v2590_v57 = vcombine.high %v6467_v55, %v6470_v41 }
 0x33e   : > { %v2430_v38 = vsel %vm1019_vm3, %v6431_v19, %v2363_v33  ;;  %v949_v56 = vpop.permute.xlu0 %948  ;;  %v8964_v19 = vld [vmem:[#allocation13_spill] sm:$0xff]  ;;  %v7148_v33 = vrot.slane %v1754_v39, %v6177_v14  ;;  %v1806_v39 = vcombine.high %v7151_v11, %v7136_v61 }
 0x33f   : > { %v1027_v53 = vsel %vm1019_vm3, %v6441_v59, %v949_v56  ;;  %1922 = vrot.lane.b32.xlu1 %v1703_v58, %s5562_s28  ;;  %v1217_v5 = vcombine.low %v8964_v19, %v8963_v27  ;;  %v2431_v34 = vsel %vm385_vm1, %v2430_v38, %v6998_v44  ;;  %v8965_v38 = vld [vmem:[#allocation58_spill] sm:$0xff]  ;;  %v7173_v19 = vrot.slane %v3990_v51, %v6177_v14  ;;  %v8970_v51 = vld [vmem:[#allocation60_spill] sm:$0xff] }
 0x340   : > { %1446 = vrot.lane.b32.xlu0 %v7117_v24, %s5561_s27  ;;  %v1028_v32 = vsel %vm385_vm1, %v1027_v53, %v6949_v4  ;;  %v8966_v4 = vld [vmem:[#allocation15_spill] sm:$0xff]  ;;  %v7165_v53 = vrot.slane %v1302_v20, %v6177_v14 }
 0x341   : > { %v2371_v59 = vpop.permute.xlu1 %2370  ;;  %v7156_v22 = vrot.slane %v1217_v5, %v5771_v15  ;;  %v1721_v56 = vcombine.low %v8966_v4, %v8965_v38  ;;  %8967 = vst [vmem:[#allocation49_spill] sm:$0xff] %v7173_v19  ;;  %v8968_v5 = vld [vmem:[#allocation48_spill] sm:$0xff] }
 0x342   : > { %v2432_v54 = vsel %vm1022_vm4, %v2431_v34, %v2371_v59  ;;  %v957_v3 = vpop.permute.xlu0 %956  ;;  %v8969_v34 = vld [vmem:[#allocation7_spill] sm:$0xff] }
 0x343   : > { %v2456_v44 = vrot.slane %v2432_v54, 4  ;;  %v1029_v58 = vsel %vm1022_vm4, %v1028_v32, %v957_v3  ;;  %1930 = vrot.lane.b32.xlu1 %v1704_v60, %s5560_s26  ;;  %v1705_v59 = vcombine.low %v8969_v34, %v8968_v5  ;;  %v1234_v13 = vcombine.high %v7168_v7, %v7156_v22  ;;  %v8971_v54 = vld [vmem:[#allocation17_spill] sm:$0xff]  ;;  %v8973_v5 = vld [vmem:[#allocation52_spill] sm:$0xff]  ;;  %v8974_v34 = vld [vmem:[#allocation10_spill] sm:$0xff] }
 0x344   : > { %1047 = vst [vmem:[#allocation3 + $0x10] sm:$0xf] %v1029_v58  ;;  %1950 = vrot.lane.b32.xlu0 %v7148_v33, %s5561_s27  ;;  %v7186_v20 = vrot.slane %v1721_v56, %v5771_v15  ;;  %v3054_v3 = vcombine.high %v8971_v54, %v8970_v51  ;;  %v7200_v56 = vrot.slane %v2590_v57, %v6177_v14 }
 0x345   : > { %2472 = vst [vmem:[#allocation3 + $0x58] sm:$0xf0] %v2456_v44  ;;  %v3763_v9 = vpop.permute.xlu1 %3762  ;;  %v7191_v44 = vrot.slane %v1806_v39, %v6177_v14  ;;  %v3038_v39 = vcombine.high %v8974_v34, %v8973_v5  ;;  %v3974_v57 = vcombine.high %v6102_v10, %v6424_v21  ;;  %v8978_v10 = vld [vmem:[#allocation55_spill] sm:$0xff]  ;;  %v8979_v21 = vld [vmem:[#allocation12_spill] sm:$0xff] }
 0x346   : > { %v2327_v27 = vpop.permute.xlu0 %2326  ;;  %v3848_v58 = vsel %vm1019_vm3, %v6483_v52, %v3763_v9  ;;  %8972 = vst [vmem:[#allocation43_spill] sm:$0xff] %v7200_v56  ;;  %v7213_v52 = vrot.slane %v1234_v13, %v6177_v14  ;;  %v7218_v9 = vrot.slane %v3054_v3, %v5771_v15 }
 0x347   : > { %v2421_v60 = vsel %vm1019_vm3, %v6493_v62, %v2327_v27  ;;  %1458 = vrot.lane.b32.xlu1 %v7165_v53, %s5561_s27  ;;  %v4510_v62 = vcombine.high %v6502_v35, %v6505_v28  ;;  %v7203_v27 = vrot.slane %v1705_v59, %v5771_v15  ;;  %v3849_v59 = vsel %vm385_vm1, %v3848_v58, %v7014_v49  ;;  %v8980_v58 = vld [vmem:[#allocation70_spill] sm:$0xff] }
 0x348   : > { %4234 = vrot.lane.b32.xlu0 %v7173_v19, %s5561_s27  ;;  %v2422_v4 = vsel %vm385_vm1, %v2421_v60, %v6972_v23  ;;  %v7233_v35 = vrot.slane %v3038_v39, %v5771_v15  ;;  %v3958_v49 = vcombine.high %v8979_v21, %v8978_v10 }
 0x349   : > { %v3751_v32 = vpop.permute.xlu1 %3750  ;;  %v1738_v23 = vcombine.high %v7203_v27, %v7186_v20  ;;  %v7230_v3 = vrot.slane %v4510_v62, %v6177_v14 }
 0x34a   : > { %v2335_v38 = vpop.permute.xlu0 %2334  ;;  %v3086_v62 = vcombine.high %v7233_v35, %v7218_v9 }
 0x34b   : > { %v2423_v63 = vsel %vm1022_vm4, %v2422_v4, %v2335_v38  ;;  %1962 = vrot.lane.b32.xlu1 %v7191_v44, %s5561_s27  ;;  %v8976_v4 = vld [vmem:[#allocation65_spill] sm:$0xff]  ;;  %8977 = vst [vmem:[#allocation18_spill] sm:$0xff] %v7230_v3 }
 0x34c   : > { %v2453_v6 = vrot.slane %v2423_v63, 4  ;;  %2834 = vrot.lane.b32.xlu0 %v7200_v56, %s5561_s27  ;;  %v8975_v63 = vld [vmem:[#allocation67_spill] sm:$0xff]  ;;  %v3845_v13 = vsel %vm1019_vm3, %v8976_v4, %v3751_v32  ;;  %v3053_v32 = vcombine.low %v8971_v54, %v8970_v51 }
 0x34d   : > { %v3771_v60 = vpop.permute.xlu1 %3770  ;;  %v3154_v38 = vcombine.high %v8975_v63, %v6534_v18  ;;  %v8998_v56 = vld [vmem:[#allocation59_spill] sm:$0xff] }
 0x34e   : > { %2469 = vst [vmem:[#allocation3 + $0x40] sm:$0xf0] %v2453_v6  ;;  %v3850_v2 = vsel %vm1022_vm4, %v3849_v59, %v3771_v60  ;;  %v2351_v28 = vpop.permute.xlu0 %2350  ;;  %v3037_v6 = vcombine.low %v8974_v34, %v8973_v5  ;;  %v7255_v59 = vrot.slane %v1738_v23, %v6177_v14  ;;  %v8981_v5 = vld [vmem:[#allocation74_spill] sm:$0xff]  ;;  %v8982_v34 = vld [vmem:[#allocation72_spill] sm:$0xff]  ;;  %v7272_v23 = vrot.slane %v3053_v32, %v5771_v15  ;;  %v8987_v32 = vld [vmem:[#allocation71_spill] sm:$0xff] }
 0x34f   : > { %3870 = vst [vmem:[#allocation3 + $0xc8] sm:$0xf] %v3850_v2  ;;  %v2427_v18 = vsel %vm1019_vm3, %v8980_v58, %v2351_v28  ;;  %1434 = vrot.lane.b32.xlu1 %v7213_v52, %s5561_s27  ;;  %v7250_v2 = vrot.slane %v3974_v57, %v5771_v15  ;;  %v3846_v28 = vsel %vm385_vm1, %v3845_v13, %v7027_v47 }
 0x350   : > { %4750 = vrot.lane.b32.xlu0 %v7230_v3, %s5561_s27  ;;  %v4074_v60 = vcombine.high %v8982_v34, %v8981_v5  ;;  %v2428_v4 = vsel %vm385_vm1, %v2427_v18, %v6993_v8  ;;  %v7263_v10 = vrot.slane %v3154_v38, %v6177_v14  ;;  %v7266_v57 = vrot.slane %v3958_v49, %v5771_v15  ;;  %v8984_v8 = vld [vmem:[#allocation61_spill] sm:$0xff]  ;;  %v8985_v38 = vld [vmem:[#allocation20_spill] sm:$0xff] }
 0x351   : > { %v3759_v39 = vpop.permute.xlu1 %3758  ;;  %v2574_v21 = vcombine.high %v8985_v38, %v8984_v8  ;;  %v7281_v58 = vrot.slane %v3086_v62, %v6177_v14  ;;  %v8992_v8 = vld [vmem:[#allocation21_spill] sm:$0xff] }
 0x352   : > { %v3847_v51 = vsel %vm1022_vm4, %v3846_v28, %v3759_v39  ;;  %v2359_v54 = vpop.permute.xlu0 %2358  ;;  %8983 = vst [vmem:[#allocation54_spill] sm:$0xff] %v7263_v10  ;;  %v4006_v18 = vcombine.high %v7266_v57, %v7250_v2  ;;  %v7284_v28 = vrot.slane %v3037_v6, %v5771_v15  ;;  %v8986_v39 = vld [vmem:[#allocation73_spill] sm:$0xff] }
 0x353   : > { %3869 = vst [vmem:[#allocation3 + $0xc0] sm:$0xf] %v3847_v51  ;;  %v2429_v47 = vsel %vm1022_vm4, %v2428_v4, %v2359_v54  ;;  %1938 = vrot.lane.b32.xlu1 %v7255_v59, %s5561_s27  ;;  %v4058_v51 = vcombine.high %v8987_v32, %v8986_v39  ;;  %v7291_v4 = vrot.slane %v4074_v60, %v6177_v14  ;;  %v8993_v60 = vld [vmem:[#allocation79_spill] sm:$0xff]  ;;  %v8994_v39 = vld [vmem:[#allocation77_spill] sm:$0xff] }
 0x354   : > { %v2455_v13 = vrot.slane %v2429_v47, 4  ;;  %3350 = vrot.lane.b32.xlu0 %v7263_v10, %s5561_s27  ;;  %v8989_v47 = vld [vmem:[#allocation57_spill] sm:$0xff]  ;;  %v8990_v10 = vld [vmem:[#allocation14_spill] sm:$0xff]  ;;  %v3070_v62 = vcombine.high %v7284_v28, %v7272_v23  ;;  %v7302_v6 = vrot.slane %v2574_v21, %v5771_v15  ;;  %v2658_v32 = vcombine.high %v8994_v39, %v8993_v60  ;;  %v9002_v60 = vld [vmem:[#allocation84_spill] sm:$0xff] }
 0x355   : > { %v3787_v49 = vpop.permute.xlu1 %3786  ;;  %8988 = vst [vmem:[#allocation46_spill] sm:$0xff] %v7291_v4  ;;  %v2558_v3 = vcombine.high %v8990_v10, %v8989_v47  ;;  %v7309_v10 = vrot.slane %v4006_v18, %v6177_v14  ;;  %v8996_v47 = vld [vmem:[#allocation76_spill] sm:$0xff] }
 0x356   : > { %2471 = vst [vmem:[#allocation3 + $0x50] sm:$0xf0] %v2455_v13  ;;  %v7288_v54 = vpop.permute.xlu0 %1012  ;;  %v8991_v13 = vld [vmem:[#allocation62_spill] sm:$0xff]  ;;  %v3854_v34 = vsel %vm1019_vm3, %v8996_v47, %v3787_v49  ;;  %v7328_v18 = vrot.slane %v3070_v62, %v6177_v14  ;;  %v1301_v62 = vcombine.low %v7120_v46, %v7106_v40 }
 0x357   : > { %3326 = vrot.lane.b32.xlu1 %v7281_v58, %s5561_s27  ;;  %v4477_v38 = vcombine.low %v8992_v8, %v8991_v13  ;;  %8995 = vst [vmem:[#allocation5_spill] sm:$0xff] %v7309_v10  ;;  %v7319_v21 = vrot.slane %v2558_v3, %v5771_v15  ;;  %v8999_v13 = vld [vmem:[#allocation16_spill] sm:$0xff]  ;;  %v3855_v3 = vsel %vm385_vm1, %v3854_v34, %v7044_v36 }
 0x358   : > { %4270 = vrot.lane.b32.xlu0 %v7291_v4, %s5561_s27  ;;  %v7316_v4 = vrot.slane %v4058_v51, %v6177_v14  ;;  %v4461_v8 = vcombine.low %v8999_v13, %v8998_v56  ;;  %v7338_v56 = vrot.slane %v2658_v32, %v6177_v14  ;;  %v9001_v13 = vld [vmem:[#allocation86_spill] sm:$0xff] }
 0x359   : > { %v3775_v5 = vpop.permute.xlu1 %3774  ;;  %v2606_v49 = vcombine.high %v7319_v21, %v7302_v6  ;;  %v7333_v51 = vrot.slane %v4477_v38, %v5771_v15  ;;  %v4578_v39 = vcombine.high %v9002_v60, %v9001_v13 }
 0x35a   : > { %v7313_v63 = vpop.permute.xlu0 %3814  ;;  %8997 = vst [vmem:[#allocation56_spill] sm:$0xff] %v7316_v4  ;;  %9000 = vst [vmem:[#allocation13_spill] sm:$0xff] %v7338_v56 }
 0x35b   : > { %4246 = vrot.lane.b32.xlu1 %v7309_v10, %s5561_s27  ;;  %v7350_v10 = vrot.slane %v4461_v8, %v5771_v15 }
 0x35c   : > { %4258 = vrot.lane.b32.xlu0 %v7316_v4, %s5561_s27  ;;  %v9003_v4 = vld [vmem:[#allocation82_spill] sm:$0xff] }
 0x35d   : > { %v3795_v47 = vpop.permute.xlu1 %3794  ;;  %v3851_v48 = vsel %vm1019_vm3, %v9003_v4, %v3775_v5  ;;  %v4494_v36 = vcombine.high %v7350_v10, %v7333_v51  ;;  %v7361_v5 = vrot.slane %v2606_v49, %v6177_v14  ;;  %v7370_v4 = vrot.slane %v1301_v62, %v6177_v14 }
 0x35e   : > { %v3856_v19 = vsel %vm1022_vm4, %v3855_v3, %v3795_v47  ;;  %v7347_v38 = vpop.permute.xlu0 %3802  ;;  %v3852_v40 = vsel %vm385_vm1, %v3851_v48, %v7061_v50  ;;  %v9006_v48 = vld [vmem:[#allocation68_spill] sm:$0xff]  ;;  %v9007_v50 = vld [vmem:[#allocation66_spill] sm:$0xff] }
 0x35f   : > { %3872 = vst [vmem:[#allocation3 + $0xd8] sm:$0xf] %v3856_v19  ;;  %3314 = vrot.lane.b32.xlu1 %v7328_v18, %s5561_s27  ;;  %v7367_v19 = vrot.slane %v4578_v39, %v6177_v14  ;;  %9005 = vst [vmem:[#allocation15_spill] sm:$0xff] %v7370_v4  ;;  %v3138_v8 = vcombine.high %v9007_v50, %v9006_v48  ;;  %v7379_v3 = vrot.slane %v4494_v36, %v6177_v14 }
 0x360   : > { %2858 = vrot.lane.b32.xlu0 %v7338_v56, %s5561_s27  ;;  %v1805_v39 = vcombine.low %v7151_v11, %v7136_v61  ;;  %v1333_v62 = vcombine.high %v7370_v4, %v8830_v45  ;;  %v1334_v61 = vcombine.high %v7165_v53, %v8830_v45  ;;  %v9014_v4 = vld [vmem:[#allocation83_spill] sm:$0xff]  ;;  %v1233_v53 = vcombine.low %v7168_v7, %v7156_v22 }
 0x361   : > { %v3783_v46 = vpop.permute.xlu1 %3782  ;;  %9004 = vst [vmem:[#allocation58_spill] sm:$0xff] %v7367_v19  ;;  %9008 = vst [vmem:[#allocation48_spill] sm:$0xff] %v7379_v3  ;;  %v7395_v36 = vrot.slane %v3138_v8, %v6177_v14  ;;  %v1317_v8 = vcombine.low %v7051_v37, %v7040_v16 }
 0x362   : > { %v3853_v34 = vsel %vm1022_vm4, %v3852_v40, %v3783_v46  ;;  %v7364_v32 = vpop.permute.xlu0 %2414  ;;  %v9009_v40 = vld [vmem:[#allocation80_spill] sm:$0xff]  ;;  %v9010_v46 = vld [vmem:[#allocation78_spill] sm:$0xff]  ;;  %v7402_v11 = vrot.slane %v1805_v39, %v6177_v14 }
 0x363   : > { %3871 = vst [vmem:[#allocation3 + $0xd0] sm:$0xf] %v3853_v34  ;;  %2846 = vrot.lane.b32.xlu1 %v7361_v5, %s5561_s27  ;;  %v2674_v34 = vcombine.high %v9010_v46, %v9009_v40  ;;  %9011 = vst [vmem:[#allocation7_spill] sm:$0xff] %v7395_v36 }
 0x364   : > { %4774 = vrot.lane.b32.xlu0 %v7367_v19, %s5561_s27  ;;  %9012 = vst [vmem:[#allocation60_spill] sm:$0xff] %v7402_v11 }
 0x365   : > { %v1001_v49 = vpop.permute.xlu1 %1000  ;;  %v7412_v60 = vrot.slane %v2674_v34, %v6177_v14  ;;  %v7429_v34 = vrot.slane %v1317_v8, %v6177_v14  ;;  %v9016_v8 = vld [vmem:[#allocation101_spill] sm:$0xff] }
 0x366   : > { %v7383_v47 = vpop.permute.xlu0 %3838 }
 0x367   : > { %4738 = vrot.lane.b32.xlu1 %v7379_v3, %s5561_s27  ;;  %v1837_v3 = vcombine.high %v7402_v11, %v8830_v45  ;;  %v1838_v11 = vcombine.high %v7191_v44, %v8830_v45 }
 0x368   : > { %1454 = vrot.lane.b32.xlu0 %v1333_v62, %s5562_s28  ;;  %v9013_v62 = vld [vmem:[#allocation85_spill] sm:$0xff] }
 0x369   : > { %v7392_v19 = vpop.permute.xlu1 %2378  ;;  %v4562_v15 = vcombine.high %v9014_v4, %v9013_v62 }
 0x36a   : > { %v7397_v56 = vpop.permute.xlu0 %3826 }
 0x36b   : > { %3338 = vrot.lane.b32.xlu1 %v7395_v36, %s5561_s27  ;;  %v9015_v36 = vld [vmem:[#allocation97_spill] sm:$0xff]  ;;  %v7426_v37 = vrot.slane %v4562_v15, %v6177_v14 }
 0x36c   : > { %1462 = vrot.lane.b32.xlu0 %v1334_v61, %s5560_s26 }
 0x36d   : > { %v2391_v13 = vpop.permute.xlu1 %2390 }
 0x36e   : > { %v997_v39 = vpop.permute.xlu0 %996 }
 0x36f   : > { %v1039_v61 = vsel %vm1019_vm3, %v9015_v36, %v997_v39  ;;  %2870 = vrot.lane.b32.xlu1 %v7412_v60, %s5561_s27  ;;  %v7435_v36 = vrot.slane %v1233_v53, %v6177_v14 }
 0x370   : > { %1958 = vrot.lane.b32.xlu0 %v1837_v3, %s5562_s28  ;;  %v1040_v22 = vsel %vm385_vm1, %v1039_v61, %v1001_v49  ;;  %v1335_v3 = vcombine.high %v7429_v34, %v8830_v45  ;;  %v1737_v49 = vcombine.low %v7203_v27, %v7186_v20  ;;  %v9017_v20 = vcombine.low %v6883_v43, %v6880_v26 }
 0x371   : > { %v7423_v16 = vpop.permute.xlu1 %2402  ;;  %v1265_v61 = vcombine.high %v7435_v36, %v8830_v45 }
 0x372   : > { %v1005_v7 = vpop.permute.xlu0 %1004  ;;  %v7459_v27 = vrot.slane %v9017_v20, %v6177_v14 }
 0x373   : > { %v1041_v39 = vsel %vm1022_vm4, %v1040_v22, %v1005_v7  ;;  %4762 = vrot.lane.b32.xlu1 %v7426_v37, %s5561_s27  ;;  %v1336_v7 = vcombine.high %v7075_v1, %v8830_v45  ;;  %v3085_v1 = vcombine.low %v7233_v35, %v7218_v9  ;;  %v1840_v9 = vcombine.high %v7097_v0, %v8830_v45 }
 0x374   : > { %1051 = vst [vmem:[#allocation3 + $0x30] sm:$0xf] %v1041_v39  ;;  %1966 = vrot.lane.b32.xlu0 %v1838_v11, %s5560_s26  ;;  %v1839_v26 = vcombine.high %v7459_v27, %v8830_v45 }
 0x375   : > { %v1009_v15 = vpop.permute.xlu1 %1008 }
 0x376   : > { %v1042_v44 = vsel %vm1019_vm3, %v9016_v8, %v1009_v15  ;;  %v2375_v53 = vpop.permute.xlu0 %2374  ;;  %v7465_v8 = vrot.slane %v1737_v49, %v6177_v14 }
 0x377   : > { %1466 = vrot.lane.b32.xlu1 %v1335_v3, %s5562_s28  ;;  %v1043_v11 = vsel %vm385_vm1, %v1042_v44, %v7288_v54  ;;  %v1266_v3 = vcombine.high %v7213_v52, %v8830_v45 }
 0x378   : > { %1430 = vrot.lane.b32.xlu0 %v1265_v61, %s5562_s28  ;;  %v1769_v49 = vcombine.high %v7465_v8, %v8830_v45  ;;  %v9018_v61 = vld [vmem:[#allocation102_spill] sm:$0xff] }
 0x379   : > { %v1017_v22 = vpop.permute.xlu1 %1016 }
 0x37a   : > { %v1044_v39 = vsel %vm1022_vm4, %v1043_v11, %v1017_v22  ;;  %v2387_v15 = vpop.permute.xlu0 %2386 }
 0x37b   : > { %1052 = vst [vmem:[#allocation3 + $0x38] sm:$0xf] %v1044_v39  ;;  %v2436_v54 = vsel %vm1019_vm3, %v6826_v17, %v2387_v15  ;;  %1474 = vrot.lane.b32.xlu1 %v1336_v7, %s5560_s26  ;;  %v2433_v17 = vsel %vm1019_vm3, %v9018_v61, %v2375_v53  ;;  %v3069_v7 = vcombine.low %v7284_v28, %v7272_v23  ;;  %v9020_v53 = vld [vmem:[#allocation41_spill] sm:$0xff] }
 0x37c   : > { %1438 = vrot.lane.b32.xlu0 %v1266_v3, %s5560_s26  ;;  %v2437_v52 = vsel %vm385_vm1, %v2436_v54, %v2391_v13  ;;  %v9019_v13 = vcombine.low %v6365_v12, %v6368_v30  ;;  %v2434_v15 = vsel %vm385_vm1, %v2433_v17, %v7392_v19  ;;  %v1770_v23 = vcombine.high %v7255_v59, %v8830_v45 }
 0x37d   : > { %v3811_v43 = vpop.permute.xlu1 %3810  ;;  %v7500_v28 = vrot.slane %v3085_v1, %v6177_v14  ;;  %v2605_v61 = vcombine.low %v7319_v21, %v7302_v6  ;;  %v9025_v21 = vcombine.low %v6450_v31, %v6453_v29 }
 0x37e   : > { %v2395_v44 = vpop.permute.xlu0 %2394  ;;  %v7491_v20 = vrot.slane %v9019_v13, %v6177_v14  ;;  %v3860_v39 = vsel %vm1019_vm3, %v9020_v53, %v3811_v43  ;;  %v9021_v43 = vld [vmem:[#allocation44_spill] sm:$0xff] }
 0x37f   : > { %v2438_v11 = vsel %vm1022_vm4, %v2437_v52, %v2395_v44  ;;  %1970 = vrot.lane.b32.xlu1 %v1839_v26, %s5562_s28  ;;  %v3861_v30 = vsel %vm385_vm1, %v3860_v39, %v7313_v63  ;;  %v3103_v52 = vcombine.high %v7500_v28, %v8830_v45  ;;  %v7515_v44 = vrot.slane %v3069_v7, %v6177_v14 }
 0x380   : > { %v2458_v22 = vrot.slane %v2438_v11, 4  ;;  %1934 = vrot.lane.b32.xlu0 %v1769_v49, %s5562_s28  ;;  %v1267_v19 = vcombine.high %v7491_v20, %v8830_v45  ;;  %v9023_v49 = vld [vmem:[#allocation35_spill] sm:$0xff]  ;;  %v9024_v7 = vcombine.low %v6405_v25, %v6408_v42 }
 0x381   : > { %v3799_v35 = vpop.permute.xlu1 %3798  ;;  %9022 = vst [vmem:[#allocation17_spill] sm:$0xff] %v7515_v44  ;;  %v3101_v6 = vcombine.high %v7515_v44, %v8830_v45 }
 0x382   : > { %2474 = vst [vmem:[#allocation3 + $0x68] sm:$0xf0] %v2458_v22  ;;  %v2383_v3 = vpop.permute.xlu0 %2382  ;;  %v3857_v59 = vsel %vm1019_vm3, %v9021_v43, %v3799_v35  ;;  %v1268_v22 = vcombine.high %v7117_v24, %v8830_v45  ;;  %v7531_v35 = vrot.slane %v9024_v7, %v6177_v14  ;;  %v7542_v24 = vrot.slane %v9025_v21, %v6177_v14  ;;  %v9033_v7 = vld [vmem:[#allocation47_spill] sm:$0xff] }
 0x383   : > { %v2435_v0 = vsel %vm1022_vm4, %v2434_v15, %v2383_v3  ;;  %1978 = vrot.lane.b32.xlu1 %v1840_v9, %s5560_s26  ;;  %v3858_v17 = vsel %vm385_vm1, %v3857_v59, %v7347_v38  ;;  %v4005_v38 = vcombine.low %v7266_v57, %v7250_v2  ;;  %v9027_v15 = vld [vmem:[#allocation29_spill] sm:$0xff] }
 0x384   : > { %v2457_v12 = vrot.slane %v2435_v0, 4  ;;  %1942 = vrot.lane.b32.xlu0 %v1770_v23, %s5560_s26  ;;  %9026 = vst [vmem:[#allocation52_spill] sm:$0xff] %v7542_v24  ;;  %v1771_v39 = vcombine.high %v7531_v35, %v8830_v45  ;;  %v4021_v3 = vcombine.high %v7542_v24, %v8830_v45  ;;  %v7556_v23 = vrot.slane %v2605_v61, %v6177_v14 }
 0x385   : > { %v3819_v54 = vpop.permute.xlu1 %3818 }
 0x386   : > { %2473 = vst [vmem:[#allocation3 + $0x60] sm:$0xf0] %v2457_v12  ;;  %v3862_v26 = vsel %vm1022_vm4, %v3861_v30, %v3819_v54  ;;  %v2411_v1 = vpop.permute.xlu0 %2410  ;;  %9028 = vst [vmem:[#allocation10_spill] sm:$0xff] %v7556_v23  ;;  %v1772_v30 = vcombine.high %v7148_v33, %v8830_v45  ;;  %v7566_v54 = vrot.slane %v4005_v38, %v6177_v14 }
 0x387   : > { %3874 = vst [vmem:[#allocation3 + $0xe8] sm:$0xf] %v3862_v26  ;;  %v2442_v63 = vsel %vm1019_vm3, %v9023_v49, %v2411_v1  ;;  %1442 = vrot.lane.b32.xlu1 %v1267_v19, %s5562_s28  ;;  %v2623_v43 = vcombine.high %v7556_v23, %v8830_v45  ;;  %v9029_v26 = vld [vmem:[#allocation39_spill] sm:$0xff]  ;;  %v9030_v49 = vcombine.low %v6467_v55, %v6470_v41 }
 0x388   : > { %3322 = vrot.lane.b32.xlu0 %v3103_v52, %s5562_s28  ;;  %v2443_v13 = vsel %vm385_vm1, %v2442_v63, %v7364_v32  ;;  %v4023_v59 = vcombine.high %v7566_v54, %v8830_v45  ;;  %v3104_v52 = vcombine.high %v7281_v58, %v8830_v45  ;;  %v4493_v41 = vcombine.low %v7350_v10, %v7333_v51 }
 0x389   : > { %v3807_v11 = vpop.permute.xlu1 %3806  ;;  %v7586_v63 = vrot.slane %v9030_v49, %v6177_v14  ;;  %v3102_v38 = vcombine.high %v7328_v18, %v8830_v45  ;;  %v9037_v18 = vld [vmem:[#allocation43_spill] sm:$0xff] }
 0x38a   : > { %v3859_v9 = vsel %vm1022_vm4, %v3858_v17, %v3807_v11  ;;  %v2419_v53 = vpop.permute.xlu0 %2418  ;;  %v9032_v11 = vld [vmem:[#allocation5_spill] sm:$0xff] }
 0x38b   : > { %3873 = vst [vmem:[#allocation3 + $0xe0] sm:$0xf] %v3859_v9  ;;  %v2444_v25 = vsel %vm1022_vm4, %v2443_v13, %v2419_v53  ;;  %1450 = vrot.lane.b32.xlu1 %v1268_v22, %s5560_s26  ;;  %9031 = vst [vmem:[#allocation65_spill] sm:$0xff] %v7586_v63  ;;  %v4024_v22 = vcombine.high %v9032_v11, %v8830_v45  ;;  %v2621_v55 = vcombine.high %v7586_v63, %v8830_v45 }
 0x38c   : > { %v2460_v42 = vrot.slane %v2444_v25, 4  ;;  %3310 = vrot.lane.b32.xlu0 %v3101_v6, %s5562_s28  ;;  %v9034_v6 = vld [vmem:[#allocation49_spill] sm:$0xff] }
 0x38d   : > { %v2399_v32 = vpop.permute.xlu1 %2398  ;;  %v4022_v21 = vcombine.high %v9034_v6, %v8830_v45  ;;  %v9053_v6 = vld [vmem:[#allocation50_spill] sm:$0xff] }
 0x38e   : > { %2476 = vst [vmem:[#allocation3 + $0x78] sm:$0xf0] %v2460_v42  ;;  %v2439_v31 = vsel %vm1019_vm3, %v9027_v15, %v2399_v32  ;;  %v2407_v29 = vpop.permute.xlu0 %2406  ;;  %v9035_v32 = vld [vmem:[#allocation6_spill] sm:$0xff] }
 0x38f   : > { %v2440_v0 = vsel %vm385_vm1, %v2439_v31, %v7423_v16  ;;  %1946 = vrot.lane.b32.xlu1 %v1771_v39, %s5562_s28  ;;  %v7617_v39 = vrot.slane %v4493_v41, %v6177_v14 }
 0x390   : > { %v2441_v2 = vsel %vm1022_vm4, %v2440_v0, %v2407_v29  ;;  %4230 = vrot.lane.b32.xlu0 %v4021_v3, %s5562_s28  ;;  %v2622_v29 = vcombine.high %v9037_v18, %v8830_v45  ;;  %v9038_v3 = vld [vmem:[#allocation63_spill] sm:$0xff]  ;;  %v9039_v0 = vld [vmem:[#allocation64_spill] sm:$0xff]  ;;  %v9058_v18 = vld [vmem:[#allocation18_spill] sm:$0xff] }
 0x391   : > { %v2459_v57 = vrot.slane %v2441_v2, 4  ;;  %v3835_v12 = vpop.permute.xlu1 %3834  ;;  %9036 = vst [vmem:[#allocation55_spill] sm:$0xff] %v7617_v39  ;;  %v9040_v2 = vcombine.low %v9038_v3, %v9039_v0 }
 0x392   : > { %v7568_v19 = vpop.permute.xlu0 %1422  ;;  %v3866_v33 = vsel %vm1019_vm3, %v9029_v26, %v3835_v12  ;;  %v9043_v26 = vld [vmem:[#allocation67_spill] sm:$0xff] }
 0x393   : > { %2475 = vst [vmem:[#allocation3 + $0x70] sm:$0xf0] %v2459_v57  ;;  %1954 = vrot.lane.b32.xlu1 %v1772_v30, %s5560_s26  ;;  %v3867_v61 = vsel %vm385_vm1, %v3866_v33, %v7383_v47  ;;  %v7626_v57 = vrot.slane %v9040_v2, %v6177_v14  ;;  %v9042_v30 = vld [vmem:[#allocation31_spill] sm:$0xff]  ;;  %v9044_v33 = vld [vmem:[#allocation69_spill] sm:$0xff] }
 0x394   : > { %2842 = vrot.lane.b32.xlu0 %v2623_v43, %s5562_s28 }
 0x395   : > { %v3823_v16 = vpop.permute.xlu1 %3822  ;;  %9041 = vst [vmem:[#allocation12_spill] sm:$0xff] %v7626_v57  ;;  %v4527_v11 = vcombine.high %v7626_v57, %v8830_v45 }
 0x396   : > { %v7578_v1 = vpop.permute.xlu0 %1926  ;;  %v3863_v58 = vsel %vm1019_vm3, %v9033_v7, %v3823_v16  ;;  %v9048_v7 = vld [vmem:[#allocation74_spill] sm:$0xff] }
 0x397   : > { %4242 = vrot.lane.b32.xlu1 %v4023_v59, %s5562_s28  ;;  %v3864_v47 = vsel %vm385_vm1, %v3863_v58, %v7397_v56  ;;  %v2624_v56 = vcombine.high %v7361_v5, %v8830_v45  ;;  %v4525_v59 = vcombine.high %v7617_v39, %v8830_v45 }
 0x398   : > { %3330 = vrot.lane.b32.xlu0 %v3104_v52, %s5560_s26  ;;  %v9045_v52 = vcombine.low %v9043_v26, %v9044_v33 }
 0x399   : > { %v3843_v17 = vpop.permute.xlu1 %3842 }
 0x39a   : > { %v3868_v9 = vsel %vm1022_vm4, %v3867_v61, %v3843_v17  ;;  %v1407_v13 = vpop.permute.xlu0 %1406  ;;  %v7639_v49 = vrot.slane %v9045_v52, %v6177_v14 }
 0x39b   : > { %3876 = vst [vmem:[#allocation3 + $0xf8] sm:$0xf] %v3868_v9  ;;  %4250 = vrot.lane.b32.xlu1 %v4024_v22, %s5560_s26  ;;  %v1501_v10 = vsel %vm1019_vm3, %v9035_v32, %v1407_v13  ;;  %v9047_v22 = vld [vmem:[#allocation72_spill] sm:$0xff] }
 0x39c   : > { %2830 = vrot.lane.b32.xlu0 %v2621_v55, %s5562_s28  ;;  %9046 = vst [vmem:[#allocation70_spill] sm:$0xff] %v7639_v49  ;;  %v9049_v58 = vcombine.low %v9047_v22, %v9048_v7  ;;  %v3171_v41 = vcombine.high %v7639_v49, %v8830_v45  ;;  %v9065_v22 = vld [vmem:[#allocation79_spill] sm:$0xff] }
 0x39d   : > { %v3831_v53 = vpop.permute.xlu1 %3830 }
 0x39e   : > { %v3865_v25 = vsel %vm1022_vm4, %v3864_v47, %v3831_v53  ;;  %v1415_v42 = vpop.permute.xlu0 %1414  ;;  %v7648_v9 = vrot.slane %v9049_v58, %v6177_v14  ;;  %v9051_v47 = vcombine.low %v9007_v50, %v9006_v48  ;;  %v9054_v50 = vld [vmem:[#allocation71_spill] sm:$0xff] }
 0x39f   : > { %3875 = vst [vmem:[#allocation3 + $0xf0] sm:$0xf] %v3865_v25  ;;  %4238 = vrot.lane.b32.xlu1 %v4022_v21, %s5560_s26 }
 0x3a0   : > { %3318 = vrot.lane.b32.xlu0 %v3102_v38, %s5560_s26  ;;  %9050 = vst [vmem:[#allocation61_spill] sm:$0xff] %v7648_v9  ;;  %v7659_v53 = vrot.slane %v9051_v47, %v6177_v14 }
 0x3a1   : > { %v1411_v51 = vpop.permute.xlu1 %1410 }
 0x3a2   : > { %v1502_v15 = vsel %vm385_vm1, %v1501_v10, %v1411_v51  ;;  %v1911_v31 = vpop.permute.xlu0 %1910  ;;  %9052 = vst [vmem:[#allocation20_spill] sm:$0xff] %v7659_v53  ;;  %v3169_v48 = vcombine.high %v7659_v53, %v8830_v45  ;;  %v9055_v10 = vld [vmem:[#allocation73_spill] sm:$0xff] }
 0x3a3   : > { %v1503_v12 = vsel %vm1022_vm4, %v1502_v15, %v1415_v42  ;;  %2850 = vrot.lane.b32.xlu1 %v2624_v56, %s5560_s26  ;;  %v2005_v43 = vsel %vm1019_vm3, %v9042_v30, %v1911_v31  ;;  %v4091_v42 = vcombine.high %v7648_v9, %v8830_v45  ;;  %v9056_v51 = vcombine.low %v9054_v50, %v9055_v10 }
 0x3a4   : > { %v1533_v5 = vrot.slane %v1503_v12, 4  ;;  %2838 = vrot.lane.b32.xlu0 %v2622_v29, %s5560_s26  ;;  %v4528_v29 = vcombine.high %v9058_v18, %v8830_v45 }
 0x3a5   : > { %v1915_v16 = vpop.permute.xlu1 %1914  ;;  %v7677_v56 = vrot.slane %v9056_v51, %v6177_v14  ;;  %v9074_v51 = vld [vmem:[#allocation7_spill] sm:$0xff] }
 0x3a6   : > { %1549 = vst [vmem:[#allocation3] sm:$0xf0] %v1533_v5  ;;  %v2006_v61 = vsel %vm385_vm1, %v2005_v43, %v1915_v16  ;;  %v1919_v17 = vpop.permute.xlu0 %1918  ;;  %v9061_v5 = vld [vmem:[#allocation8_spill] sm:$0xff] }
 0x3a7   : > { %v2007_v13 = vsel %vm1022_vm4, %v2006_v61, %v1919_v17  ;;  %4734 = vrot.lane.b32.xlu1 %v4525_v59, %s5562_s28  ;;  %9057 = vst [vmem:[#allocation57_spill] sm:$0xff] %v7677_v56  ;;  %v4089_v12 = vcombine.high %v7677_v56, %v8830_v45  ;;  %v9062_v59 = vld [vmem:[#allocation48_spill] sm:$0xff]  ;;  %v9063_v61 = vld [vmem:[#allocation54_spill] sm:$0xff] }
 0x3a8   : > { %2029 = vst [vmem:[#allocation3 + $0x40] sm:$0xf] %v2007_v13  ;;  %4746 = vrot.lane.b32.xlu0 %v4527_v11, %s5562_s28  ;;  %v4526_v26 = vcombine.high %v9062_v59, %v8830_v45  ;;  %v3172_v17 = vcombine.high %v9063_v61, %v8830_v45  ;;  %v9064_v11 = vld [vmem:[#allocation77_spill] sm:$0xff]  ;;  %v9068_v13 = vld [vmem:[#allocation46_spill] sm:$0xff]  ;;  %v9081_v61 = vld [vmem:[#allocation4_spill] sm:$0xff] }
 0x3a9   : > { %v1419_v55 = vpop.permute.xlu1 %1418  ;;  %v9066_v7 = vcombine.low %v9064_v11, %v9065_v22  ;;  %v9078_v59 = vld [vmem:[#allocation86_spill] sm:$0xff]  ;;  %v9082_v11 = vld [vmem:[#allocation89_spill] sm:$0xff] }
 0x3aa   : > { %v1504_v21 = vsel %vm1019_vm3, %v9053_v6, %v1419_v55  ;;  %v7663_v25 = vpop.permute.xlu0 %1470  ;;  %v4092_v55 = vcombine.high %v9068_v13, %v8830_v45  ;;  %v9083_v22 = vld [vmem:[#allocation26_spill] sm:$0xff] }
 0x3ab   : > { %3346 = vrot.lane.b32.xlu1 %v3171_v41, %s5562_s28  ;;  %v1505_v32 = vsel %vm385_vm1, %v1504_v21, %v7568_v19  ;;  %v9059_v19 = vcombine.low %v9010_v46, %v9009_v40  ;;  %v7715_v58 = vrot.slane %v9066_v7, %v6177_v14  ;;  %v9070_v21 = vld [vmem:[#allocation56_spill] sm:$0xff]  ;;  %v1858_v7 = vcombine.high %v9083_v22, %v9082_v11 }
 0x3ac   : > { %4266 = vrot.lane.b32.xlu0 %v4091_v42, %s5562_s28  ;;  %v4090_v42 = vcombine.high %v9070_v21, %v8830_v45  ;;  %v9086_v21 = vld [vmem:[#allocation53_spill] sm:$0xff] }
 0x3ad   : > { %v1427_v38 = vpop.permute.xlu1 %1426  ;;  %v7688_v3 = vrot.slane %v9059_v19, %v6177_v14  ;;  %9067 = vst [vmem:[#allocation62_spill] sm:$0xff] %v7715_v58  ;;  %v2689_v47 = vcombine.high %v7715_v58, %v8830_v45  ;;  %v9101_v58 = vld [vmem:[#allocation23_spill] sm:$0xff] }
 0x3ae   : > { %v1506_v15 = vsel %vm1022_vm4, %v1505_v32, %v1427_v38  ;;  %v7680_v31 = vpop.permute.xlu0 %1974  ;;  %v9071_v32 = vld [vmem:[#allocation87_spill] sm:$0xff] }
 0x3af   : > { %9060 = vst [vmem:[#allocation14_spill] sm:$0xff] %v7688_v3  ;;  %v1534_v0 = vrot.slane %v1506_v15, 4  ;;  %3334 = vrot.lane.b32.xlu1 %v3169_v48, %s5562_s28  ;;  %v2691_v40 = vcombine.high %v7688_v3, %v8830_v45  ;;  %v4870_v38 = vld [vmem:[#allocation3 + $0x40] sm:$0xff]  ;;  %v3170_v15 = vcombine.high %v9074_v51, %v8830_v45 }
 0x3b0   : > { %4754 = vrot.lane.b32.xlu0 %v4528_v29, %s5560_s26  ;;  %v9072_v48 = vld [vmem:[#allocation24_spill] sm:$0xff] }
 0x3b1   : > { %1550 = vst [vmem:[#allocation3 + $0x8] sm:$0xf0] %v1534_v0  ;;  %v1923_v2 = vpop.permute.xlu1 %1922  ;;  %v1354_v50 = vcombine.high %v9072_v48, %v9071_v32  ;;  %v4862_v0 = vld [vmem:[#allocation3] sm:$0xff] }
 0x3b2   : > { %v2008_v30 = vsel %vm1019_vm3, %v9061_v5, %v1923_v2  ;;  %v7696_v43 = vpop.permute.xlu0 %1446  ;;  %v9075_v2 = vld [vmem:[#allocation51_spill] sm:$0xff] }
 0x3b3   : > { %4254 = vrot.lane.b32.xlu1 %v4089_v12, %s5562_s28  ;;  %v2009_v16 = vsel %vm385_vm1, %v2008_v30, %v7578_v1  ;;  %v9076_v12 = vld [vmem:[#allocation9_spill] sm:$0xff]  ;;  %v5459_v30 = vpack.c.bf16 %v4870_v38, %v4862_v0  ;;  %v7784_v0 = vrot.slane %v1858_v7, %v9081_v61 }
 0x3b4   : > { %2866 = vrot.lane.b32.xlu0 %v2691_v40, %s5562_s28  ;;  %v1338_v5 = vcombine.high %v9076_v12, %v9075_v2 }
 0x3b5   : > { %v1931_v46 = vpop.permute.xlu1 %1930 }
 0x3b6   : > { %v2010_v33 = vsel %vm1022_vm4, %v2009_v16, %v1931_v46  ;;  %v7707_v52 = vpop.permute.xlu0 %1950  ;;  %v2692_v46 = vcombine.high %v7412_v60, %v8830_v45  ;;  %v9077_v16 = vld [vmem:[#allocation84_spill] sm:$0xff]  ;;  %v7764_v60 = vrot.slane %v1338_v5, %v9081_v61  ;;  %v9090_v5 = vld [vmem:[#allocation91_spill] sm:$0xff] }
 0x3b7   : > { %2030 = vst [vmem:[#allocation3 + $0x48] sm:$0xf] %v2010_v33  ;;  %4742 = vrot.lane.b32.xlu1 %v4526_v26, %s5560_s26  ;;  %v9079_v26 = vcombine.low %v9077_v16, %v9078_v59  ;;  %v1337_v59 = vcombine.low %v9076_v12, %v9075_v2 }
 0x3b8   : > { %3354 = vrot.lane.b32.xlu0 %v3172_v17, %s5560_s26  ;;  %v4863_v18 = vld [vmem:[#allocation3 + $0x8] sm:$0xff]  ;;  %v7754_v17 = vrot.slane %v1354_v50, %v9081_v61  ;;  %v1353_v50 = vcombine.low %v9072_v48, %v9071_v32 }
 0x3b9   : > { %v7719_v1 = vpop.permute.xlu1 %1458  ;;  %v7751_v33 = vrot.slane %v9079_v26, %v6177_v14  ;;  %v9095_v26 = vld [vmem:[#allocation22_spill] sm:$0xff] }
 0x3ba   : > { %v7723_v41 = vpop.permute.xlu0 %4234 }
 0x3bb   : > { %9069 = vst [vmem:[#allocation21_spill] sm:$0xff] %v7723_v41  ;;  %4274 = vrot.lane.b32.xlu1 %v4092_v55, %s5560_s26  ;;  %9080 = vst [vmem:[#allocation59_spill] sm:$0xff] %v7751_v33  ;;  %v9085_v55 = vld [vmem:[#allocation13_spill] sm:$0xff] }
 0x3bc   : > { %2854 = vrot.lane.b32.xlu0 %v2689_v47, %s5562_s28  ;;  %v2690_v47 = vcombine.high %v9085_v55, %v8830_v45  ;;  %v7802_v55 = vrot.slane %v1353_v50, %v9081_v61 }
 0x3bd   : > { %v7729_v6 = vpop.permute.xlu1 %1962 }
 0x3be   : > { %v7735_v10 = vpop.permute.xlu0 %2834  ;;  %v4871_v29 = vld [vmem:[#allocation3 + $0x48] sm:$0xff] }
 0x3bf   : > { %9073 = vst [vmem:[#allocation76_spill] sm:$0xff] %v7735_v10  ;;  %4262 = vrot.lane.b32.xlu1 %v4090_v42, %s5560_s26  ;;  %v5457_v19 = vpack.c.bf16 %v4871_v29, %v4863_v18  ;;  %v9087_v42 = vld [vmem:[#allocation11_spill] sm:$0xff]  ;;  %v9088_v18 = vcombine.low %v9014_v4, %v9013_v62 }
 0x3c0   : > { %3342 = vrot.lane.b32.xlu0 %v3170_v15, %s5560_s26  ;;  %v1842_v38 = vcombine.high %v9087_v42, %v9086_v21  ;;  %v4595_v15 = vcombine.high %v7751_v33, %v8830_v45  ;;  %v9094_v62 = vld [vmem:[#allocation75_spill] sm:$0xff] }
 0x3c1   : > { %v7743_v40 = vpop.permute.xlu1 %1434  ;;  %5458 = vmatprep.subr.bf16.mxu0 %v5457_v19  ;;  %v7779_v29 = vrot.slane %v9088_v18, %v6177_v14  ;;  %v1386_v19 = vcombine.high %v7764_v60, %v7754_v17  ;;  %v3174_v7 = vcombine.high %v9095_v26, %v9094_v62 }
 0x3c2   : > { %5460 = vmatpush1.bf16.msra.mxu0 %v5459_v30  ;;  %v7758_v13 = vpop.permute.xlu0 %4750  ;;  %v9091_v30 = vld [vmem:[#allocation28_spill] sm:$0xff]  ;;  %v7796_v4 = vrot.slane %v1842_v38, %v9081_v61 }
 0x3c3   : > { %9084 = vst [vmem:[#allocation16_spill] sm:$0xff] %v7758_v13  ;;  %2874 = vrot.lane.b32.xlu1 %v2692_v46, %s5560_s26  ;;  %9089 = vst [vmem:[#allocation82_spill] sm:$0xff] %v7779_v29  ;;  %v3190_v32 = vcombine.high %v9091_v30, %v9090_v5  ;;  %v9093_v46 = vld [vmem:[#allocation58_spill] sm:$0xff]  ;;  %v4593_v2 = vcombine.high %v7779_v29, %v8830_v45  ;;  %v7820_v50 = vrot.slane %v1386_v19, %v6177_v14 }
 0x3c4   : > { %2862 = vrot.lane.b32.xlu0 %v2690_v47, %s5560_s26  ;;  %v4596_v16 = vcombine.high %v9093_v46, %v8830_v45  ;;  %v1857_v47 = vcombine.low %v9083_v22, %v9082_v11  ;;  %v1890_v12 = vcombine.high %v7796_v4, %v7784_v0  ;;  %v9098_v46 = vld [vmem:[#allocation30_spill] sm:$0xff]  ;;  %v7823_v11 = vrot.slane %v1337_v59, %v9081_v61 }
 0x3c5   : > { %v7771_v51 = vpop.permute.xlu1 %1938  ;;  %v7813_v38 = vrot.slane %v3190_v32, %v9081_v61  ;;  %v1841_v22 = vcombine.low %v9087_v42, %v9086_v21  ;;  %v7829_v29 = vrot.slane %v3174_v7, %v9081_v61  ;;  %v9100_v32 = vld [vmem:[#allocation81_spill] sm:$0xff]  ;;  %v3189_v21 = vcombine.low %v9091_v30, %v9090_v5 }
 0x3c6   : > { %v7788_v48 = vpop.permute.xlu0 %3350  ;;  %v4094_v3 = vcombine.high %v9101_v58, %v9100_v32  ;;  %v1370_v19 = vcombine.high %v7823_v11, %v7802_v55  ;;  %v7838_v59 = vrot.slane %v1857_v47, %v9081_v61  ;;  %v4594_v7 = vcombine.high %v7426_v37, %v8830_v45 }
 0x3c7   : > { %9092 = vst [vmem:[#allocation68_spill] sm:$0xff] %v7788_v48  ;;  %4770 = vrot.lane.b32.xlu1 %v4595_v15, %s5562_s28  ;;  %v9097_v15 = vld [vmem:[#allocation92_spill] sm:$0xff]  ;;  %v7856_v47 = vrot.slane %v1890_v12, %v6177_v14  ;;  %v7859_v5 = vrot.slane %v1841_v22, %v9081_v61  ;;  %v3173_v37 = vcombine.low %v9095_v26, %v9094_v62  ;;  %v9107_v22 = vld [vmem:[#allocation25_spill] sm:$0xff] }
 0x3c8   : > { %4778 = vrot.lane.b32.xlu0 %v4596_v16, %s5560_s26  ;;  %v4110_v16 = vcombine.high %v9098_v46, %v9097_v15  ;;  %v4109_v53 = vcombine.low %v9098_v46, %v9097_v15  ;;  %v4093_v30 = vcombine.low %v9101_v58, %v9100_v32  ;;  %v7867_v15 = vrot.slane %v4094_v3, %v9081_v61  ;;  %v9104_v46 = vld [vmem:[#allocation93_spill] sm:$0xff]  ;;  %v9106_v12 = vld [vmem:[#allocation88_spill] sm:$0xff] }
 0x3c9   : > { %v7806_v18 = vpop.permute.xlu1 %3326  ;;  %v2694_v48 = vcombine.high %v9107_v22, %v9106_v12  ;;  %v1874_v62 = vcombine.high %v7859_v5, %v7838_v59  ;;  %v7878_v26 = vrot.slane %v3189_v21, %v9081_v61  ;;  %v7883_v3 = vrot.slane %v1370_v19, %v6177_v14 }
 0x3ca   : > { %9096 = vst [vmem:[#allocation66_spill] sm:$0xff] %v7806_v18  ;;  %v7817_v33 = vpop.permute.xlu0 %4270  ;;  %v7851_v56 = vrot.slane %v4110_v16, %v9081_v61  ;;  %v9105_v16 = vld [vmem:[#allocation32_spill] sm:$0xff]  ;;  %v7886_v58 = vrot.slane %v4109_v53, %v9081_v61  ;;  %v7898_v21 = vrot.slane %v3173_v37, %v9081_v61  ;;  %v7903_v53 = vrot.slane %v4093_v30, %v9081_v61  ;;  %v9111_v37 = vld [vmem:[#allocation95_spill] sm:$0xff] }
 0x3cb   : > { %9099 = vst [vmem:[#allocation80_spill] sm:$0xff] %v7817_v33  ;;  %4758 = vrot.lane.b32.xlu1 %v4593_v2, %s5562_s28  ;;  %v3222_v2 = vcombine.high %v7829_v29, %v7813_v38  ;;  %v2709_v9 = vcombine.low %v9105_v16, %v9104_v46  ;;  %v2693_v19 = vcombine.low %v9107_v22, %v9106_v12 }
 0x3cc   : > { %1494 = vrot.lane.b32.xlu0 %v7820_v50, %s5561_s27  ;;  %v4142_v32 = vcombine.high %v7867_v15, %v7851_v56  ;;  %v7921_v57 = vrot.slane %v1874_v62, %v6177_v14  ;;  %v4126_v12 = vcombine.high %v7903_v53, %v7886_v58 }
 0x3cd   : > { %v7842_v42 = vpop.permute.xlu1 %4246  ;;  %v7895_v39 = vrot.slane %v3222_v2, %v6177_v14  ;;  %v3206_v2 = vcombine.high %v7898_v21, %v7878_v26  ;;  %v7929_v22 = vrot.slane %v2709_v9, %v9081_v61 }
 0x3ce   : > { %9102 = vst [vmem:[#allocation78_spill] sm:$0xff] %v7842_v42  ;;  %v7853_v33 = vpop.permute.xlu0 %4258  ;;  %v7934_v63 = vrot.slane %v4142_v32, %v6177_v14  ;;  %v9130_v42 = vld [vmem:[#allocation15_spill] sm:$0xff] }
 0x3cf   : > { %9103 = vst [vmem:[#allocation85_spill] sm:$0xff] %v7853_v33  ;;  %4766 = vrot.lane.b32.xlu1 %v4594_v7, %s5560_s26  ;;  %v2710_v33 = vcombine.high %v9105_v16, %v9104_v46  ;;  %9110 = vst [vmem:[#allocation101_spill] sm:$0xff] %v7895_v39  ;;  %v9112_v46 = vld [vmem:[#allocation34_spill] sm:$0xff] }
 0x3d0   : > { %1998 = vrot.lane.b32.xlu0 %v7856_v47, %s5561_s27  ;;  %v4613_v16 = vcombine.low %v9112_v46, %v9111_v37  ;;  %9115 = vst [vmem:[#allocation44_spill] sm:$0xff] %v7934_v63 }
 0x3d1   : > { %v7880_v7 = vpop.permute.xlu1 %3314  ;;  %v7908_v13 = vrot.slane %v2710_v33, %v9081_v61  ;;  %v7924_v33 = vrot.slane %v2694_v48, %v9081_v61  ;;  %v7943_v48 = vrot.slane %v2693_v19, %v9081_v61  ;;  %v7960_v19 = vrot.slane %v3206_v2, %v6177_v14 }
 0x3d2   : > { %9108 = vst [vmem:[#allocation83_spill] sm:$0xff] %v7880_v7  ;;  %v7892_v49 = vpop.permute.xlu0 %2858  ;;  %v7950_v32 = vrot.slane %v4613_v16, %v9081_v61  ;;  %v9121_v7 = vld [vmem:[#allocation98_spill] sm:$0xff]  ;;  %v7967_v16 = vrot.slane %v4126_v12, %v6177_v14 }
 0x3d3   : > { %9109 = vst [vmem:[#allocation97_spill] sm:$0xff] %v7892_v49  ;;  %1482 = vrot.lane.b32.xlu1 %v7883_v3, %s5561_s27  ;;  %v4614_v49 = vcombine.high %v9112_v46, %v9111_v37  ;;  %v9116_v37 = vld [vmem:[#allocation90_spill] sm:$0xff]  ;;  %v9117_v46 = vld [vmem:[#allocation27_spill] sm:$0xff]  ;;  %9118 = vst [vmem:[#allocation35_spill] sm:$0xff] %v7943_v48  ;;  %v2742_v9 = vcombine.high %v7924_v33, %v7908_v13 }
 0x3d4   : > { %3374 = vrot.lane.b32.xlu0 %v7895_v39, %s5561_s27  ;;  %v4598_v62 = vcombine.high %v9117_v46, %v9116_v37  ;;  %9119 = vst [vmem:[#allocation29_spill] sm:$0xff] %v7950_v32  ;;  %9124 = vst [vmem:[#allocation47_spill] sm:$0xff] %v7960_v19  ;;  %v2726_v39 = vcombine.high %v7943_v48, %v7929_v22 }
 0x3d5   : > { %v7918_v30 = vpop.permute.xlu1 %2846  ;;  %9125 = vst [vmem:[#allocation49_spill] sm:$0xff] %v7967_v16 }
 0x3d6   : > { %9113 = vst [vmem:[#allocation102_spill] sm:$0xff] %v7918_v30  ;;  %v7931_v10 = vpop.permute.xlu0 %4774  ;;  %v4597_v30 = vcombine.low %v9117_v46, %v9116_v37  ;;  %v9122_v37 = vld [vmem:[#allocation37_spill] sm:$0xff]  ;;  %v7973_v24 = vrot.slane %v4598_v62, %v9081_v61 }
 0x3d7   : > { %9114 = vst [vmem:[#allocation41_spill] sm:$0xff] %v7931_v10  ;;  %1986 = vrot.lane.b32.xlu1 %v7921_v57, %s5561_s27  ;;  %v7953_v10 = vrot.slane %v4614_v49, %v9081_v61  ;;  %v3257_v46 = vcombine.low %v9122_v37, %v9121_v7  ;;  %v3258_v41 = vcombine.high %v9122_v37, %v9121_v7 }
 0x3d8   : > { %4294 = vrot.lane.b32.xlu0 %v7934_v63, %s5561_s27  ;;  %v7970_v49 = vrot.slane %v4597_v30, %v9081_v61  ;;  %9127 = vst [vmem:[#allocation43_spill] sm:$0xff] %v7973_v24  ;;  %v9129_v63 = vld [vmem:[#allocation33_spill] sm:$0xff] }
 0x3d9   : > { %9120 = vst [vmem:[#allocation39_spill] sm:$0xff] %v7953_v10  ;;  %v7957_v23 = vpop.permute.xlu1 %4738  ;;  %v4646_v12 = vcombine.high %v7973_v24, %v7953_v10  ;;  %v7990_v62 = vrot.slane %v3257_v46, %v9081_v61  ;;  %v9138_v24 = vld [vmem:[#allocation36_spill] sm:$0xff] }
 0x3da   : > { %9123 = vst [vmem:[#allocation5_spill] sm:$0xff] %v7957_v23  ;;  %v1455_v44 = vpop.permute.xlu0 %1454  ;;  %9126 = vst [vmem:[#allocation6_spill] sm:$0xff] %v7970_v49  ;;  %v9128_v23 = vld [vmem:[#allocation94_spill] sm:$0xff]  ;;  %v4630_v30 = vcombine.high %v7970_v49, %v7950_v32 }
 0x3db   : > { %v3241_v2 = vcombine.low %v9129_v63, %v9128_v23  ;;  %v1513_v18 = vsel %vm1019_vm3, %v9130_v42, %v1455_v44  ;;  %3362 = vrot.lane.b32.xlu1 %v7960_v19, %s5561_s27  ;;  %v3242_v7 = vcombine.high %v9129_v63, %v9128_v23  ;;  %9131 = vst [vmem:[#allocation63_spill] sm:$0xff] %v7990_v62  ;;  %v9133_v23 = vld [vmem:[#allocation100_spill] sm:$0xff] }
 0x3dc   : > { %4282 = vrot.lane.b32.xlu0 %v7967_v16, %s5561_s27  ;;  %v7995_v44 = vrot.slane %v2742_v9, %v6177_v14  ;;  %v7998_v42 = vrot.slane %v3258_v41, %v9081_v61  ;;  %v9134_v63 = vld [vmem:[#allocation40_spill] sm:$0xff]  ;;  %v1514_v49 = vsel %vm385_vm1, %v1513_v18, %v7719_v1  ;;  %v8005_v16 = vrot.slane %v2726_v39, %v6177_v14 }
 0x3dd   : > { %v7992_v37 = vpop.permute.xlu1 %3338  ;;  %v4178_v19 = vcombine.high %v9134_v63, %v9133_v23  ;;  %v8008_v46 = vrot.slane %v3241_v2, %v9081_v61  ;;  %v8014_v41 = vrot.slane %v3242_v7, %v9081_v61  ;;  %v9137_v9 = vld [vmem:[#allocation96_spill] sm:$0xff]  ;;  %v4177_v1 = vcombine.low %v9134_v63, %v9133_v23 }
 0x3de   : > { %9132 = vst [vmem:[#allocation64_spill] sm:$0xff] %v7992_v37  ;;  %v1463_v32 = vpop.permute.xlu0 %1462  ;;  %9135 = vst [vmem:[#allocation31_spill] sm:$0xff] %v8005_v16  ;;  %v4162_v10 = vcombine.high %v9138_v24, %v9137_v9 }
 0x3df   : > { %9136 = vst [vmem:[#allocation67_spill] sm:$0xff] %v8008_v46  ;;  %v1515_v37 = vsel %vm1022_vm4, %v1514_v49, %v1463_v32  ;;  %2894 = vrot.lane.b32.xlu1 %v7995_v44, %s5561_s27  ;;  %v3274_v39 = vcombine.high %v8008_v46, %v7990_v62  ;;  %v8027_v32 = vrot.slane %v4630_v30, %v6177_v14 }
 0x3e0   : > { %v1537_v48 = vrot.slane %v1515_v37, 4  ;;  %2882 = vrot.lane.b32.xlu0 %v8005_v16, %s5561_s27  ;;  %v3290_v49 = vcombine.high %v8014_v41, %v7998_v42  ;;  %v8032_v2 = vrot.slane %v4178_v19, %v9081_v61  ;;  %v8035_v37 = vrot.slane %v4646_v12, %v6177_v14  ;;  %v9142_v16 = vld [vmem:[#allocation60_spill] sm:$0xff]  ;;  %v9143_v19 = vld [vmem:[#allocation105_spill] sm:$0xff] }
 0x3e1   : > { %v8024_v18 = vpop.permute.xlu1 %2870  ;;  %9140 = vst [vmem:[#allocation72_spill] sm:$0xff] %v8027_v32  ;;  %v4161_v30 = vcombine.low %v9138_v24, %v9137_v9  ;;  %v8044_v23 = vrot.slane %v4162_v10, %v9081_v61  ;;  %v9144_v12 = vld [vmem:[#allocation104_spill] sm:$0xff]  ;;  %v9146_v9 = vld [vmem:[#allocation103_spill] sm:$0xff]  ;;  %v9147_v10 = vld [vmem:[#allocation42_spill] sm:$0xff] }
 0x3e2   : > { %9139 = vst [vmem:[#allocation69_spill] sm:$0xff] %v8024_v18  ;;  %1553 = vst [vmem:[#allocation3 + $0x20] sm:$0xf0] %v1537_v48  ;;  %v1959_v7 = vpop.permute.xlu0 %1958  ;;  %v8049_v48 = vrot.slane %v4177_v1, %v9081_v61  ;;  %v2810_v63 = vcombine.high %v9144_v12, %v9143_v19  ;;  %v8065_v1 = vrot.slane %v3290_v49, %v6177_v14  ;;  %v9149_v12 = vld [vmem:[#allocation38_spill] sm:$0xff]  ;;  %v9151_v49 = vld [vmem:[#allocation19_spill] sm:$0xff] }
 0x3e3   : > { %9141 = vst [vmem:[#allocation74_spill] sm:$0xff] %v8035_v37  ;;  %v2017_v46 = vsel %vm1019_vm3, %v9142_v16, %v1959_v7  ;;  %4786 = vrot.lane.b32.xlu1 %v8027_v32, %s5561_s27  ;;  %v8056_v16 = vrot.slane %v3274_v39, %v6177_v14  ;;  %v4210_v24 = vcombine.high %v8044_v23, %v8032_v2 }
 0x3e4   : > { %4798 = vrot.lane.b32.xlu0 %v8035_v37, %s5561_s27  ;;  %v2777_v7 = vcombine.low %v9147_v10, %v9146_v9  ;;  %v2018_v32 = vsel %vm385_vm1, %v2017_v46, %v7729_v6  ;;  %v8071_v39 = vrot.slane %v4161_v30, %v9081_v61  ;;  %v1385_v6 = vcombine.low %v7764_v60, %v7754_v17  ;;  %v9150_v46 = vld [vmem:[#allocation106_spill] sm:$0xff] }
 0x3e5   : > { %v8053_v18 = vpop.permute.xlu1 %4762  ;;  %v4698_v9 = vcombine.high %v9151_v49, %v9150_v46 }
 0x3e6   : > { %9145 = vst [vmem:[#allocation50_spill] sm:$0xff] %v8053_v18  ;;  %v1967_v37 = vpop.permute.xlu0 %1966  ;;  %v9148_v18 = vld [vmem:[#allocation99_spill] sm:$0xff]  ;;  %v4194_v30 = vcombine.high %v8071_v39, %v8049_v48  ;;  %v8087_v10 = vrot.slane %v2777_v7, %v9081_v61 }
 0x3e7   : > { %v2019_v19 = vsel %vm1022_vm4, %v2018_v32, %v1967_v37  ;;  %3386 = vrot.lane.b32.xlu1 %v8056_v16, %s5561_s27  ;;  %v2761_v62 = vcombine.low %v9149_v12, %v9148_v18  ;;  %v8082_v37 = vrot.slane %v2810_v63, %v6177_v14  ;;  %v8092_v12 = vrot.slane %v4210_v24, %v6177_v14 }
 0x3e8   : > { %2033 = vst [vmem:[#allocation3 + $0x60] sm:$0xf] %v2019_v19  ;;  %3398 = vrot.lane.b32.xlu0 %v8065_v1, %s5561_s27  ;;  %v8106_v7 = vrot.slane %v4698_v9, %v6177_v14  ;;  %v8109_v24 = vrot.slane %v1385_v6, %v6177_v14  ;;  %v1889_v9 = vcombine.low %v7796_v4, %v7784_v0 }
 0x3e9   : > { %v1467_v32 = vpop.permute.xlu1 %1466  ;;  %v8099_v60 = vrot.slane %v2761_v62, %v9081_v61 }
 0x3ea   : > { %v1516_v18 = vsel %vm1019_vm3, %v7429_v34, %v1467_v32  ;;  %v1431_v19 = vpop.permute.xlu0 %1430 }
 0x3eb   : > { %v1507_v17 = vsel %vm1019_vm3, %v7435_v36, %v1431_v19  ;;  %2918 = vrot.lane.b32.xlu1 %v8082_v37, %s5561_s27  ;;  %v1517_v34 = vsel %vm385_vm1, %v1516_v18, %v7663_v25  ;;  %v2794_v36 = vcombine.high %v8099_v60, %v8087_v10  ;;  %v8117_v19 = vrot.slane %v4194_v30, %v6177_v14 }
 0x3ec   : > { %4318 = vrot.lane.b32.xlu0 %v8092_v12, %s5561_s27  ;;  %v1508_v61 = vsel %vm385_vm1, %v1507_v17, %v7743_v40  ;;  %v1403_v40 = vcombine.high %v8109_v24, %v8830_v45  ;;  %v1369_v30 = vcombine.low %v7823_v11, %v7802_v55  ;;  %v9152_v17 = vld [vmem:[#allocation107_spill] sm:$0xff]  ;;  %v1404_v11 = vcombine.high %v7820_v50, %v8830_v45 }
 0x3ed   : > { %v1475_v63 = vpop.permute.xlu1 %1474  ;;  %v3221_v50 = vcombine.low %v7829_v29, %v7813_v38  ;;  %v3205_v29 = vcombine.low %v7898_v21, %v7878_v26 }
 0x3ee   : > { %v1518_v32 = vsel %vm1022_vm4, %v1517_v34, %v1475_v63  ;;  %v1439_v62 = vpop.permute.xlu0 %1438  ;;  %v9153_v63 = vld [vmem:[#allocation45_spill] sm:$0xff] }
 0x3ef   : > { %v1538_v46 = vrot.slane %v1518_v32, 4  ;;  %v1509_v25 = vsel %vm1022_vm4, %v1508_v61, %v1439_v62  ;;  %4810 = vrot.lane.b32.xlu1 %v8106_v7, %s5561_s27  ;;  %v4714_v34 = vcombine.high %v9153_v63, %v9152_v17  ;;  %v8135_v62 = vrot.slane %v2794_v36, %v6177_v14 }
 0x3f0   : > { %v1535_v6 = vrot.slane %v1509_v25, 4  ;;  %4306 = vrot.lane.b32.xlu0 %v8117_v19, %s5561_s27 }
 0x3f1   : > { %1554 = vst [vmem:[#allocation3 + $0x28] sm:$0xf0] %v1538_v46  ;;  %v1971_v18 = vpop.permute.xlu1 %1970  ;;  %v8153_v25 = vrot.slane %v4714_v34, %v6177_v14 }
 0x3f2   : > { %1551 = vst [vmem:[#allocation3 + $0x10] sm:$0xf0] %v1535_v6  ;;  %v2020_v32 = vsel %vm1019_vm3, %v7459_v27, %v1971_v18  ;;  %v1935_v61 = vpop.permute.xlu0 %1934  ;;  %v8147_v27 = vrot.slane %v1889_v9, %v6177_v14  ;;  %v8156_v6 = vrot.slane %v1369_v30, %v6177_v14  ;;  %v1873_v18 = vcombine.low %v7859_v5, %v7838_v59 }
 0x3f3   : > { %v2011_v0 = vsel %vm1019_vm3, %v7465_v8, %v1935_v61  ;;  %1490 = vrot.lane.b32.xlu1 %v1403_v40, %s5562_s28  ;;  %v2021_v55 = vsel %vm385_vm1, %v2020_v32, %v7680_v31  ;;  %v1908_v59 = vcombine.high %v7856_v47, %v8830_v45 }
 0x3f4   : > { %2906 = vrot.lane.b32.xlu0 %v8135_v62, %s5561_s27  ;;  %v2012_v8 = vsel %vm385_vm1, %v2011_v0, %v7771_v51  ;;  %v1907_v9 = vcombine.high %v8147_v27, %v8830_v45  ;;  %v1401_v34 = vcombine.high %v8156_v6, %v8830_v45  ;;  %v1402_v0 = vcombine.high %v7883_v3, %v8830_v45 }
 0x3f5   : > { %v1979_v4 = vpop.permute.xlu1 %1978  ;;  %v4141_v3 = vcombine.low %v7867_v15, %v7851_v56 }
 0x3f6   : > { %v2022_v46 = vsel %vm1022_vm4, %v2021_v55, %v1979_v4  ;;  %v1943_v36 = vpop.permute.xlu0 %1942  ;;  %v8187_v4 = vrot.slane %v1873_v18, %v6177_v14  ;;  %v8196_v55 = vrot.slane %v3205_v29, %v6177_v14  ;;  %v9154_v18 = vld [vmem:[#allocation66_spill] sm:$0xff] }
 0x3f7   : > { %2034 = vst [vmem:[#allocation3 + $0x68] sm:$0xf] %v2022_v46  ;;  %v2013_v31 = vsel %vm1022_vm4, %v2012_v8, %v1943_v36  ;;  %1498 = vrot.lane.b32.xlu1 %v1404_v11, %s5560_s26 }
 0x3f8   : > { %2031 = vst [vmem:[#allocation3 + $0x50] sm:$0xf] %v2013_v31  ;;  %4822 = vrot.lane.b32.xlu0 %v8153_v25, %s5561_s27  ;;  %v1905_v8 = vcombine.high %v8187_v4, %v8830_v45  ;;  %v3237_v36 = vcombine.high %v8196_v55, %v8830_v45 }
 0x3f9   : > { %v1443_v51 = vpop.permute.xlu1 %1442 }
 0x3fa   : > { %v1510_v40 = vsel %vm1019_vm3, %v7491_v20, %v1443_v51  ;;  %v3323_v30 = vpop.permute.xlu0 %3322  ;;  %v8181_v20 = vrot.slane %v3221_v50, %v6177_v14  ;;  %v1906_v50 = vcombine.high %v7921_v57, %v8830_v45  ;;  %v8219_v51 = vrot.slane %v4141_v3, %v6177_v14 }
 0x3fb   : > { %1994 = vrot.lane.b32.xlu1 %v1907_v9, %s5562_s28  ;;  %v1511_v32 = vsel %vm385_vm1, %v1510_v40, %v7696_v43  ;;  %v4125_v43 = vcombine.low %v7903_v53, %v7886_v58 }
 0x3fc   : > { %1478 = vrot.lane.b32.xlu0 %v1401_v34, %s5562_s28  ;;  %v3239_v21 = vcombine.high %v8181_v20, %v8830_v45  ;;  %v4159_v34 = vcombine.high %v8219_v51, %v8830_v45 }
 0x3fd   : > { %v1451_v38 = vpop.permute.xlu1 %1450  ;;  %v8211_v56 = vrot.slane %v4125_v43, %v6177_v14  ;;  %v9158_v43 = vld [vmem:[#allocation52_spill] sm:$0xff] }
 0x3fe   : > { %v1512_v5 = vsel %vm1022_vm4, %v1511_v32, %v1451_v38  ;;  %v3311_v61 = vpop.permute.xlu0 %3310  ;;  %v9155_v38 = vld [vmem:[#allocation78_spill] sm:$0xff] }
 0x3ff   : > { %v1536_v26 = vrot.slane %v1512_v5, 4  ;;  %2002 = vrot.lane.b32.xlu1 %v1908_v59, %s5560_s26  ;;  %v9156_v59 = vld [vmem:[#allocation44_spill] sm:$0xff] }
 0x400   : > { %1486 = vrot.lane.b32.xlu0 %v1402_v0, %s5560_s26  ;;  %v4160_v5 = vcombine.high %v9156_v59, %v8830_v45  ;;  %v9157_v0 = vld [vmem:[#allocation35_spill] sm:$0xff] }
 0x401   : > { %1552 = vst [vmem:[#allocation3 + $0x18] sm:$0xf0] %v1536_v26  ;;  %v1947_v47 = vpop.permute.xlu1 %1946  ;;  %v2725_v26 = vcombine.low %v9157_v0, %v7929_v22  ;;  %v9161_v22 = vld [vmem:[#allocation43_spill] sm:$0xff]  ;;  %v9169_v0 = vld [vmem:[#allocation6_spill] sm:$0xff] }
 0x402   : > { %v2014_v11 = vsel %vm1019_vm3, %v7531_v35, %v1947_v47  ;;  %v4231_v46 = vpop.permute.xlu0 %4230  ;;  %v2741_v35 = vcombine.low %v7924_v33, %v7908_v13  ;;  %v4157_v13 = vcombine.high %v8211_v56, %v8830_v45 }
 0x403   : > { %3370 = vrot.lane.b32.xlu1 %v3239_v21, %s5562_s28  ;;  %v2015_v53 = vsel %vm385_vm1, %v2014_v11, %v7707_v52  ;;  %v3408_v52 = vsel %vm1019_vm3, %v7500_v28, %v3323_v30  ;;  %v4325_v47 = vsel %vm1019_vm3, %v9158_v43, %v4231_v46 }
 0x404   : > { %1982 = vrot.lane.b32.xlu0 %v1905_v8, %s5562_s28  ;;  %v3409_v57 = vsel %vm385_vm1, %v3408_v52, %v9154_v18  ;;  %v8234_v28 = vrot.slane %v2741_v35, %v6177_v14  ;;  %v9159_v8 = vld [vmem:[#allocation17_spill] sm:$0xff] }
 0x405   : > { %v1955_v58 = vpop.permute.xlu1 %1954  ;;  %v9163_v52 = vld [vmem:[#allocation49_spill] sm:$0xff] }
 0x406   : > { %v2016_v15 = vsel %vm1022_vm4, %v2015_v53, %v1955_v58  ;;  %v2843_v31 = vpop.permute.xlu0 %2842  ;;  %v2759_v11 = vcombine.high %v8234_v28, %v8830_v45  ;;  %v3405_v58 = vsel %vm1019_vm3, %v9159_v8, %v3311_v61  ;;  %v9165_v61 = vld [vmem:[#allocation10_spill] sm:$0xff] }
 0x407   : > { %2032 = vst [vmem:[#allocation3 + $0x58] sm:$0xf] %v2016_v15  ;;  %3358 = vrot.lane.b32.xlu1 %v3237_v36, %s5562_s28  ;;  %v9160_v36 = vld [vmem:[#allocation39_spill] sm:$0xff]  ;;  %v9162_v15 = vld [vmem:[#allocation21_spill] sm:$0xff]  ;;  %v2928_v18 = vsel %vm1019_vm3, %v9165_v61, %v2843_v31 }
 0x408   : > { %1990 = vrot.lane.b32.xlu0 %v1906_v50, %s5560_s26  ;;  %v4645_v35 = vcombine.low %v9161_v22, %v9160_v36  ;;  %v4326_v50 = vsel %vm385_vm1, %v4325_v47, %v9162_v15  ;;  %v9168_v31 = vld [vmem:[#allocation29_spill] sm:$0xff]  ;;  %v9173_v61 = vld [vmem:[#allocation63_spill] sm:$0xff] }
 0x409   : > { %v4243_v9 = vpop.permute.xlu1 %4242  ;;  %v4629_v43 = vcombine.low %v9169_v0, %v9168_v31 }
 0x40a   : > { %v4328_v33 = vsel %vm1019_vm3, %v7566_v54, %v4243_v9  ;;  %v3331_v40 = vpop.permute.xlu0 %3330  ;;  %v4158_v9 = vcombine.high %v9163_v52, %v8830_v45  ;;  %v4209_v52 = vcombine.low %v8044_v23, %v8032_v2  ;;  %v9175_v2 = vld [vmem:[#allocation31_spill] sm:$0xff] }
 0x40b   : > { %v3410_v30 = vsel %vm1022_vm4, %v3409_v57, %v3331_v40  ;;  %4278 = vrot.lane.b32.xlu1 %v4157_v13, %s5562_s28  ;;  %v4329_v54 = vsel %vm385_vm1, %v4328_v33, %v9155_v38  ;;  %v9164_v13 = vld [vmem:[#allocation101_spill] sm:$0xff]  ;;  %v9166_v40 = vld [vmem:[#allocation83_spill] sm:$0xff]  ;;  %v2758_v23 = vcombine.high %v9175_v2, %v8830_v45 }
 0x40c   : > { %v3438_v29 = vrot.slane %v3410_v30, 4  ;;  %4290 = vrot.lane.b32.xlu0 %v4159_v34, %s5562_s28  ;;  %v3240_v33 = vcombine.high %v9164_v13, %v8830_v45  ;;  %v3406_v34 = vsel %vm385_vm1, %v3405_v58, %v9166_v40  ;;  %v9167_v38 = vld [vmem:[#allocation65_spill] sm:$0xff]  ;;  %v9171_v58 = vld [vmem:[#allocation76_spill] sm:$0xff]  ;;  %v9172_v13 = vld [vmem:[#allocation47_spill] sm:$0xff] }
 0x40d   : > { %v4251_v32 = vpop.permute.xlu1 %4250 }
 0x40e   : > { %3454 = vst [vmem:[#allocation3 + $0x88] sm:$0xf0] %v3438_v29  ;;  %v4330_v21 = vsel %vm1022_vm4, %v4329_v54, %v4251_v32  ;;  %v2831_v3 = vpop.permute.xlu0 %2830  ;;  %v8268_v29 = vrot.slane %v2725_v26, %v6177_v14 }
 0x40f   : > { %v4358_v53 = vrot.slane %v4330_v21, 4  ;;  %4298 = vrot.lane.b32.xlu1 %v4160_v5, %s5560_s26  ;;  %v2925_v54 = vsel %vm1019_vm3, %v9167_v38, %v2831_v3  ;;  %v9170_v21 = vld [vmem:[#allocation102_spill] sm:$0xff]  ;;  %v8282_v3 = vrot.slane %v4645_v35, %v6177_v14 }
 0x410   : > { %2890 = vrot.lane.b32.xlu0 %v2759_v11, %s5562_s28  ;;  %v2929_v26 = vsel %vm385_vm1, %v2928_v18, %v9170_v21  ;;  %v2760_v11 = vcombine.high %v7995_v44, %v8830_v45  ;;  %v2757_v22 = vcombine.high %v8268_v29, %v8830_v45  ;;  %v3289_v44 = vcombine.low %v8014_v41, %v7998_v42  ;;  %v9174_v42 = vld [vmem:[#allocation67_spill] sm:$0xff] }
 0x411   : > { %4374 = vst [vmem:[#allocation3 + $0xc8] sm:$0xf0] %v4358_v53  ;;  %v4239_v46 = vpop.permute.xlu1 %4238  ;;  %v2926_v53 = vsel %vm385_vm1, %v2925_v54, %v9171_v58  ;;  %v4663_v15 = vcombine.high %v8282_v3, %v8830_v45  ;;  %v3273_v41 = vcombine.low %v9174_v42, %v9173_v61  ;;  %v8315_v54 = vrot.slane %v4209_v52, %v6177_v14  ;;  %v9181_v61 = vld [vmem:[#allocation105_spill] sm:$0xff] }
 0x412   : > { %v4327_v57 = vsel %vm1022_vm4, %v4326_v50, %v4239_v46  ;;  %v3319_v30 = vpop.permute.xlu0 %3318  ;;  %v8297_v50 = vrot.slane %v4629_v43, %v6177_v14  ;;  %v8310_v40 = vrot.slane %v3289_v44, %v6177_v14  ;;  %v9178_v44 = vld [vmem:[#allocation55_spill] sm:$0xff] }
 0x413   : > { %v4357_v32 = vrot.slane %v4327_v57, 4  ;;  %v3407_v59 = vsel %vm1022_vm4, %v3406_v34, %v3319_v30  ;;  %4286 = vrot.lane.b32.xlu1 %v4158_v9, %s5560_s26 }
 0x414   : > { %v3437_v5 = vrot.slane %v3407_v59, 4  ;;  %3378 = vrot.lane.b32.xlu0 %v3240_v33, %s5560_s26  ;;  %v3238_v33 = vcombine.high %v9172_v13, %v8830_v45  ;;  %v4661_v57 = vcombine.high %v8297_v50, %v8830_v45 }
 0x415   : > { %4373 = vst [vmem:[#allocation3 + $0xc0] sm:$0xf0] %v4357_v32  ;;  %v2851_v47 = vpop.permute.xlu1 %2850  ;;  %v9176_v32 = vld [vmem:[#allocation12_spill] sm:$0xff] }
 0x416   : > { %3453 = vst [vmem:[#allocation3 + $0x80] sm:$0xf0] %v3437_v5  ;;  %v2930_v8 = vsel %vm1022_vm4, %v2929_v26, %v2851_v47  ;;  %v2839_v36 = vpop.permute.xlu0 %2838  ;;  %v4193_v47 = vcombine.low %v8071_v39, %v8049_v48  ;;  %v3307_v26 = vcombine.high %v8310_v40, %v8830_v45 }
 0x417   : > { %2950 = vst [vmem:[#allocation3 + $0x88] sm:$0xf] %v2930_v8  ;;  %v2927_v46 = vsel %vm1022_vm4, %v2926_v53, %v2839_v36  ;;  %2898 = vrot.lane.b32.xlu1 %v2760_v11, %s5560_s26  ;;  %v8326_v11 = vrot.slane %v3273_v41, %v6177_v14  ;;  %v9177_v8 = vld [vmem:[#allocation16_spill] sm:$0xff]  ;;  %v4227_v36 = vcombine.high %v8315_v54, %v8830_v45 }
 0x418   : > { %2949 = vst [vmem:[#allocation3 + $0x80] sm:$0xf] %v2927_v46  ;;  %2878 = vrot.lane.b32.xlu0 %v2757_v22, %s5562_s28  ;;  %v4887_v38 = vld [vmem:[#allocation3 + $0xc8] sm:$0xff]  ;;  %v8338_v46 = vrot.slane %v4193_v47, %v6177_v14 }
 0x419   : > { %v4735_v35 = vpop.permute.xlu1 %4734  ;;  %v3305_v39 = vcombine.high %v8326_v11, %v8830_v45 }
 0x41a   : > { %v4747_v9 = vpop.permute.xlu0 %4746 }
 0x41b   : > { %4794 = vrot.lane.b32.xlu1 %v4663_v15, %s5562_s28  ;;  %v4832_v59 = vsel %vm1019_vm3, %v9176_v32, %v4747_v9  ;;  %v4829_v15 = vsel %vm1019_vm3, %v9178_v44, %v4735_v35  ;;  %v9179_v9 = vld [vmem:[#allocation74_spill] sm:$0xff]  ;;  %v2793_v35 = vcombine.low %v8099_v60, %v8087_v10  ;;  %v4225_v32 = vcombine.high %v8338_v46, %v8830_v45 }
 0x41c   : > { %3366 = vrot.lane.b32.xlu0 %v3238_v33, %s5560_s26  ;;  %v4886_v0 = vld [vmem:[#allocation3 + $0xc0] sm:$0xff]  ;;  %v4833_v58 = vsel %vm385_vm1, %v4832_v59, %v9177_v8  ;;  %v4664_v13 = vcombine.high %v9179_v9, %v8830_v45  ;;  %v9185_v59 = vld [vmem:[#allocation61_spill] sm:$0xff] }
 0x41d   : > { %v3347_v18 = vpop.permute.xlu1 %3346  ;;  %v9180_v33 = vld [vmem:[#allocation104_spill] sm:$0xff] }
 0x41e   : > { %v4267_v34 = vpop.permute.xlu0 %4266  ;;  %v4879_v30 = vld [vmem:[#allocation3 + $0x88] sm:$0xff]  ;;  %v9182_v42 = vcombine.low %v9180_v33, %v9181_v61  ;;  %v9187_v8 = vld [vmem:[#allocation80_spill] sm:$0xff] }
 0x41f   : > { %4782 = vrot.lane.b32.xlu1 %v4661_v57, %s5562_s28  ;;  %v5461_v5 = vpack.c.bf16 %v4887_v38, %v4879_v30  ;;  %v4878_v31 = vld [vmem:[#allocation3 + $0x80] sm:$0xff]  ;;  %v9183_v57 = vld [vmem:[#allocation70_spill] sm:$0xff] }
 0x420   : > { %2886 = vrot.lane.b32.xlu0 %v2758_v23, %s5560_s26  ;;  %v5463_v43 = vpack.c.bf16 %v4886_v0, %v4878_v31  ;;  %v8348_v41 = vrot.slane %v9182_v42, %v6177_v14  ;;  %v3414_v2 = vsel %vm1019_vm3, %v9183_v57, %v3347_v18  ;;  %v9184_v23 = vld [vmem:[#allocation5_spill] sm:$0xff]  ;;  %v9186_v31 = vld [vmem:[#allocation68_spill] sm:$0xff]  ;;  %v4873_v57 = vld [vmem:[#allocation3 + $0x58] sm:$0xff] }
 0x421   : > { %v3335_v21 = vpop.permute.xlu1 %3334  ;;  %5462 = vmatprep.subr.bf16.mxu0 %v5461_v5  ;;  %v4830_v30 = vsel %vm385_vm1, %v4829_v15, %v9184_v23  ;;  %v4334_v5 = vsel %vm1019_vm3, %v9185_v59, %v4267_v34  ;;  %v3415_v0 = vsel %vm385_vm1, %v3414_v2, %v9186_v31  ;;  %v9190_v33 = vld [vmem:[#allocation20_spill] sm:$0xff]  ;;  %v4228_v23 = vcombine.high %v8092_v12, %v8830_v45 }
 0x422   : > { %5464 = vmatpush1.bf16.msra.mxu0 %v5463_v43  ;;  %v4755_v53 = vpop.permute.xlu0 %4754  ;;  %v2827_v10 = vcombine.high %v8348_v41, %v8830_v45  ;;  %v3411_v61 = vsel %vm1019_vm3, %v9190_v33, %v3335_v21  ;;  %v4872_v21 = vld [vmem:[#allocation3 + $0x50] sm:$0xff]  ;;  %v8401_v12 = vld [vmem:[%s8614_s3] sm:$0x3f]  ;;  %v3306_v33 = vcombine.high %v8056_v16, %v8830_v45  ;;  %v9199_v16 = vld [vmem:[#allocation59_spill] sm:$0xff] }
 0x423   : > { %v4834_v22 = vsel %vm1022_vm4, %v4833_v58, %v4755_v53  ;;  %3394 = vrot.lane.b32.xlu1 %v3307_v26, %s5562_s28  ;;  %v4335_v58 = vsel %vm385_vm1, %v4334_v5, %v9187_v8  ;;  %v9188_v53 = vld [vmem:[#allocation72_spill] sm:$0xff] }
 0x424   : > { %4854 = vst [vmem:[#allocation3 + $0x108] sm:$0xf] %v4834_v22  ;;  %4314 = vrot.lane.b32.xlu0 %v4227_v36, %s5562_s28  ;;  %v4662_v36 = vcombine.high %v9188_v53, %v8830_v45  ;;  %v8376_v22 = vrot.slane %v2793_v35, %v6177_v14  ;;  %v9191_v35 = vld [vmem:[#allocation85_spill] sm:$0xff]  ;;  %v9193_v5 = vld [vmem:[#allocation64_spill] sm:$0xff] }
 0x425   : > { %v4255_v48 = vpop.permute.xlu1 %4254  ;;  %v9195_v53 = vld [vmem:[#allocation69_spill] sm:$0xff] }
 0x426   : > { %v2867_v52 = vpop.permute.xlu0 %2866 }
 0x427   : > { %3382 = vrot.lane.b32.xlu1 %v3305_v39, %s5562_s28  ;;  %v9189_v39 = vld [vmem:[#allocation57_spill] sm:$0xff] }
 0x428   : > { %4802 = vrot.lane.b32.xlu0 %v4664_v13, %s5560_s26  ;;  %v4331_v44 = vsel %vm1019_vm3, %v9189_v39, %v4255_v48  ;;  %v3308_v13 = vcombine.high %v8065_v1, %v8830_v45  ;;  %v2825_v1 = vcombine.high %v8376_v22, %v8830_v45  ;;  %v4226_v39 = vcombine.high %v8117_v19, %v8830_v45 }
 0x429   : > { %v4743_v38 = vpop.permute.xlu1 %4742  ;;  %v4332_v48 = vsel %vm385_vm1, %v4331_v44, %v9191_v35 }
 0x42a   : > { %v4831_v18 = vsel %vm1022_vm4, %v4830_v30, %v4743_v38  ;;  %v3355_v43 = vpop.permute.xlu0 %3354  ;;  %v4865_v30 = vld [vmem:[#allocation3 + $0x18] sm:$0xff]  ;;  %v9192_v38 = vld [vmem:[#allocation14_spill] sm:$0xff] }
 0x42b   : > { %4853 = vst [vmem:[#allocation3 + $0x100] sm:$0xf] %v4831_v18  ;;  %v3416_v60 = vsel %vm1022_vm4, %v3415_v0, %v3355_v43  ;;  %4302 = vrot.lane.b32.xlu1 %v4225_v32, %s5562_s28  ;;  %v4895_v47 = vld [vmem:[#allocation3 + $0x108] sm:$0xf]  ;;  %v2934_v32 = vsel %vm1019_vm3, %v9192_v38, %v2867_v52  ;;  %v3412_v18 = vsel %vm385_vm1, %v3411_v61, %v9193_v5  ;;  %v4864_v52 = vld [vmem:[#allocation3 + $0x10] sm:$0xff] }
 0x42c   : > { %v3440_v26 = vrot.slane %v3416_v60, 4  ;;  %2914 = vrot.lane.b32.xlu0 %v2827_v10, %s5562_s28  ;;  %5321 = vmatprep.subr.msk.mxu0 %vm4912_vm5, %v4895_v47  ;;  %v5465_v43 = vpack.c.bf16 %v4873_v57, %v4865_v30  ;;  %v9194_v10 = vld [vmem:[#allocation62_spill] sm:$0xff]  ;;  %v5467_v8 = vpack.c.bf16 %v4872_v21, %v4864_v52  ;;  %v9200_v30 = vcombine.low %v9153_v63, %v9152_v17 }
 0x42d   : > { %v4275_v34 = vpop.permute.xlu1 %4274  ;;  %v9197_v57 = vld [vmem:[#allocation106_spill] sm:$0xff]  ;;  %v4730_v52 = vcombine.high %v8106_v7, %v8830_v45  ;;  %v4902_v7 = vld [vmem:[%s8615_s4] sm:$0x3f] }
 0x42e   : > { %3456 = vst [vmem:[#allocation3 + $0x98] sm:$0xf0] %v3440_v26  ;;  %v4336_v15 = vsel %vm1022_vm4, %v4335_v58, %v4275_v34  ;;  %v2855_v9 = vpop.permute.xlu0 %2854  ;;  %v8440_v21 = vrot.slane %v9200_v30, %v6177_v14 }
 0x42f   : > { %v4360_v42 = vrot.slane %v4336_v15, 4  ;;  %4790 = vrot.lane.b32.xlu1 %v4662_v36, %s5560_s26  ;;  %v2931_v60 = vsel %vm1019_vm3, %v9194_v10, %v2855_v9  ;;  %v2935_v36 = vsel %vm385_vm1, %v2934_v32, %v9195_v53  ;;  %v9196_v15 = vld [vmem:[#allocation97_spill] sm:$0xff]  ;;  %v5563_v53 = vmov 0  }
 0x430   : > { %3402 = vrot.lane.b32.xlu0 %v3308_v13, %s5560_s26  ;;  %v2932_v9 = vsel %vm385_vm1, %v2931_v60, %v9196_v15  ;;  %v9203_v60 = vld [vmem:[#allocation50_spill] sm:$0xff]  ;;  %v4875_v15 = vld [vmem:[#allocation3 + $0x68] sm:$0xff] }
 0x431   : > { %4376 = vst [vmem:[#allocation3 + $0xd8] sm:$0xf0] %v4360_v42  ;;  %v4263_v2 = vpop.permute.xlu1 %4262  ;;  %v2828_v42 = vcombine.high %v8082_v37, %v8830_v45  ;;  %v9201_v37 = vld [vmem:[#allocation41_spill] sm:$0xff]  ;;  %5506 = vset.pattern.permute.xlu0 %v5563_v53 }
 0x432   : > { %v4333_v59 = vsel %vm1022_vm4, %v4332_v48, %v4263_v2  ;;  %v3343_v31 = vpop.permute.xlu0 %3342  ;;  %v4894_v0 = vld [vmem:[#allocation3 + $0x100] sm:$0xf]  ;;  %v9198_v2 = vcombine.low %v9151_v49, %v9197_v57 }
 0x433   : > { %v4359_v47 = vrot.slane %v4333_v59, 4  ;;  %v3413_v26 = vsel %vm1022_vm4, %v3412_v18, %v3343_v31  ;;  %4322 = vrot.lane.b32.xlu1 %v4228_v23, %s5560_s26  ;;  %5322 = vmatpush1.msk.msra.mxu0 %vm4912_vm5, %v4894_v0  ;;  %v9202_v59 = vld [vmem:[#allocation82_spill] sm:$0xff] }
 0x434   : > { %v3439_v34 = vrot.slane %v3413_v26, 4  ;;  %2902 = vrot.lane.b32.xlu0 %v2825_v1, %s5562_s28  ;;  %5466 = vmatprep.subr.bf16.mxu0 %v5465_v43  ;;  %v8430_v35 = vrot.slane %v9198_v2, %v6177_v14  ;;  %v2826_v1 = vcombine.high %v8135_v62, %v8830_v45  ;;  %v4731_v14 = vcombine.high %v8440_v21, %v8830_v45 }
 0x435   : > { %4375 = vst [vmem:[#allocation3 + $0xd0] sm:$0xf0] %v4359_v47  ;;  %v2875_v58 = vpop.permute.xlu1 %2874  ;;  %5323 = vmatmul.mubr.msk.f32.vlgmr.msra.gmra.mrb[8].mxu0 %vm4908_vm6, %v8401_v12 }
 0x436   : > { %3455 = vst [vmem:[#allocation3 + $0x90] sm:$0xf0] %v3439_v34  ;;  %v2936_v44 = vsel %vm1022_vm4, %v2935_v36, %v2875_v58  ;;  %5468 = vmatpush1.bf16.msra.mxu0 %v5467_v8  ;;  %v2863_v13 = vpop.permute.xlu0 %2862  ;;  %5072 = vmatprep.mubr.f32.mxu0 %v8830_v45  ;;  %v4729_v62 = vcombine.high %v8430_v35, %v8830_v45 }
 0x437   : > { %2952 = vst [vmem:[#allocation3 + $0x98] sm:$0xf] %v2936_v44  ;;  %v2933_v61 = vsel %vm1022_vm4, %v2932_v9, %v2863_v13  ;;  %4310 = vrot.lane.b32.xlu1 %v4226_v39, %s5560_s26  ;;  %v4732_v58 = vcombine.high %v8153_v25, %v8830_v45  ;;  %v4874_v9 = vld [vmem:[#allocation3 + $0x60] sm:$0xff]  ;;  %v4867_v13 = vld [vmem:[#allocation3 + $0x28] sm:$0xff] }
 0x438   : > { %2951 = vst [vmem:[#allocation3 + $0x90] sm:$0xf] %v2933_v61  ;;  %3390 = vrot.lane.b32.xlu0 %v3306_v33, %s5560_s26  ;;  %v4889_v18 = vld [vmem:[#allocation3 + $0xd8] sm:$0xff] }
 0x439   : > { %v4771_v19 = vpop.permute.xlu1 %4770 }
 0x43a   : > { %v4838_v48 = vsel %vm1019_vm3, %v9199_v16, %v4771_v19  ;;  %v4779_v23 = vpop.permute.xlu0 %4778  ;;  %v5473_v19 = vpack.c.bf16 %v4875_v15, %v4867_v13 }
 0x43b   : > { %v4839_v38 = vsel %vm385_vm1, %v4838_v48, %v9201_v37  ;;  %2922 = vrot.lane.b32.xlu1 %v2828_v42, %s5560_s26  ;;  %v4866_v42 = vld [vmem:[#allocation3 + $0x20] sm:$0xff] }
 0x43c   : > { %v4840_v49 = vsel %vm1022_vm4, %v4839_v38, %v4779_v23  ;;  %2910 = vrot.lane.b32.xlu0 %v2826_v1, %s5560_s26  ;;  %v4888_v43 = vld [vmem:[#allocation3 + $0xd0] sm:$0xff]  ;;  %v5475_v57 = vpack.c.bf16 %v4874_v9, %v4866_v42 }
 0x43d   : > { %4856 = vst [vmem:[#allocation3 + $0x118] sm:$0xf] %v4840_v49  ;;  %v4759_v32 = vpop.permute.xlu1 %4758 }
 0x43e   : > { %v4835_v5 = vsel %vm1019_vm3, %v9202_v59, %v4759_v32  ;;  %v1495_v17 = vpop.permute.xlu0 %1494  ;;  %v4881_v63 = vld [vmem:[#allocation3 + $0x98] sm:$0xff] }
 0x43f   : > { %4806 = vrot.lane.b32.xlu1 %v4729_v62, %s5562_s28  ;;  %v5469_v31 = vpack.c.bf16 %v4889_v18, %v4881_v63  ;;  %v4880_v0 = vld [vmem:[#allocation3 + $0x90] sm:$0xff]  ;;  %v4836_v47 = vsel %vm385_vm1, %v4835_v5, %v9203_v60 }
 0x440   : > { %4818 = vrot.lane.b32.xlu0 %v4731_v14, %s5562_s28  ;;  %v5471_v10 = vpack.c.bf16 %v4888_v43, %v4880_v0 }
 0x441   : > { %v4767_v26 = vpop.permute.xlu1 %4766  ;;  %5470 = vmatprep.subr.bf16.mxu0 %v5469_v31 }
 0x442   : > { %v4837_v34 = vsel %vm1022_vm4, %v4836_v47, %v4767_v26  ;;  %5472 = vmatpush1.bf16.msra.mxu0 %v5471_v10  ;;  %v1999_v8 = vpop.permute.xlu0 %1998 }
 0x443   : > { %4855 = vst [vmem:[#allocation3 + $0x110] sm:$0xf] %v4837_v34  ;;  %4814 = vrot.lane.b32.xlu1 %v4730_v52, %s5560_s26 }
 0x444   : > { %4826 = vrot.lane.b32.xlu0 %v4732_v58, %s5560_s26  ;;  %v4897_v36 = vld [vmem:[#allocation3 + $0x118] sm:$0xf] }
 0x445   : > { %v1483_v39 = vpop.permute.xlu1 %1482  ;;  %5324 = vmatprep.subr.msk.mxu0 %vm4912_vm5, %v4897_v36 }
 0x446   : > { %v8468_v44 = vpop.permute.xlu0 %3374 }
 0x448   : > { %4905 = vperm.xlu0 %5506, %v4902_v7  }
 0x449   : > { %v1987_v25 = vpop.permute.xlu1 %1986 }
 0x44a   : > { %v4295_v33 = vpop.permute.xlu0 %4294  ;;  %v4896_v61 = vld [vmem:[#allocation3 + $0x110] sm:$0xf] }
 0x44b   : > { %5325 = vmatpush1.msk.msra.mxu0 %vm4912_vm5, %v4896_v61 }
 0x44c   : > { %5474 = vmatprep.subr.bf16.mxu0 %v5473_v19  ;;  %5326 = vmatmul.mubr.msk.f32.vlgmr.msra.gmra.mrb[10].mxu0 %vm4908_vm6, %v8401_v12 }
 0x44d   : > { %v8473_v2 = vpop.permute.xlu1 %3362  ;;  %5476 = vmatpush1.bf16.msra.mxu0 %v5475_v57  ;;  %5143 = vmatprep.mubr.f32.mxu0 %v8830_v45 }
 0x44e   : > { %v4283_v16 = vpop.permute.xlu0 %4282 }
 0x451   : > { %v8476_v48 = vpop.permute.xlu1 %2894 }
 0x452   : > { %v8478_v23 = vpop.permute.xlu0 %2882 }
 0x455   : > { %v8480_v1 = vpop.permute.xlu1 %4786 }
 0x456   : > { %v8482_v30 = vpop.permute.xlu0 %4798 }
 0x459   : > { %v8484_v37 = vpop.permute.xlu1 %3386 }
 0x45a   : > { %v8486_v38 = vpop.permute.xlu0 %3398 }
 0x45d   : > { %v8488_v49 = vpop.permute.xlu1 %2918 }
 0x45e   : > { %v8490_v32 = vpop.permute.xlu0 %4318 }
 0x461   : > { %v8492_v62 = vpop.permute.xlu1 %4810 }
 0x462   : > { %v8494_v59 = vpop.permute.xlu0 %4306 }
 0x465   : > { %v1491_v5 = vpop.permute.xlu1 %1490 }
 0x466   : > { %v1522_v14 = vsel %vm1019_vm3, %v8109_v24, %v1491_v5  ;;  %v8498_v63 = vpop.permute.xlu0 %2906 }
 0x467   : > { %v1523_v31 = vsel %vm385_vm1, %v1522_v14, %v1495_v17 }
 0x469   : > { %v1499_v18 = vpop.permute.xlu1 %1498 }
 0x46a   : > { %v1524_v0 = vsel %vm1022_vm4, %v1523_v31, %v1499_v18  ;;  %v8502_v43 = vpop.permute.xlu0 %4822 }
 0x46b   : > { %v1540_v10 = vrot.slane %v1524_v0, 4 }
 0x46d   : > { %1556 = vst [vmem:[#allocation3 + $0x38] sm:$0xf0] %v1540_v10  ;;  %v1995_v60 = vpop.permute.xlu1 %1994 }
 0x46e   : > { %v2026_v47 = vsel %vm1019_vm3, %v8147_v27, %v1995_v60  ;;  %v1479_v26 = vpop.permute.xlu0 %1478 }
 0x46f   : > { %v1519_v52 = vsel %vm1019_vm3, %v8156_v6, %v1479_v26  ;;  %v2027_v34 = vsel %vm385_vm1, %v2026_v47, %v1999_v8 }
 0x470   : > { %v1520_v17 = vsel %vm385_vm1, %v1519_v52, %v1483_v39 }
 0x471   : > { %v2003_v24 = vpop.permute.xlu1 %2002 }
 0x472   : > { %v2028_v58 = vsel %vm1022_vm4, %v2027_v34, %v2003_v24  ;;  %v1487_v53 = vpop.permute.xlu0 %1486 }
 0x473   : > { %2036 = vst [vmem:[#allocation3 + $0x78] sm:$0xf] %v2028_v58  ;;  %v1521_v36 = vsel %vm1022_vm4, %v1520_v17, %v1487_v53 }
 0x474   : > { %v1539_v7 = vrot.slane %v1521_v36, 4 }
 0x475   : > { %v3371_v15 = vpop.permute.xlu1 %3370 }
 0x476   : > { %1555 = vst [vmem:[#allocation3 + $0x30] sm:$0xf0] %v1539_v7  ;;  %v1983_v9 = vpop.permute.xlu0 %1982 }
 0x477   : > { %v2023_v27 = vsel %vm1019_vm3, %v8187_v4, %v1983_v9 }
 0x478   : > { %v2024_v6 = vsel %vm385_vm1, %v2023_v27, %v1987_v25  ;;  %v3420_v25 = vsel %vm1019_vm3, %v8181_v20, %v3371_v15 }
 0x479   : > { %v3359_v13 = vpop.permute.xlu1 %3358  ;;  %v3421_v60 = vsel %vm385_vm1, %v3420_v25, %v8468_v44 }
 0x47a   : > { %v1991_v61 = vpop.permute.xlu0 %1990 }
 0x47b   : > { %v2025_v8 = vsel %vm1022_vm4, %v2024_v6, %v1991_v61 }
 0x47c   : > { %2035 = vst [vmem:[#allocation3 + $0x70] sm:$0xf] %v2025_v8 }
 0x47d   : > { %v4279_v19 = vpop.permute.xlu1 %4278 }
 0x47e   : > { %v4291_v39 = vpop.permute.xlu0 %4290  ;;  %v4337_v14 = vsel %vm1019_vm3, %v8211_v56, %v4279_v19 }
 0x47f   : > { %v4340_v42 = vsel %vm1019_vm3, %v8219_v51, %v4291_v39  ;;  %v4338_v10 = vsel %vm385_vm1, %v4337_v14, %v4283_v16 }
 0x480   : > { %v4341_v57 = vsel %vm385_vm1, %v4340_v42, %v4295_v33 }
 0x481   : > { %v4299_v5 = vpop.permute.xlu1 %4298 }
 0x482   : > { %v4342_v4 = vsel %vm1022_vm4, %v4341_v57, %v4299_v5  ;;  %v2891_v18 = vpop.permute.xlu0 %2890 }
 0x483   : > { %v4362_v31 = vrot.slane %v4342_v4, 4  ;;  %v2940_v51 = vsel %vm1019_vm3, %v8234_v28, %v2891_v18  ;;  %v3417_v28 = vsel %vm1019_vm3, %v8196_v55, %v3359_v13 }
 0x484   : > { %v2941_v24 = vsel %vm385_vm1, %v2940_v51, %v8476_v48  ;;  %v3418_v44 = vsel %vm385_vm1, %v3417_v28, %v8473_v2 }
 0x485   : > { %4378 = vst [vmem:[#allocation3 + $0xe8] sm:$0xf0] %v4362_v31  ;;  %v4287_v0 = vpop.permute.xlu1 %4286 }
 0x486   : > { %v4339_v33 = vsel %vm1022_vm4, %v4338_v10, %v4287_v0  ;;  %v3379_v56 = vpop.permute.xlu0 %3378 }
 0x487   : > { %v4361_v47 = vrot.slane %v4339_v33, 4  ;;  %v3422_v26 = vsel %vm1022_vm4, %v3421_v60, %v3379_v56 }
 0x488   : > { %v3442_v52 = vrot.slane %v3422_v26, 4 }
 0x489   : > { %4377 = vst [vmem:[#allocation3 + $0xe0] sm:$0xf0] %v4361_v47  ;;  %v2899_v20 = vpop.permute.xlu1 %2898 }
 0x48a   : > { %3458 = vst [vmem:[#allocation3 + $0xa8] sm:$0xf0] %v3442_v52  ;;  %v2942_v16 = vsel %vm1022_vm4, %v2941_v24, %v2899_v20  ;;  %v2879_v34 = vpop.permute.xlu0 %2878  ;;  %v4877_v52 = vld [vmem:[#allocation3 + $0x78] sm:$0xff]  ;;  %v4876_v20 = vld [vmem:[#allocation3 + $0x70] sm:$0xff] }
 0x48b   : > { %2954 = vst [vmem:[#allocation3 + $0xa8] sm:$0xf] %v2942_v16  ;;  %v2937_v53 = vsel %vm1019_vm3, %v8268_v29, %v2879_v34  ;;  %v4869_v34 = vld [vmem:[#allocation3 + $0x38] sm:$0xff] }
 0x48c   : > { %v2938_v15 = vsel %vm385_vm1, %v2937_v53, %v8478_v23  ;;  %v4891_v55 = vld [vmem:[#allocation3 + $0xe8] sm:$0xff] }
 0x48d   : > { %v4795_v58 = vpop.permute.xlu1 %4794 }
 0x48e   : > { %v3367_v17 = vpop.permute.xlu0 %3366  ;;  %v4844_v29 = vsel %vm1019_vm3, %v8282_v3, %v4795_v58 }
 0x48f   : > { %v3419_v36 = vsel %vm1022_vm4, %v3418_v44, %v3367_v17  ;;  %v4845_v19 = vsel %vm385_vm1, %v4844_v29, %v8482_v30  ;;  %v4868_v17 = vld [vmem:[#allocation3 + $0x30] sm:$0xff] }
 0x490   : > { %v3441_v7 = vrot.slane %v3419_v36, 4  ;;  %v4890_v57 = vld [vmem:[#allocation3 + $0xe0] sm:$0xff] }
 0x491   : > { %v4783_v48 = vpop.permute.xlu1 %4782 }
 0x492   : > { %3457 = vst [vmem:[#allocation3 + $0xa0] sm:$0xf0] %v3441_v7  ;;  %v2887_v9 = vpop.permute.xlu0 %2886  ;;  %v4883_v27 = vld [vmem:[#allocation3 + $0xa8] sm:$0xff]  ;;  %v4841_v4 = vsel %vm1019_vm3, %v8297_v50, %v4783_v48 }
 0x493   : > { %v2939_v13 = vsel %vm1022_vm4, %v2938_v15, %v2887_v9  ;;  %v5477_v6 = vpack.c.bf16 %v4891_v55, %v4883_v27  ;;  %v4842_v25 = vsel %vm385_vm1, %v4841_v4, %v8480_v1 }
 0x494   : > { %2953 = vst [vmem:[#allocation3 + $0xa0] sm:$0xf] %v2939_v13 }
 0x495   : > { %v3395_v2 = vpop.permute.xlu1 %3394  ;;  %5478 = vmatprep.subr.bf16.mxu0 %v5477_v6 }
 0x496   : > { %v4315_v61 = vpop.permute.xlu0 %4314  ;;  %v3426_v3 = vsel %vm1019_vm3, %v8310_v40, %v3395_v2 }
 0x497   : > { %v4346_v31 = vsel %vm1019_vm3, %v8315_v54, %v4315_v61  ;;  %v3427_v10 = vsel %vm385_vm1, %v3426_v3, %v8486_v38 }
 0x498   : > { %v4347_v1 = vsel %vm385_vm1, %v4346_v31, %v8490_v32 }
 0x499   : > { %v3383_v8 = vpop.permute.xlu1 %3382 }
 0x49a   : > { %v4803_v39 = vpop.permute.xlu0 %4802  ;;  %v3423_v38 = vsel %vm1019_vm3, %v8326_v11, %v3383_v8  ;;  %v5481_v11 = vpack.c.bf16 %v4877_v52, %v4869_v34 }
 0x49b   : > { %v4846_v23 = vsel %vm1022_vm4, %v4845_v19, %v4803_v39  ;;  %v4882_v42 = vld [vmem:[#allocation3 + $0xa0] sm:$0xff]  ;;  %v3424_v28 = vsel %vm385_vm1, %v3423_v38, %v8484_v37 }
 0x49c   : > { %4858 = vst [vmem:[#allocation3 + $0x128] sm:$0xf] %v4846_v23  ;;  %v5479_v5 = vpack.c.bf16 %v4890_v57, %v4882_v42 }
 0x49d   : > { %v4303_v14 = vpop.permute.xlu1 %4302 }
 0x49e   : > { %5480 = vmatpush1.bf16.msra.mxu0 %v5479_v5  ;;  %v2915_v18 = vpop.permute.xlu0 %2914  ;;  %v4343_v54 = vsel %vm1019_vm3, %v8338_v46, %v4303_v14 }
 0x49f   : > { %v4344_v16 = vsel %vm385_vm1, %v4343_v54, %v8494_v59  ;;  %v2946_v32 = vsel %vm1019_vm3, %v8348_v41, %v2915_v18  ;;  %v5483_v59 = vpack.c.bf16 %v4876_v20, %v4868_v17 }
 0x4a0   : > { %v2947_v37 = vsel %vm385_vm1, %v2946_v32, %v8488_v49 }
 0x4a1   : > { %v4791_v30 = vpop.permute.xlu1 %4790 }
 0x4a2   : > { %v4843_v0 = vsel %vm1022_vm4, %v4842_v25, %v4791_v30  ;;  %v3403_v51 = vpop.permute.xlu0 %3402 }
 0x4a3   : > { %4857 = vst [vmem:[#allocation3 + $0x120] sm:$0xf] %v4843_v0  ;;  %v3428_v50 = vsel %vm1022_vm4, %v3427_v10, %v3403_v51  ;;  %v4899_v33 = vld [vmem:[#allocation3 + $0x128] sm:$0xf] }
 0x4a4   : > { %v3444_v60 = vrot.slane %v3428_v50, 4  ;;  %5327 = vmatprep.subr.msk.mxu0 %vm4912_vm5, %v4899_v33 }
 0x4a5   : > { %v4323_v40 = vpop.permute.xlu1 %4322 }
 0x4a6   : > { %3460 = vst [vmem:[#allocation3 + $0xb8] sm:$0xf0] %v3444_v60  ;;  %v4348_v56 = vsel %vm1022_vm4, %v4347_v1, %v4323_v40  ;;  %v2903_v47 = vpop.permute.xlu0 %2902 }
 0x4a7   : > { %v4364_v26 = vrot.slane %v4348_v56, 4  ;;  %v2943_v53 = vsel %vm1019_vm3, %v8376_v22, %v2903_v47 }
 0x4a8   : > { %v2944_v15 = vsel %vm385_vm1, %v2943_v53, %v8498_v63 }
 0x4a9   : > { %4380 = vst [vmem:[#allocation3 + $0xf8] sm:$0xf0] %v4364_v26  ;;  %v4311_v24 = vpop.permute.xlu1 %4310 }
 0x4aa   : > { %v4345_v46 = vsel %vm1022_vm4, %v4344_v16, %v4311_v24  ;;  %v3391_v58 = vpop.permute.xlu0 %3390  ;;  %v4898_v44 = vld [vmem:[#allocation3 + $0x120] sm:$0xf] }
 0x4ab   : > { %v4363_v36 = vrot.slane %v4345_v46, 4  ;;  %v3425_v7 = vsel %vm1022_vm4, %v3424_v28, %v3391_v58  ;;  %5328 = vmatpush1.msk.msra.mxu0 %vm4912_vm5, %v4898_v44 }
 0x4ac   : > { %v3443_v48 = vrot.slane %v3425_v7, 4  ;;  %5482 = vmatprep.subr.bf16.mxu0 %v5481_v11  ;;  %5329 = vmatmul.mubr.msk.f32.vlgmr.msra.gmra.mrb[12].mxu0 %vm4908_vm6, %v8401_v12 }
 0x4ad   : > { %4379 = vst [vmem:[#allocation3 + $0xf0] sm:$0xf0] %v4363_v36  ;;  %v2923_v41 = vpop.permute.xlu1 %2922  ;;  %5484 = vmatpush1.bf16.msra.mxu0 %v5483_v59  ;;  %5214 = vmatprep.mubr.f32.mxu0 %v8830_v45 }
 0x4ae   : > { %3459 = vst [vmem:[#allocation3 + $0xb0] sm:$0xf0] %v3443_v48  ;;  %v2948_v22 = vsel %vm1022_vm4, %v2947_v37, %v2923_v41  ;;  %v2911_v9 = vpop.permute.xlu0 %2910 }
 0x4af   : > { %2956 = vst [vmem:[#allocation3 + $0xb8] sm:$0xf] %v2948_v22  ;;  %v2945_v27 = vsel %vm1022_vm4, %v2944_v15, %v2911_v9 }
 0x4b0   : > { %2955 = vst [vmem:[#allocation3 + $0xb0] sm:$0xf] %v2945_v27  ;;  %v4893_v19 = vld [vmem:[#allocation3 + $0xf8] sm:$0xff] }
 0x4b1   : > { %v4807_v55 = vpop.permute.xlu1 %4806 }
 0x4b2   : > { %v4847_v13 = vsel %vm1019_vm3, %v8430_v35, %v4807_v55  ;;  %v4819_v6 = vpop.permute.xlu0 %4818 }
 0x4b3   : > { %v4850_v49 = vsel %vm1019_vm3, %v8440_v21, %v4819_v6  ;;  %v4848_v45 = vsel %vm385_vm1, %v4847_v13, %v8492_v62 }
 0x4b4   : > { %v4851_v63 = vsel %vm385_vm1, %v4850_v49, %v8502_v43  ;;  %v4892_v42 = vld [vmem:[#allocation3 + $0xf0] sm:$0xff] }
 0x4b5   : > { %v4815_v2 = vpop.permute.xlu1 %4814 }
 0x4b6   : > { %v4849_v61 = vsel %vm1022_vm4, %v4848_v45, %v4815_v2  ;;  %v4827_v29 = vpop.permute.xlu0 %4826  ;;  %v4885_v8 = vld [vmem:[#allocation3 + $0xb8] sm:$0xff] }
 0x4b7   : > { %4859 = vst [vmem:[#allocation3 + $0x130] sm:$0xf] %v4849_v61  ;;  %v4852_v35 = vsel %vm1022_vm4, %v4851_v63, %v4827_v29  ;;  %v5485_v39 = vpack.c.bf16 %v4893_v19, %v4885_v8  ;;  %v4884_v23 = vld [vmem:[#allocation3 + $0xb0] sm:$0xff] }
 0x4b8   : > { %4860 = vst [vmem:[#allocation3 + $0x138] sm:$0xf] %v4852_v35  ;;  %v5487_v21 = vpack.c.bf16 %v4892_v42, %v4884_v23 }
 0x4b9   : > { %5486 = vmatprep.subr.bf16.mxu0 %v5485_v39 }
 0x4ba   : > { %5488 = vmatpush1.bf16.msra.mxu0 %v5487_v21 }
 0x4be   : > { %v4900_v57 = vld [vmem:[#allocation3 + $0x130] sm:$0xf] }
 0x4bf   : > { %v4901_v62 = vld [vmem:[#allocation3 + $0x138] sm:$0xf] }
 0x4c0   : > { %5330 = vmatprep.subr.msk.mxu0 %vm4912_vm5, %v4901_v62 }
 0x4c1   : > { %5331 = vmatpush1.msk.msra.mxu0 %vm4912_vm5, %v4900_v57 }
 0x4c2   : > { %5332 = vmatmul.mubr.msk.f32.vlgmr.msra.gmra.mrb[14].mxu0 %vm4908_vm6, %v8401_v12 }
 0x4c7   : > { %v4906_v43 = vpop.permute.xlu0 %4905 }
 0x508   : > { %v5003_v5 = vpop.f32.mrb[8].mxu0 }
 0x509   : > { %v5005_v14 = vpop.f32.mrb[9].mxu0  ;;  %v5004_v4 = vadd.f32 %v5003_v5, %v4906_v43 }
 0x50a   : > { %v5006_v18 = vadd.f32 %v5005_v14, %v4906_v43 }
 0x50b   : > { %5221 = vst [vmem:[%s224_s10] sm:$0x3f] %v5004_v4 }
 0x50c   : > { %5222 = vst [vmem:[%s224_s10 + $0x8] sm:$0x3f] %v5006_v18 }
 0x51f   : > { %v5074_v3 = vpop.f32.mrb[10].mxu0 }
 0x520   : > { %v5075_v25 = vadd.f32 %v5074_v3, %v4906_v43  ;;  %v5076_v30 = vpop.f32.mrb[11].mxu0 }
 0x521   : > { %v5077_v31 = vadd.f32 %v5076_v30, %v4906_v43 }
 0x522   : > { %5223 = vst [vmem:[%s224_s10 + $0x10] sm:$0x3f] %v5075_v25 }
 0x523   : > { %5224 = vst [vmem:[%s224_s10 + $0x18] sm:$0x3f] %v5077_v31 }
 0x57f   : > { %v5145_v0 = vpop.f32.mrb[12].mxu0 }
 0x580   : > { %v5146_v12 = vadd.f32 %v5145_v0, %v4906_v43  ;;  %v5147_v10 = vpop.f32.mrb[13].mxu0 }
 0x581   : > { %v5148_v51 = vadd.f32 %v5147_v10, %v4906_v43 }
 0x582   : > { %5225 = vst [vmem:[%s224_s10 + $0x20] sm:$0x3f] %v5146_v12 }
 0x583   : > { %5226 = vst [vmem:[%s224_s10 + $0x28] sm:$0x3f] %v5148_v51 }
 0x595   : > { %v5216_v50 = vpop.f32.mrb[14].mxu0 }
 0x596   : > { %v5217_v33 = vadd.f32 %v5216_v50, %v4906_v43  ;;  %v5218_v60 = vpop.f32.mrb[15].mxu0 }
 0x597   : > { %v5219_v40 = vadd.f32 %v5218_v60, %v4906_v43 }
 0x598   : > { %5227 = vst [vmem:[%s224_s10 + $0x30] sm:$0x3f] %v5217_v33 }
 0x599   : > { %5228 = vst [vmem:[%s224_s10 + $0x38] sm:$0x3f] %v5219_v40 }
 0x59a PF: > { %s15_s18 = sadd.s32 1, %s5553_s18  }
 0x59b   : > { %p12_p4 = scmp.ge.s32.totalorder %s15_s18, 4  }
 0x59d   :  { %14 = sbr.rel (!%p12_p4) target bundleno = 1 (0x1), region = 73 }

</bundles_post_ra>
